<compile_context>
chip_gen: v7x
topology: tpu7x:2x2x1
jax: 0.10.0
libtpu: 0.0.40
codegen_flags: <defaults>
</compile_context>

<pallas_src>
import functools

import jax
import jax.numpy as jnp
import numpy as np
from jax.experimental import pallas as pl
from jax.experimental.pallas import tpu as pltpu


# ----------------------------------------------------------------------------
# Pallas kernel: full S2VT train-mode forward
# ----------------------------------------------------------------------------
def s2vt_kernel(
    vid_ref,        # (T*Bp,  Dv)  time-major, batch padded to Bp
    emb_ref,        # (Lw*Bp, Dw)  teacher-forced word embeddings
    cms_ref,        # (Lc*Bp, Dw)  teacher-forced CMS embeddings
    w_ih1_ref,      # (Dv, 3H)
    w_h1f_ref,      # (H, 6H)  fused [W_hh1 | W_ih2(hidden slab)]
    gib1_ref, bhn1_ref,                        # (1,3H), (1,H)
    w_ih2w_ref, w_hh2_ref, gib2_ref, bhn2_ref,  # rnn2 word slab / recurrent
    w_ih3h_ref, w_ih3w_ref, w_hh3_ref, gib3_ref, bhn3_ref,  # rnn3
    w_out_ref, b_out_ref,      # (H, Vp),  (1, Vp)   lane-padded vocab projection
    w_cms_ref, b_cms_ref,      # (H, Vcp), (1, Vcp)  lane-padded CMS projection
    seq_out_ref,    # out: (Lw*Bp, Vp)
    cms_out_ref,    # out: (Lc*Bp, Vcp)
    gi1_sc,         # scratch ((T+Lw)*Bp, 3H)  rnn1 input gates (frames + padding frames)
    gi2x_sc,        # scratch ((T+Lw)*Bp, 3H)  rnn2 non-hidden input gates
    gi3_sc,         # scratch (Lc*Bp, 3H)      rnn3 word-slab input gates
    h2_hist,        # scratch ((T+Lw)*Bp, H)   per-step rnn2 hidden states
    h3_hist,        # scratch (Lc*Bp, H)       per-step rnn3 hidden states
    *, T, Lw, Lc, Bp, H,
):
    f32 = jnp.float32
    G = 3 * H
    N = T + Lw                       # total rnn1/rnn2 steps (encoder + word decoder)
    enc_rows = T * Bp
    dec_rows = Lw * Bp

    # loop-resident weights / biases (small; live in vregs)
    w_h1f = w_h1f_ref[...]
    w_hh2 = w_hh2_ref[...]
    w_hh3 = w_hh3_ref[...]
    gib1 = gib1_ref[...]; bhn1 = bhn1_ref[...]
    gib2 = gib2_ref[...]; bhn2 = bhn2_ref[...]
    gib3 = gib3_ref[...]; bhn3 = bhn3_ref[...]

    def gru_gates(gi, gh, bhn, h):
        # PyTorch GRU gate order r, z, n.  b_ih and the r/z part of b_hh are
        # already folded into gi; bhn = b_hh[n] (scaled by r per PyTorch).
        # TODO(synk): at real H (multiple of 128) these slices are lane-aligned.
        r = jax.nn.sigmoid(gi[:, 0 * H:1 * H] + gh[:, 0 * H:1 * H])
        z = jax.nn.sigmoid(gi[:, 1 * H:2 * H] + gh[:, 1 * H:2 * H])
        n = jnp.tanh(gi[:, 2 * H:3 * H] + r * (gh[:, 2 * H:3 * H] + bhn))
        return (1.0 - z) * n + z * h

    def log_softmax(x):
        m = jnp.max(x, axis=-1, keepdims=True)
        s = x - m
        return s - jnp.log(jnp.sum(jnp.exp(s), axis=-1, keepdims=True))

    # ---- batched input projections: big MXU ops + single dense stores -------
    # rnn1 gates: encoder rows from frames, decoder rows = padding frame (bias only)
    gi1_sc[pl.ds(0, enc_rows), :] = (
        jnp.dot(vid_ref[...], w_ih1_ref[...], preferred_element_type=f32) + gib1)
    gi1_sc[pl.ds(enc_rows, dec_rows), :] = jnp.broadcast_to(gib1, (dec_rows, G))
    # rnn2 non-hidden gates: encoder rows = padding word (bias only),
    # decoder rows = word-slab projection of the teacher-forced embeddings
    gi2x_sc[pl.ds(0, enc_rows), :] = jnp.broadcast_to(gib2, (enc_rows, G))
    gi2x_sc[pl.ds(enc_rows, dec_rows), :] = (
        jnp.dot(emb_ref[...], w_ih2w_ref[...], preferred_element_type=f32) + gib2)

    # ---- skewed rnn1/rnn2 recurrence over N = T + Lw steps -------------------
    # Iteration t computes rnn2 step t and rnn1 step t+1; the two dots that
    # share h1[t] are fused into one (Bp, 6H) dot, and rnn2's gh2 dot is
    # independent of it, so the scheduler can overlap the chains.
    zeros_bh = jnp.zeros((Bp, H), f32)
    gi1_0 = gi1_sc[pl.ds(0, Bp), :]
    h1 = gru_gates(gi1_0, jnp.zeros((Bp, G), f32), bhn1, zeros_bh)   # rnn1 step 0

    def step(t, carry):
        h1, h2 = carry
        off = pl.multiple_of(t * Bp, Bp)
        fused = jnp.dot(h1, w_h1f, preferred_element_type=f32)       # (Bp, 6H)
        gh1_next = fused[:, :G]                                      # rnn1 step t+1
        gi2 = fused[:, G:] + gi2x_sc[pl.ds(off, Bp), :]              # rnn2 step t
        gh2 = jnp.dot(h2, w_hh2, preferred_element_type=f32)
        h2_new = gru_gates(gi2, gh2, bhn2, h2)
        h2_hist[pl.ds(off, Bp), :] = h2_new
        off1 = pl.multiple_of((t + 1) * Bp, Bp)
        h1_next = gru_gates(gi1_sc[pl.ds(off1, Bp), :], gh1_next, bhn1, h1)
        return h1_next, h2_new

    h1, h2 = jax.lax.fori_loop(0, N - 1, step, (h1, zeros_bh), unroll=True)

    # epilogue: final rnn2 step (rnn1 has already run all N steps)
    fused = jnp.dot(h1, w_h1f, preferred_element_type=f32)
    gi2 = fused[:, G:] + gi2x_sc[pl.ds((N - 1) * Bp, Bp), :]
    gh2 = jnp.dot(h2, w_hh2, preferred_element_type=f32)
    h2 = gru_gates(gi2, gh2, bhn2, h2)
    h2_hist[pl.ds((N - 1) * Bp, Bp), :] = h2

    # ---- CMS decoder: rnn3 with fully hoisted loop-invariant input term ------
    out2 = h2                                    # output2 of the last word step
    base3 = jnp.dot(out2, w_ih3h_ref[...],
                    preferred_element_type=f32) + gib3       # loop-invariant (Bp,3H)
    gi3_sc[...] = jnp.dot(cms_ref[...], w_ih3w_ref[...], preferred_element_type=f32)

    def cms_step(i, h3):
        off = pl.multiple_of(i * Bp, Bp)
        gi3 = gi3_sc[pl.ds(off, Bp), :] + base3   # base3 lives in vregs (hoisted)
        gh3 = jnp.dot(h3, w_hh3, preferred_element_type=f32)
        h3_new = gru_gates(gi3, gh3, bhn3, h3)
        h3_hist[pl.ds(off, Bp), :] = h3_new
        return h3_new

    _ = jax.lax.fori_loop(0, Lc, cms_step, out2, unroll=True)   # state3 = state2

    # ---- batched output projections + log_softmax (lane-dense stores) --------
    # decoder part of the history feeds the projection directly (no concatenate)
    seq_logits = jnp.dot(h2_hist[pl.ds(T * Bp, Lw * Bp), :], w_out_ref[...],
                         preferred_element_type=f32) + b_out_ref[...]
    seq_out_ref[...] = log_softmax(seq_logits)

    cms_logits = jnp.dot(h3_hist[...], w_cms_ref[...],
                         preferred_element_type=f32) + b_cms_ref[...]
    cms_out_ref[...] = log_softmax(cms_logits)


# ----------------------------------------------------------------------------
# Parameter construction (deterministic, PyTorch-like shapes, pre-transposed)
# ----------------------------------------------------------------------------
def init_params(key, vocab_size, cms_vocab_size, dim_hidden, dim_word, dim_vid):
    H = dim_hidden
    keys = iter(jax.random.split(key, 32))

    def u(shape, bound):
        return jax.random.uniform(next(keys), shape, jnp.float32, -bound, bound)

    kb = 1.0 / np.sqrt(H)
    p = {}
    # GRU weights: stored already transposed -> (in_dim, 3H), (H, 3H); biases (1, 3H)
    for name, in_dim in (("1", dim_vid), ("2", H + dim_word), ("3", H + dim_word)):
        p[f"w_ih{name}"] = u((in_dim, 3 * H), kb)
        p[f"w_hh{name}"] = u((H, 3 * H), kb)
        p[f"b_ih{name}"] = u((1, 3 * H), kb)
        p[f"b_hh{name}"] = u((1, 3 * H), kb)
    # embedding (vocab, dim_word) — shared for words & cms words (as in the module)
    p["embedding"] = jax.random.normal(next(keys), (vocab_size, dim_word), jnp.float32)
    # output linears, pre-transposed to (H, out_dim); biases (1, out_dim)
    p["w_out"] = u((H, vocab_size), kb)
    p["b_out"] = u((1, vocab_size), kb)
    p["w_cms"] = u((H, cms_vocab_size), kb)
    p["b_cms"] = u((1, cms_vocab_size), kb)
    return p


# ----------------------------------------------------------------------------
# Wrapper (layout plumbing + embedding gather + pallas_call)
# ----------------------------------------------------------------------------
@functools.partial(jax.jit, static_argnames=("max_len", "cms_max_len"))
def s2vt_forward(params, vid_feats, target, cms_target, *, max_len, cms_max_len):
    B, T, Dv = vid_feats.shape
    H = params["w_hh1"].shape[0]
    G = 3 * H
    Dw = params["embedding"].shape[1]
    V = params["w_out"].shape[1]
    Vc = params["w_cms"].shape[1]
    Lw = max_len - 1
    Lc = cms_max_len - 1
    N = T + Lw

    lane = 128
    sub = 8                                   # f32 sublane count
    Bp = ((B + sub - 1) // sub) * sub         # batch padded to full sublanes
    Vp = ((V + lane - 1) // lane) * lane
    Vcp = ((Vc + lane - 1) // lane) * lane

    def fold_bias(b_ih, b_hh):
        # gi gets b_ih plus the r/z part of b_hh; the n part of b_hh stays
        # separate because PyTorch scales it by r inside the n gate.
        gib = b_ih + jnp.concatenate(
            [b_hh[:, :2 * H], jnp.zeros_like(b_hh[:, 2 * H:])], axis=1)
        return gib, b_hh[:, 2 * H:]

    gib1, bhn1 = fold_bias(params["b_ih1"], params["b_hh1"])
    gib2, bhn2 = fold_bias(params["b_ih2"], params["b_hh2"])
    gib3, bhn3 = fold_bias(params["b_ih3"], params["b_hh3"])

    # split combined (H+Dw, 3H) input weights into hidden / word slabs, and
    # fuse rnn1's recurrent weight with rnn2's hidden slab (shared-LHS dot).
    w_ih2_h, w_ih2_w = params["w_ih2"][:H], params["w_ih2"][H:]
    w_ih3_h, w_ih3_w = params["w_ih3"][:H], params["w_ih3"][H:]
    w_h1f = jnp.concatenate([params["w_hh1"], w_ih2_h], axis=1)      # (H, 6H)

    # lane-pad the output projections; padded logits get a -1e30 bias so they
    # vanish from log_softmax (exp underflows to 0); sliced off below.
    w_out_p = jnp.pad(params["w_out"], ((0, 0), (0, Vp - V)))
    b_out_p = jnp.pad(params["b_out"], ((0, 0), (0, Vp - V)), constant_values=-1e30)
    w_cms_p = jnp.pad(params["w_cms"], ((0, 0), (0, Vcp - Vc)))
    b_cms_p = jnp.pad(params["b_cms"], ((0, 0), (0, Vcp - Vc)), constant_values=-1e30)

    # time-major, batch-padded, flattened activations; embedding lookups
    # (integer gather) stay in plain JAX glue.
    def pad_batch_tm(x):                      # (B, L, D) -> (L*Bp, D)
        x = jnp.transpose(x, (1, 0, 2))
        x = jnp.pad(x, ((0, 0), (0, Bp - B), (0, 0)))
        return x.reshape(x.shape[0] * Bp, x.shape[2])

    vid_tm = pad_batch_tm(vid_feats.astype(jnp.float32))
    emb_tm = pad_batch_tm(jnp.take(params["embedding"], target[:, :Lw], axis=0))
    cms_tm = pad_batch_tm(jnp.take(params["embedding"], cms_target[:, :Lc], axis=0))

    inputs = (
        vid_tm, emb_tm, cms_tm,
        params["w_ih1"], w_h1f, gib1, bhn1,
        w_ih2_w, params["w_hh2"], gib2, bhn2,
        w_ih3_h, w_ih3_w, params["w_hh3"], gib3, bhn3,
        w_out_p, b_out_p, w_cms_p, b_cms_p,
    )

    kernel = functools.partial(s2vt_kernel, T=T, Lw=Lw, Lc=Lc, Bp=Bp, H=H)
    vmem = pl.BlockSpec(memory_space=pltpu.MemorySpace.VMEM)
    # TODO(synk): at real vocab/hidden sizes, tile w_out/w_cms over vocab blocks
    # with a grid + BlockSpecs, add a parallel batch axis for v7x's two
    # TensorCores, and size pltpu.CompilerParams(vmem_limit_bytes=...).
    seq_p, cms_p = pl.pallas_call(
        kernel,
        out_shape=(
            jax.ShapeDtypeStruct((Lw * Bp, Vp), jnp.float32),
            jax.ShapeDtypeStruct((Lc * Bp, Vcp), jnp.float32),
        ),
        in_specs=[vmem] * len(inputs),
        out_specs=(vmem, vmem),
        scratch_shapes=[
            pltpu.VMEM((N * Bp, G), jnp.float32),    # gi1 (frames + padding frames)
            pltpu.VMEM((N * Bp, G), jnp.float32),    # gi2 non-hidden input gates
            pltpu.VMEM((Lc * Bp, G), jnp.float32),   # gi3 word-slab gates
            pltpu.VMEM((N * Bp, H), jnp.float32),    # h2 history
            pltpu.VMEM((Lc * Bp, H), jnp.float32),   # h3 history
        ],
    )(*inputs)

    seq_probs = jnp.transpose(seq_p.reshape(Lw, Bp, Vp), (1, 0, 2))[:B, :, :V]
    cms_probs = jnp.transpose(cms_p.reshape(Lc, Bp, Vcp), (1, 0, 2))[:B, :, :Vc]
    # train mode: seq_preds / cms_seq_preds are empty lists in the PyTorch module
    return seq_probs, [], cms_probs, []


# ----------------------------------------------------------------------------
# Pure-JAX reference (faithful to the PyTorch module) for a correctness check
# ----------------------------------------------------------------------------
def s2vt_reference(params, vid_feats, target, cms_target, *, max_len, cms_max_len):
    B, T, Dv = vid_feats.shape
    H = params["w_hh1"].shape[0]
    Dw = params["embedding"].shape[1]

    def gru_step(x, h, wih, whh, bih, bhh):
        gi = x @ wih + bih
        gh = h @ whh + bhh
        r = jax.nn.sigmoid(gi[:, :H] + gh[:, :H])
        z = jax.nn.sigmoid(gi[:, H:2 * H] + gh[:, H:2 * H])
        n = jnp.tanh(gi[:, 2 * H:] + r * gh[:, 2 * H:])
        return (1.0 - z) * n + z * h

    emb_words = jnp.take(params["embedding"], target[:, : max_len - 1], axis=0)
    cms_emb_words = jnp.take(params["embedding"], cms_target[:, : cms_max_len - 1], axis=0)

    h1 = jnp.zeros((B, H)); h2 = jnp.zeros((B, H))
    for t in range(T):
        h1 = gru_step(vid_feats[:, t, :], h1, params["w_ih1"], params["w_hh1"],
                      params["b_ih1"], params["b_hh1"])
        h2 = gru_step(jnp.concatenate([h1, jnp.zeros((B, Dw))], 1), h2,
                      params["w_ih2"], params["w_hh2"], params["b_ih2"], params["b_hh2"])
    seq_probs = []
    for i in range(max_len - 1):
        h1 = gru_step(jnp.zeros((B, Dv)), h1, params["w_ih1"], params["w_hh1"],
                      params["b_ih1"], params["b_hh1"])
        h2 = gru_step(jnp.concatenate([h1, emb_words[:, i, :]], 1), h2,
                      params["w_ih2"], params["w_hh2"], params["b_ih2"], params["b_hh2"])
        logits = h2 @ params["w_out"] + params["b_out"]
        seq_probs.append(jax.nn.log_softmax(logits, axis=-1))
    out2 = h2
    h3 = h2
    cms_probs = []
    for i in range(cms_max_len - 1):
        h3 = gru_step(jnp.concatenate([out2, cms_emb_words[:, i, :]], 1), h3,
                      params["w_ih3"], params["w_hh3"], params["b_ih3"], params["b_hh3"])
        logits = h3 @ params["w_cms"] + params["b_cms"]
        cms_probs.append(jax.nn.log_softmax(logits, axis=-1))
    return jnp.stack(seq_probs, 1), jnp.stack(cms_probs, 1)


# ----------------------------------------------------------------------------
if __name__ == "__main__":
    # small shapes consistent with the module's forward
    B = 2            # batch
    T = 8            # n_frames
    dim_vid = 64
    dim_hidden = 32
    dim_word = 16
    vocab_size = 40
    cms_vocab_size = 24
    max_len = 6
    cms_max_len = 5

    key = jax.random.PRNGKey(0)
    kp, kv, kt, kc = jax.random.split(key, 4)

    params = init_params(kp, vocab_size, cms_vocab_size, dim_hidden, dim_word, dim_vid)
    vid_feats = jax.random.normal(kv, (B, T, dim_vid), jnp.float32)
    target = jax.random.randint(kt, (B, max_len), 0, vocab_size, dtype=jnp.int32)
    cms_target = jax.random.randint(kc, (B, cms_max_len), 0, vocab_size, dtype=jnp.int32)

    seq_probs, seq_preds, cms_seq_probs, cms_seq_preds = s2vt_forward(
        params, vid_feats, target, cms_target, max_len=max_len, cms_max_len=cms_max_len)
    jax.block_until_ready((seq_probs, cms_seq_probs))

    # correctness check against plain-JAX reference
    ref_seq, ref_cms = s2vt_reference(
        params, vid_feats, target, cms_target, max_len=max_len, cms_max_len=cms_max_len)
    np.testing.assert_allclose(np.asarray(seq_probs), np.asarray(ref_seq), atol=1e-3, rtol=1e-3)
    np.testing.assert_allclose(np.asarray(cms_seq_probs), np.asarray(ref_cms), atol=1e-3, rtol=1e-3)

    assert seq_probs.shape == (B, max_len - 1, vocab_size)
    assert cms_seq_probs.shape == (B, cms_max_len - 1, cms_vocab_size)
    print("KERNEL_OK")
</pallas_src>

<mosaic_0001>
module attributes {stable_mosaic.version = 11 : i64} {
  func.func @s2vt_kernel(%arg0: memref<64x64xf32, #tpu.memory_space<vmem>>, %arg1: memref<40x16xf32, #tpu.memory_space<vmem>>, %arg2: memref<32x16xf32, #tpu.memory_space<vmem>>, %arg3: memref<64x96xf32, #tpu.memory_space<vmem>>, %arg4: memref<32x192xf32, #tpu.memory_space<vmem>>, %arg5: memref<1x96xf32, #tpu.memory_space<vmem>>, %arg6: memref<1x32xf32, #tpu.memory_space<vmem>>, %arg7: memref<16x96xf32, #tpu.memory_space<vmem>>, %arg8: memref<32x96xf32, #tpu.memory_space<vmem>>, %arg9: memref<1x96xf32, #tpu.memory_space<vmem>>, %arg10: memref<1x32xf32, #tpu.memory_space<vmem>>, %arg11: memref<32x96xf32, #tpu.memory_space<vmem>>, %arg12: memref<16x96xf32, #tpu.memory_space<vmem>>, %arg13: memref<32x96xf32, #tpu.memory_space<vmem>>, %arg14: memref<1x96xf32, #tpu.memory_space<vmem>>, %arg15: memref<1x32xf32, #tpu.memory_space<vmem>>, %arg16: memref<32x128xf32, #tpu.memory_space<vmem>>, %arg17: memref<1x128xf32, #tpu.memory_space<vmem>>, %arg18: memref<32x128xf32, #tpu.memory_space<vmem>>, %arg19: memref<1x128xf32, #tpu.memory_space<vmem>>, %arg20: memref<40x128xf32, #tpu.memory_space<vmem>>, %arg21: memref<32x128xf32, #tpu.memory_space<vmem>>, %arg22: memref<104x96xf32, #tpu.memory_space<vmem>>, %arg23: memref<104x96xf32, #tpu.memory_space<vmem>>, %arg24: memref<32x96xf32, #tpu.memory_space<vmem>>, %arg25: memref<104x32xf32, #tpu.memory_space<vmem>>, %arg26: memref<32x32xf32, #tpu.memory_space<vmem>>) attributes {dimension_semantics = [], scalar_prefetch = 0 : i64, scratch_operands = 5 : i64, tpu.core_type = #tpu.core_type<tc>} {
    %c0 = arith.constant 0 : index
    %c0_0 = arith.constant 0 : index
    %0 = vector.load %arg4[%c0, %c0_0] : memref<32x192xf32, #tpu.memory_space<vmem>>, vector<32x192xf32>
    %c0_1 = arith.constant 0 : index
    %c0_2 = arith.constant 0 : index
    %1 = vector.load %arg8[%c0_1, %c0_2] : memref<32x96xf32, #tpu.memory_space<vmem>>, vector<32x96xf32>
    %c0_3 = arith.constant 0 : index
    %c0_4 = arith.constant 0 : index
    %2 = vector.load %arg13[%c0_3, %c0_4] : memref<32x96xf32, #tpu.memory_space<vmem>>, vector<32x96xf32>
    %c0_5 = arith.constant 0 : index
    %c0_6 = arith.constant 0 : index
    %3 = vector.load %arg5[%c0_5, %c0_6] : memref<1x96xf32, #tpu.memory_space<vmem>>, vector<1x96xf32>
    %c0_7 = arith.constant 0 : index
    %c0_8 = arith.constant 0 : index
    %4 = vector.load %arg6[%c0_7, %c0_8] : memref<1x32xf32, #tpu.memory_space<vmem>>, vector<1x32xf32>
    %c0_9 = arith.constant 0 : index
    %c0_10 = arith.constant 0 : index
    %5 = vector.load %arg9[%c0_9, %c0_10] : memref<1x96xf32, #tpu.memory_space<vmem>>, vector<1x96xf32>
    %c0_11 = arith.constant 0 : index
    %c0_12 = arith.constant 0 : index
    %6 = vector.load %arg10[%c0_11, %c0_12] : memref<1x32xf32, #tpu.memory_space<vmem>>, vector<1x32xf32>
    %c0_13 = arith.constant 0 : index
    %c0_14 = arith.constant 0 : index
    %7 = vector.load %arg14[%c0_13, %c0_14] : memref<1x96xf32, #tpu.memory_space<vmem>>, vector<1x96xf32>
    %c0_15 = arith.constant 0 : index
    %c0_16 = arith.constant 0 : index
    %8 = vector.load %arg15[%c0_15, %c0_16] : memref<1x32xf32, #tpu.memory_space<vmem>>, vector<1x32xf32>
    %c0_17 = arith.constant 0 : index
    %c0_18 = arith.constant 0 : index
    %9 = vector.load %arg0[%c0_17, %c0_18] : memref<64x64xf32, #tpu.memory_space<vmem>>, vector<64x64xf32>
    %c0_19 = arith.constant 0 : index
    %c0_20 = arith.constant 0 : index
    %10 = vector.load %arg3[%c0_19, %c0_20] : memref<64x96xf32, #tpu.memory_space<vmem>>, vector<64x96xf32>
    %cst = arith.constant dense<0.000000e+00> : vector<64x96xf32>
    %11 = tpu.matmul %9, %10, %cst {dimension_numbers = #tpu.dot_dimension_numbers<[1], [0], [0], [1], [0, 0, 1, 1], [], []>} : vector<64x64xf32>, vector<64x96xf32>, vector<64x96xf32> -> vector<64x96xf32>
    %12 = vector.broadcast %3 : vector<1x96xf32> to vector<64x96xf32>
    %13 = arith.addf %11, %12 : vector<64x96xf32>
    %c0_21 = arith.constant 0 : index
    %c0_22 = arith.constant 0 : index
    %14 = vector.load %arg22[%c0_21, %c0_22] : memref<104x96xf32, #tpu.memory_space<vmem>>, vector<64x96xf32>
    tpu.vector_store %arg22[%c0_21, %c0_22], %13 {strides = array<i32>} : memref<104x96xf32, #tpu.memory_space<vmem>>, vector<64x96xf32>,
    %15 = vector.shape_cast %3 : vector<1x96xf32> to vector<1x96xf32>
    %16 = vector.broadcast %15 : vector<1x96xf32> to vector<40x96xf32>
    %c64 = arith.constant 64 : index
    %c0_23 = arith.constant 0 : index
    %17 = vector.load %arg22[%c64, %c0_23] : memref<104x96xf32, #tpu.memory_space<vmem>>, vector<40x96xf32>
    tpu.vector_store %arg22[%c64, %c0_23], %16 {strides = array<i32>} : memref<104x96xf32, #tpu.memory_space<vmem>>, vector<40x96xf32>,
    %18 = vector.shape_cast %5 : vector<1x96xf32> to vector<1x96xf32>
    %19 = vector.broadcast %18 : vector<1x96xf32> to vector<64x96xf32>
    %c0_24 = arith.constant 0 : index
    %c0_25 = arith.constant 0 : index
    %20 = vector.load %arg23[%c0_24, %c0_25] : memref<104x96xf32, #tpu.memory_space<vmem>>, vector<64x96xf32>
    tpu.vector_store %arg23[%c0_24, %c0_25], %19 {strides = array<i32>} : memref<104x96xf32, #tpu.memory_space<vmem>>, vector<64x96xf32>,
    %c0_26 = arith.constant 0 : index
    %c0_27 = arith.constant 0 : index
    %21 = vector.load %arg1[%c0_26, %c0_27] : memref<40x16xf32, #tpu.memory_space<vmem>>, vector<40x16xf32>
    %c0_28 = arith.constant 0 : index
    %c0_29 = arith.constant 0 : index
    %22 = vector.load %arg7[%c0_28, %c0_29] : memref<16x96xf32, #tpu.memory_space<vmem>>, vector<16x96xf32>
    %cst_30 = arith.constant dense<0.000000e+00> : vector<40x96xf32>
    %23 = tpu.matmul %21, %22, %cst_30 {dimension_numbers = #tpu.dot_dimension_numbers<[1], [0], [0], [1], [0, 0, 1, 1], [], []>} : vector<40x16xf32>, vector<16x96xf32>, vector<40x96xf32> -> vector<40x96xf32>
    %24 = vector.broadcast %5 : vector<1x96xf32> to vector<40x96xf32>
    %25 = arith.addf %23, %24 : vector<40x96xf32>
    %c64_31 = arith.constant 64 : index
    %c0_32 = arith.constant 0 : index
    %26 = vector.load %arg23[%c64_31, %c0_32] : memref<104x96xf32, #tpu.memory_space<vmem>>, vector<40x96xf32>
    tpu.vector_store %arg23[%c64_31, %c0_32], %25 {strides = array<i32>} : memref<104x96xf32, #tpu.memory_space<vmem>>, vector<40x96xf32>,
    %cst_33 = arith.constant 0.000000e+00 : f32
    %27 = vector.broadcast %cst_33 : f32 to vector<8x32xf32>
    %c0_34 = arith.constant 0 : index
    %c0_35 = arith.constant 0 : index
    %28 = vector.load %arg22[%c0_34, %c0_35] : memref<104x96xf32, #tpu.memory_space<vmem>>, vector<8x96xf32>
    %cst_36 = arith.constant 0.000000e+00 : f32
    %29 = vector.broadcast %cst_36 : f32 to vector<8x96xf32>
    %30 = vector.extract_strided_slice %28 {offsets = [0, 0], sizes = [8, 32], strides = [1, 1]} : vector<8x96xf32> to vector<8x32xf32>
    %31 = vector.extract_strided_slice %29 {offsets = [0, 0], sizes = [8, 32], strides = [1, 1]} : vector<8x96xf32> to vector<8x32xf32>
    %32 = arith.addf %30, %31 : vector<8x32xf32>
    %33 = arith.negf %32 : vector<8x32xf32>
    %34 = math.exp %33 : vector<8x32xf32>
    %cst_37 = arith.constant 1.000000e+00 : f32
    %35 = vector.broadcast %cst_37 : f32 to vector<8x32xf32>
    %36 = arith.addf %35, %34 : vector<8x32xf32>
    %37 = arith.divf %35, %36 : vector<8x32xf32>
    %38 = vector.extract_strided_slice %28 {offsets = [0, 32], sizes = [8, 32], strides = [1, 1]} : vector<8x96xf32> to vector<8x32xf32>
    %39 = vector.extract_strided_slice %29 {offsets = [0, 32], sizes = [8, 32], strides = [1, 1]} : vector<8x96xf32> to vector<8x32xf32>
    %40 = arith.addf %38, %39 : vector<8x32xf32>
    %41 = arith.negf %40 : vector<8x32xf32>
    %42 = math.exp %41 : vector<8x32xf32>
    %cst_38 = arith.constant 1.000000e+00 : f32
    %43 = vector.broadcast %cst_38 : f32 to vector<8x32xf32>
    %44 = arith.addf %43, %42 : vector<8x32xf32>
    %45 = arith.divf %43, %44 : vector<8x32xf32>
    %46 = vector.extract_strided_slice %28 {offsets = [0, 64], sizes = [8, 32], strides = [1, 1]} : vector<8x96xf32> to vector<8x32xf32>
    %47 = vector.extract_strided_slice %29 {offsets = [0, 64], sizes = [8, 32], strides = [1, 1]} : vector<8x96xf32> to vector<8x32xf32>
    %48 = vector.broadcast %4 : vector<1x32xf32> to vector<8x32xf32>
    %49 = arith.addf %47, %48 : vector<8x32xf32>
    %50 = arith.mulf %37, %49 : vector<8x32xf32>
    %51 = arith.addf %46, %50 : vector<8x32xf32>
    %52 = math.tanh %51 : vector<8x32xf32>
    %cst_39 = arith.constant 1.000000e+00 : f32
    %53 = vector.broadcast %cst_39 : f32 to vector<8x32xf32>
    %54 = arith.subf %53, %45 : vector<8x32xf32>
    %55 = arith.mulf %54, %52 : vector<8x32xf32>
    %56 = arith.mulf %45, %27 : vector<8x32xf32>
    %57 = arith.addf %55, %56 : vector<8x32xf32>
    %c0_i32 = arith.constant 0 : i32
    %c8_i32 = arith.constant 8 : i32
    %58 = arith.muli %c0_i32, %c8_i32 : i32
    %59 = tpu.assume_multiple %58, 8 : i32
    %cst_40 = arith.constant dense<0.000000e+00> : vector<8x192xf32>
    %60 = tpu.matmul %57, %0, %cst_40 {dimension_numbers = #tpu.dot_dimension_numbers<[1], [0], [0], [1], [0, 0, 1, 1], [], []>} : vector<8x32xf32>, vector<32x192xf32>, vector<8x192xf32> -> vector<8x192xf32>
    %61 = vector.extract_strided_slice %60 {offsets = [0, 0], sizes = [8, 96], strides = [1, 1]} : vector<8x192xf32> to vector<8x96xf32>
    %62 = vector.extract_strided_slice %60 {offsets = [0, 96], sizes = [8, 96], strides = [1, 1]} : vector<8x192xf32> to vector<8x96xf32>
    %63 = arith.index_cast %59 : i32 to index
    %c0_41 = arith.constant 0 : index
    %64 = vector.load %arg23[%63, %c0_41] : memref<104x96xf32, #tpu.memory_space<vmem>>, vector<8x96xf32>
    %65 = arith.addf %62, %64 : vector<8x96xf32>
    %cst_42 = arith.constant dense<0.000000e+00> : vector<8x96xf32>
    %66 = tpu.matmul %27, %1, %cst_42 {dimension_numbers = #tpu.dot_dimension_numbers<[1], [0], [0], [1], [0, 0, 1, 1], [], []>} : vector<8x32xf32>, vector<32x96xf32>, vector<8x96xf32> -> vector<8x96xf32>
    %67 = vector.extract_strided_slice %65 {offsets = [0, 0], sizes = [8, 32], strides = [1, 1]} : vector<8x96xf32> to vector<8x32xf32>
    %68 = vector.extract_strided_slice %66 {offsets = [0, 0], sizes = [8, 32], strides = [1, 1]} : vector<8x96xf32> to vector<8x32xf32>
    %69 = arith.addf %67, %68 : vector<8x32xf32>
    %70 = arith.negf %69 : vector<8x32xf32>
    %71 = math.exp %70 : vector<8x32xf32>
    %cst_43 = arith.constant 1.000000e+00 : f32
    %72 = vector.broadcast %cst_43 : f32 to vector<8x32xf32>
    %73 = arith.addf %72, %71 : vector<8x32xf32>
    %74 = arith.divf %72, %73 : vector<8x32xf32>
    %75 = vector.extract_strided_slice %65 {offsets = [0, 32], sizes = [8, 32], strides = [1, 1]} : vector<8x96xf32> to vector<8x32xf32>
    %76 = vector.extract_strided_slice %66 {offsets = [0, 32], sizes = [8, 32], strides = [1, 1]} : vector<8x96xf32> to vector<8x32xf32>
    %77 = arith.addf %75, %76 : vector<8x32xf32>
    %78 = arith.negf %77 : vector<8x32xf32>
    %79 = math.exp %78 : vector<8x32xf32>
    %cst_44 = arith.constant 1.000000e+00 : f32
    %80 = vector.broadcast %cst_44 : f32 to vector<8x32xf32>
    %81 = arith.addf %80, %79 : vector<8x32xf32>
    %82 = arith.divf %80, %81 : vector<8x32xf32>
    %83 = vector.extract_strided_slice %65 {offsets = [0, 64], sizes = [8, 32], strides = [1, 1]} : vector<8x96xf32> to vector<8x32xf32>
    %84 = vector.extract_strided_slice %66 {offsets = [0, 64], sizes = [8, 32], strides = [1, 1]} : vector<8x96xf32> to vector<8x32xf32>
    %85 = vector.broadcast %6 : vector<1x32xf32> to vector<8x32xf32>
    %86 = arith.addf %84, %85 : vector<8x32xf32>
    %87 = arith.mulf %74, %86 : vector<8x32xf32>
    %88 = arith.addf %83, %87 : vector<8x32xf32>
    %89 = math.tanh %88 : vector<8x32xf32>
    %cst_45 = arith.constant 1.000000e+00 : f32
    %90 = vector.broadcast %cst_45 : f32 to vector<8x32xf32>
    %91 = arith.subf %90, %82 : vector<8x32xf32>
    %92 = arith.mulf %91, %89 : vector<8x32xf32>
    %93 = arith.mulf %82, %27 : vector<8x32xf32>
    %94 = arith.addf %92, %93 : vector<8x32xf32>
    %95 = arith.index_cast %59 : i32 to index
    %c0_46 = arith.constant 0 : index
    %96 = vector.load %arg25[%95, %c0_46] : memref<104x32xf32, #tpu.memory_space<vmem>>, vector<8x32xf32>
    tpu.vector_store %arg25[%95, %c0_46], %94 {strides = array<i32>} : memref<104x32xf32, #tpu.memory_space<vmem>>, vector<8x32xf32>,
    %c1_i32 = arith.constant 1 : i32
    %97 = arith.addi %c0_i32, %c1_i32 : i32
    %c8_i32_47 = arith.constant 8 : i32
    %98 = arith.muli %97, %c8_i32_47 : i32
    %99 = tpu.assume_multiple %98, 8 : i32
    %100 = arith.index_cast %99 : i32 to index
    %c0_48 = arith.constant 0 : index
    %101 = vector.load %arg22[%100, %c0_48] : memref<104x96xf32, #tpu.memory_space<vmem>>, vector<8x96xf32>
    %102 = vector.extract_strided_slice %101 {offsets = [0, 0], sizes = [8, 32], strides = [1, 1]} : vector<8x96xf32> to vector<8x32xf32>
    %103 = vector.extract_strided_slice %61 {offsets = [0, 0], sizes = [8, 32], strides = [1, 1]} : vector<8x96xf32> to vector<8x32xf32>
    %104 = arith.addf %102, %103 : vector<8x32xf32>
    %105 = arith.negf %104 : vector<8x32xf32>
    %106 = math.exp %105 : vector<8x32xf32>
    %cst_49 = arith.constant 1.000000e+00 : f32
    %107 = vector.broadcast %cst_49 : f32 to vector<8x32xf32>
    %108 = arith.addf %107, %106 : vector<8x32xf32>
    %109 = arith.divf %107, %108 : vector<8x32xf32>
    %110 = vector.extract_strided_slice %101 {offsets = [0, 32], sizes = [8, 32], strides = [1, 1]} : vector<8x96xf32> to vector<8x32xf32>
    %111 = vector.extract_strided_slice %61 {offsets = [0, 32], sizes = [8, 32], strides = [1, 1]} : vector<8x96xf32> to vector<8x32xf32>
    %112 = arith.addf %110, %111 : vector<8x32xf32>
    %113 = arith.negf %112 : vector<8x32xf32>
    %114 = math.exp %113 : vector<8x32xf32>
    %cst_50 = arith.constant 1.000000e+00 : f32
    %115 = vector.broadcast %cst_50 : f32 to vector<8x32xf32>
    %116 = arith.addf %115, %114 : vector<8x32xf32>
    %117 = arith.divf %115, %116 : vector<8x32xf32>
    %118 = vector.extract_strided_slice %101 {offsets = [0, 64], sizes = [8, 32], strides = [1, 1]} : vector<8x96xf32> to vector<8x32xf32>
    %119 = vector.extract_strided_slice %61 {offsets = [0, 64], sizes = [8, 32], strides = [1, 1]} : vector<8x96xf32> to vector<8x32xf32>
    %120 = vector.broadcast %4 : vector<1x32xf32> to vector<8x32xf32>
    %121 = arith.addf %119, %120 : vector<8x32xf32>
    %122 = arith.mulf %109, %121 : vector<8x32xf32>
    %123 = arith.addf %118, %122 : vector<8x32xf32>
    %124 = math.tanh %123 : vector<8x32xf32>
    %cst_51 = arith.constant 1.000000e+00 : f32
    %125 = vector.broadcast %cst_51 : f32 to vector<8x32xf32>
    %126 = arith.subf %125, %117 : vector<8x32xf32>
    %127 = arith.mulf %126, %124 : vector<8x32xf32>
    %128 = arith.mulf %117, %57 : vector<8x32xf32>
    %129 = arith.addf %127, %128 : vector<8x32xf32>
    %c1_i32_52 = arith.constant 1 : i32
    %c8_i32_53 = arith.constant 8 : i32
    %130 = arith.muli %c1_i32_52, %c8_i32_53 : i32
    %131 = tpu.assume_multiple %130, 8 : i32
    %cst_54 = arith.constant dense<0.000000e+00> : vector<8x192xf32>
    %132 = tpu.matmul %129, %0, %cst_54 {dimension_numbers = #tpu.dot_dimension_numbers<[1], [0], [0], [1], [0, 0, 1, 1], [], []>} : vector<8x32xf32>, vector<32x192xf32>, vector<8x192xf32> -> vector<8x192xf32>
    %133 = vector.extract_strided_slice %132 {offsets = [0, 0], sizes = [8, 96], strides = [1, 1]} : vector<8x192xf32> to vector<8x96xf32>
    %134 = vector.extract_strided_slice %132 {offsets = [0, 96], sizes = [8, 96], strides = [1, 1]} : vector<8x192xf32> to vector<8x96xf32>
    %135 = arith.index_cast %131 : i32 to index
    %c0_55 = arith.constant 0 : index
    %136 = vector.load %arg23[%135, %c0_55] : memref<104x96xf32, #tpu.memory_space<vmem>>, vector<8x96xf32>
    %137 = arith.addf %134, %136 : vector<8x96xf32>
    %cst_56 = arith.constant dense<0.000000e+00> : vector<8x96xf32>
    %138 = tpu.matmul %94, %1, %cst_56 {dimension_numbers = #tpu.dot_dimension_numbers<[1], [0], [0], [1], [0, 0, 1, 1], [], []>} : vector<8x32xf32>, vector<32x96xf32>, vector<8x96xf32> -> vector<8x96xf32>
    %139 = vector.extract_strided_slice %137 {offsets = [0, 0], sizes = [8, 32], strides = [1, 1]} : vector<8x96xf32> to vector<8x32xf32>
    %140 = vector.extract_strided_slice %138 {offsets = [0, 0], sizes = [8, 32], strides = [1, 1]} : vector<8x96xf32> to vector<8x32xf32>
    %141 = arith.addf %139, %140 : vector<8x32xf32>
    %142 = arith.negf %141 : vector<8x32xf32>
    %143 = math.exp %142 : vector<8x32xf32>
    %cst_57 = arith.constant 1.000000e+00 : f32
    %144 = vector.broadcast %cst_57 : f32 to vector<8x32xf32>
    %145 = arith.addf %144, %143 : vector<8x32xf32>
    %146 = arith.divf %144, %145 : vector<8x32xf32>
    %147 = vector.extract_strided_slice %137 {offsets = [0, 32], sizes = [8, 32], strides = [1, 1]} : vector<8x96xf32> to vector<8x32xf32>
    %148 = vector.extract_strided_slice %138 {offsets = [0, 32], sizes = [8, 32], strides = [1, 1]} : vector<8x96xf32> to vector<8x32xf32>
    %149 = arith.addf %147, %148 : vector<8x32xf32>
    %150 = arith.negf %149 : vector<8x32xf32>
    %151 = math.exp %150 : vector<8x32xf32>
    %cst_58 = arith.constant 1.000000e+00 : f32
    %152 = vector.broadcast %cst_58 : f32 to vector<8x32xf32>
    %153 = arith.addf %152, %151 : vector<8x32xf32>
    %154 = arith.divf %152, %153 : vector<8x32xf32>
    %155 = vector.extract_strided_slice %137 {offsets = [0, 64], sizes = [8, 32], strides = [1, 1]} : vector<8x96xf32> to vector<8x32xf32>
    %156 = vector.extract_strided_slice %138 {offsets = [0, 64], sizes = [8, 32], strides = [1, 1]} : vector<8x96xf32> to vector<8x32xf32>
    %157 = vector.broadcast %6 : vector<1x32xf32> to vector<8x32xf32>
    %158 = arith.addf %156, %157 : vector<8x32xf32>
    %159 = arith.mulf %146, %158 : vector<8x32xf32>
    %160 = arith.addf %155, %159 : vector<8x32xf32>
    %161 = math.tanh %160 : vector<8x32xf32>
    %cst_59 = arith.constant 1.000000e+00 : f32
    %162 = vector.broadcast %cst_59 : f32 to vector<8x32xf32>
    %163 = arith.subf %162, %154 : vector<8x32xf32>
    %164 = arith.mulf %163, %161 : vector<8x32xf32>
    %165 = arith.mulf %154, %94 : vector<8x32xf32>
    %166 = arith.addf %164, %165 : vector<8x32xf32>
    %167 = arith.index_cast %131 : i32 to index
    %c0_60 = arith.constant 0 : index
    %168 = vector.load %arg25[%167, %c0_60] : memref<104x32xf32, #tpu.memory_space<vmem>>, vector<8x32xf32>
    tpu.vector_store %arg25[%167, %c0_60], %166 {strides = array<i32>} : memref<104x32xf32, #tpu.memory_space<vmem>>, vector<8x32xf32>,
    %c1_i32_61 = arith.constant 1 : i32
    %169 = arith.addi %c1_i32_52, %c1_i32_61 : i32
    %c8_i32_62 = arith.constant 8 : i32
    %170 = arith.muli %169, %c8_i32_62 : i32
    %171 = tpu.assume_multiple %170, 8 : i32
    %172 = arith.index_cast %171 : i32 to index
    %c0_63 = arith.constant 0 : index
    %173 = vector.load %arg22[%172, %c0_63] : memref<104x96xf32, #tpu.memory_space<vmem>>, vector<8x96xf32>
    %174 = vector.extract_strided_slice %173 {offsets = [0, 0], sizes = [8, 32], strides = [1, 1]} : vector<8x96xf32> to vector<8x32xf32>
    %175 = vector.extract_strided_slice %133 {offsets = [0, 0], sizes = [8, 32], strides = [1, 1]} : vector<8x96xf32> to vector<8x32xf32>
    %176 = arith.addf %174, %175 : vector<8x32xf32>
    %177 = arith.negf %176 : vector<8x32xf32>
    %178 = math.exp %177 : vector<8x32xf32>
    %cst_64 = arith.constant 1.000000e+00 : f32
    %179 = vector.broadcast %cst_64 : f32 to vector<8x32xf32>
    %180 = arith.addf %179, %178 : vector<8x32xf32>
    %181 = arith.divf %179, %180 : vector<8x32xf32>
    %182 = vector.extract_strided_slice %173 {offsets = [0, 32], sizes = [8, 32], strides = [1, 1]} : vector<8x96xf32> to vector<8x32xf32>
    %183 = vector.extract_strided_slice %133 {offsets = [0, 32], sizes = [8, 32], strides = [1, 1]} : vector<8x96xf32> to vector<8x32xf32>
    %184 = arith.addf %182, %183 : vector<8x32xf32>
    %185 = arith.negf %184 : vector<8x32xf32>
    %186 = math.exp %185 : vector<8x32xf32>
    %cst_65 = arith.constant 1.000000e+00 : f32
    %187 = vector.broadcast %cst_65 : f32 to vector<8x32xf32>
    %188 = arith.addf %187, %186 : vector<8x32xf32>
    %189 = arith.divf %187, %188 : vector<8x32xf32>
    %190 = vector.extract_strided_slice %173 {offsets = [0, 64], sizes = [8, 32], strides = [1, 1]} : vector<8x96xf32> to vector<8x32xf32>
    %191 = vector.extract_strided_slice %133 {offsets = [0, 64], sizes = [8, 32], strides = [1, 1]} : vector<8x96xf32> to vector<8x32xf32>
    %192 = vector.broadcast %4 : vector<1x32xf32> to vector<8x32xf32>
    %193 = arith.addf %191, %192 : vector<8x32xf32>
    %194 = arith.mulf %181, %193 : vector<8x32xf32>
    %195 = arith.addf %190, %194 : vector<8x32xf32>
    %196 = math.tanh %195 : vector<8x32xf32>
    %cst_66 = arith.constant 1.000000e+00 : f32
    %197 = vector.broadcast %cst_66 : f32 to vector<8x32xf32>
    %198 = arith.subf %197, %189 : vector<8x32xf32>
    %199 = arith.mulf %198, %196 : vector<8x32xf32>
    %200 = arith.mulf %189, %129 : vector<8x32xf32>
    %201 = arith.addf %199, %200 : vector<8x32xf32>
    %c2_i32 = arith.constant 2 : i32
    %c8_i32_67 = arith.constant 8 : i32
    %202 = arith.muli %c2_i32, %c8_i32_67 : i32
    %203 = tpu.assume_multiple %202, 8 : i32
    %cst_68 = arith.constant dense<0.000000e+00> : vector<8x192xf32>
    %204 = tpu.matmul %201, %0, %cst_68 {dimension_numbers = #tpu.dot_dimension_numbers<[1], [0], [0], [1], [0, 0, 1, 1], [], []>} : vector<8x32xf32>, vector<32x192xf32>, vector<8x192xf32> -> vector<8x192xf32>
    %205 = vector.extract_strided_slice %204 {offsets = [0, 0], sizes = [8, 96], strides = [1, 1]} : vector<8x192xf32> to vector<8x96xf32>
    %206 = vector.extract_strided_slice %204 {offsets = [0, 96], sizes = [8, 96], strides = [1, 1]} : vector<8x192xf32> to vector<8x96xf32>
    %207 = arith.index_cast %203 : i32 to index
    %c0_69 = arith.constant 0 : index
    %208 = vector.load %arg23[%207, %c0_69] : memref<104x96xf32, #tpu.memory_space<vmem>>, vector<8x96xf32>
    %209 = arith.addf %206, %208 : vector<8x96xf32>
    %cst_70 = arith.constant dense<0.000000e+00> : vector<8x96xf32>
    %210 = tpu.matmul %166, %1, %cst_70 {dimension_numbers = #tpu.dot_dimension_numbers<[1], [0], [0], [1], [0, 0, 1, 1], [], []>} : vector<8x32xf32>, vector<32x96xf32>, vector<8x96xf32> -> vector<8x96xf32>
    %211 = vector.extract_strided_slice %209 {offsets = [0, 0], sizes = [8, 32], strides = [1, 1]} : vector<8x96xf32> to vector<8x32xf32>
    %212 = vector.extract_strided_slice %210 {offsets = [0, 0], sizes = [8, 32], strides = [1, 1]} : vector<8x96xf32> to vector<8x32xf32>
    %213 = arith.addf %211, %212 : vector<8x32xf32>
    %214 = arith.negf %213 : vector<8x32xf32>
    %215 = math.exp %214 : vector<8x32xf32>
    %cst_71 = arith.constant 1.000000e+00 : f32
    %216 = vector.broadcast %cst_71 : f32 to vector<8x32xf32>
    %217 = arith.addf %216, %215 : vector<8x32xf32>
    %218 = arith.divf %216, %217 : vector<8x32xf32>
    %219 = vector.extract_strided_slice %209 {offsets = [0, 32], sizes = [8, 32], strides = [1, 1]} : vector<8x96xf32> to vector<8x32xf32>
    %220 = vector.extract_strided_slice %210 {offsets = [0, 32], sizes = [8, 32], strides = [1, 1]} : vector<8x96xf32> to vector<8x32xf32>
    %221 = arith.addf %219, %220 : vector<8x32xf32>
    %222 = arith.negf %221 : vector<8x32xf32>
    %223 = math.exp %222 : vector<8x32xf32>
    %cst_72 = arith.constant 1.000000e+00 : f32
    %224 = vector.broadcast %cst_72 : f32 to vector<8x32xf32>
    %225 = arith.addf %224, %223 : vector<8x32xf32>
    %226 = arith.divf %224, %225 : vector<8x32xf32>
    %227 = vector.extract_strided_slice %209 {offsets = [0, 64], sizes = [8, 32], strides = [1, 1]} : vector<8x96xf32> to vector<8x32xf32>
    %228 = vector.extract_strided_slice %210 {offsets = [0, 64], sizes = [8, 32], strides = [1, 1]} : vector<8x96xf32> to vector<8x32xf32>
    %229 = vector.broadcast %6 : vector<1x32xf32> to vector<8x32xf32>
    %230 = arith.addf %228, %229 : vector<8x32xf32>
    %231 = arith.mulf %218, %230 : vector<8x32xf32>
    %232 = arith.addf %227, %231 : vector<8x32xf32>
    %233 = math.tanh %232 : vector<8x32xf32>
    %cst_73 = arith.constant 1.000000e+00 : f32
    %234 = vector.broadcast %cst_73 : f32 to vector<8x32xf32>
    %235 = arith.subf %234, %226 : vector<8x32xf32>
    %236 = arith.mulf %235, %233 : vector<8x32xf32>
    %237 = arith.mulf %226, %166 : vector<8x32xf32>
    %238 = arith.addf %236, %237 : vector<8x32xf32>
    %239 = arith.index_cast %203 : i32 to index
    %c0_74 = arith.constant 0 : index
    %240 = vector.load %arg25[%239, %c0_74] : memref<104x32xf32, #tpu.memory_space<vmem>>, vector<8x32xf32>
    tpu.vector_store %arg25[%239, %c0_74], %238 {strides = array<i32>} : memref<104x32xf32, #tpu.memory_space<vmem>>, vector<8x32xf32>,
    %c1_i32_75 = arith.constant 1 : i32
    %241 = arith.addi %c2_i32, %c1_i32_75 : i32
    %c8_i32_76 = arith.constant 8 : i32
    %242 = arith.muli %241, %c8_i32_76 : i32
    %243 = tpu.assume_multiple %242, 8 : i32
    %244 = arith.index_cast %243 : i32 to index
    %c0_77 = arith.constant 0 : index
    %245 = vector.load %arg22[%244, %c0_77] : memref<104x96xf32, #tpu.memory_space<vmem>>, vector<8x96xf32>
    %246 = vector.extract_strided_slice %245 {offsets = [0, 0], sizes = [8, 32], strides = [1, 1]} : vector<8x96xf32> to vector<8x32xf32>
    %247 = vector.extract_strided_slice %205 {offsets = [0, 0], sizes = [8, 32], strides = [1, 1]} : vector<8x96xf32> to vector<8x32xf32>
    %248 = arith.addf %246, %247 : vector<8x32xf32>
    %249 = arith.negf %248 : vector<8x32xf32>
    %250 = math.exp %249 : vector<8x32xf32>
    %cst_78 = arith.constant 1.000000e+00 : f32
    %251 = vector.broadcast %cst_78 : f32 to vector<8x32xf32>
    %252 = arith.addf %251, %250 : vector<8x32xf32>
    %253 = arith.divf %251, %252 : vector<8x32xf32>
    %254 = vector.extract_strided_slice %245 {offsets = [0, 32], sizes = [8, 32], strides = [1, 1]} : vector<8x96xf32> to vector<8x32xf32>
    %255 = vector.extract_strided_slice %205 {offsets = [0, 32], sizes = [8, 32], strides = [1, 1]} : vector<8x96xf32> to vector<8x32xf32>
    %256 = arith.addf %254, %255 : vector<8x32xf32>
    %257 = arith.negf %256 : vector<8x32xf32>
    %258 = math.exp %257 : vector<8x32xf32>
    %cst_79 = arith.constant 1.000000e+00 : f32
    %259 = vector.broadcast %cst_79 : f32 to vector<8x32xf32>
    %260 = arith.addf %259, %258 : vector<8x32xf32>
    %261 = arith.divf %259, %260 : vector<8x32xf32>
    %262 = vector.extract_strided_slice %245 {offsets = [0, 64], sizes = [8, 32], strides = [1, 1]} : vector<8x96xf32> to vector<8x32xf32>
    %263 = vector.extract_strided_slice %205 {offsets = [0, 64], sizes = [8, 32], strides = [1, 1]} : vector<8x96xf32> to vector<8x32xf32>
    %264 = vector.broadcast %4 : vector<1x32xf32> to vector<8x32xf32>
    %265 = arith.addf %263, %264 : vector<8x32xf32>
    %266 = arith.mulf %253, %265 : vector<8x32xf32>
    %267 = arith.addf %262, %266 : vector<8x32xf32>
    %268 = math.tanh %267 : vector<8x32xf32>
    %cst_80 = arith.constant 1.000000e+00 : f32
    %269 = vector.broadcast %cst_80 : f32 to vector<8x32xf32>
    %270 = arith.subf %269, %261 : vector<8x32xf32>
    %271 = arith.mulf %270, %268 : vector<8x32xf32>
    %272 = arith.mulf %261, %201 : vector<8x32xf32>
    %273 = arith.addf %271, %272 : vector<8x32xf32>
    %c3_i32 = arith.constant 3 : i32
    %c8_i32_81 = arith.constant 8 : i32
    %274 = arith.muli %c3_i32, %c8_i32_81 : i32
    %275 = tpu.assume_multiple %274, 8 : i32
    %cst_82 = arith.constant dense<0.000000e+00> : vector<8x192xf32>
    %276 = tpu.matmul %273, %0, %cst_82 {dimension_numbers = #tpu.dot_dimension_numbers<[1], [0], [0], [1], [0, 0, 1, 1], [], []>} : vector<8x32xf32>, vector<32x192xf32>, vector<8x192xf32> -> vector<8x192xf32>
    %277 = vector.extract_strided_slice %276 {offsets = [0, 0], sizes = [8, 96], strides = [1, 1]} : vector<8x192xf32> to vector<8x96xf32>
    %278 = vector.extract_strided_slice %276 {offsets = [0, 96], sizes = [8, 96], strides = [1, 1]} : vector<8x192xf32> to vector<8x96xf32>
    %279 = arith.index_cast %275 : i32 to index
    %c0_83 = arith.constant 0 : index
    %280 = vector.load %arg23[%279, %c0_83] : memref<104x96xf32, #tpu.memory_space<vmem>>, vector<8x96xf32>
    %281 = arith.addf %278, %280 : vector<8x96xf32>
    %cst_84 = arith.constant dense<0.000000e+00> : vector<8x96xf32>
    %282 = tpu.matmul %238, %1, %cst_84 {dimension_numbers = #tpu.dot_dimension_numbers<[1], [0], [0], [1], [0, 0, 1, 1], [], []>} : vector<8x32xf32>, vector<32x96xf32>, vector<8x96xf32> -> vector<8x96xf32>
    %283 = vector.extract_strided_slice %281 {offsets = [0, 0], sizes = [8, 32], strides = [1, 1]} : vector<8x96xf32> to vector<8x32xf32>
    %284 = vector.extract_strided_slice %282 {offsets = [0, 0], sizes = [8, 32], strides = [1, 1]} : vector<8x96xf32> to vector<8x32xf32>
    %285 = arith.addf %283, %284 : vector<8x32xf32>
    %286 = arith.negf %285 : vector<8x32xf32>
    %287 = math.exp %286 : vector<8x32xf32>
    %cst_85 = arith.constant 1.000000e+00 : f32
    %288 = vector.broadcast %cst_85 : f32 to vector<8x32xf32>
    %289 = arith.addf %288, %287 : vector<8x32xf32>
    %290 = arith.divf %288, %289 : vector<8x32xf32>
    %291 = vector.extract_strided_slice %281 {offsets = [0, 32], sizes = [8, 32], strides = [1, 1]} : vector<8x96xf32> to vector<8x32xf32>
    %292 = vector.extract_strided_slice %282 {offsets = [0, 32], sizes = [8, 32], strides = [1, 1]} : vector<8x96xf32> to vector<8x32xf32>
    %293 = arith.addf %291, %292 : vector<8x32xf32>
    %294 = arith.negf %293 : vector<8x32xf32>
    %295 = math.exp %294 : vector<8x32xf32>
    %cst_86 = arith.constant 1.000000e+00 : f32
    %296 = vector.broadcast %cst_86 : f32 to vector<8x32xf32>
    %297 = arith.addf %296, %295 : vector<8x32xf32>
    %298 = arith.divf %296, %297 : vector<8x32xf32>
    %299 = vector.extract_strided_slice %281 {offsets = [0, 64], sizes = [8, 32], strides = [1, 1]} : vector<8x96xf32> to vector<8x32xf32>
    %300 = vector.extract_strided_slice %282 {offsets = [0, 64], sizes = [8, 32], strides = [1, 1]} : vector<8x96xf32> to vector<8x32xf32>
    %301 = vector.broadcast %6 : vector<1x32xf32> to vector<8x32xf32>
    %302 = arith.addf %300, %301 : vector<8x32xf32>
    %303 = arith.mulf %290, %302 : vector<8x32xf32>
    %304 = arith.addf %299, %303 : vector<8x32xf32>
    %305 = math.tanh %304 : vector<8x32xf32>
    %cst_87 = arith.constant 1.000000e+00 : f32
    %306 = vector.broadcast %cst_87 : f32 to vector<8x32xf32>
    %307 = arith.subf %306, %298 : vector<8x32xf32>
    %308 = arith.mulf %307, %305 : vector<8x32xf32>
    %309 = arith.mulf %298, %238 : vector<8x32xf32>
    %310 = arith.addf %308, %309 : vector<8x32xf32>
    %311 = arith.index_cast %275 : i32 to index
    %c0_88 = arith.constant 0 : index
    %312 = vector.load %arg25[%311, %c0_88] : memref<104x32xf32, #tpu.memory_space<vmem>>, vector<8x32xf32>
    tpu.vector_store %arg25[%311, %c0_88], %310 {strides = array<i32>} : memref<104x32xf32, #tpu.memory_space<vmem>>, vector<8x32xf32>,
    %c1_i32_89 = arith.constant 1 : i32
    %313 = arith.addi %c3_i32, %c1_i32_89 : i32
    %c8_i32_90 = arith.constant 8 : i32
    %314 = arith.muli %313, %c8_i32_90 : i32
    %315 = tpu.assume_multiple %314, 8 : i32
    %316 = arith.index_cast %315 : i32 to index
    %c0_91 = arith.constant 0 : index
    %317 = vector.load %arg22[%316, %c0_91] : memref<104x96xf32, #tpu.memory_space<vmem>>, vector<8x96xf32>
    %318 = vector.extract_strided_slice %317 {offsets = [0, 0], sizes = [8, 32], strides = [1, 1]} : vector<8x96xf32> to vector<8x32xf32>
    %319 = vector.extract_strided_slice %277 {offsets = [0, 0], sizes = [8, 32], strides = [1, 1]} : vector<8x96xf32> to vector<8x32xf32>
    %320 = arith.addf %318, %319 : vector<8x32xf32>
    %321 = arith.negf %320 : vector<8x32xf32>
    %322 = math.exp %321 : vector<8x32xf32>
    %cst_92 = arith.constant 1.000000e+00 : f32
    %323 = vector.broadcast %cst_92 : f32 to vector<8x32xf32>
    %324 = arith.addf %323, %322 : vector<8x32xf32>
    %325 = arith.divf %323, %324 : vector<8x32xf32>
    %326 = vector.extract_strided_slice %317 {offsets = [0, 32], sizes = [8, 32], strides = [1, 1]} : vector<8x96xf32> to vector<8x32xf32>
    %327 = vector.extract_strided_slice %277 {offsets = [0, 32], sizes = [8, 32], strides = [1, 1]} : vector<8x96xf32> to vector<8x32xf32>
    %328 = arith.addf %326, %327 : vector<8x32xf32>
    %329 = arith.negf %328 : vector<8x32xf32>
    %330 = math.exp %329 : vector<8x32xf32>
    %cst_93 = arith.constant 1.000000e+00 : f32
    %331 = vector.broadcast %cst_93 : f32 to vector<8x32xf32>
    %332 = arith.addf %331, %330 : vector<8x32xf32>
    %333 = arith.divf %331, %332 : vector<8x32xf32>
    %334 = vector.extract_strided_slice %317 {offsets = [0, 64], sizes = [8, 32], strides = [1, 1]} : vector<8x96xf32> to vector<8x32xf32>
    %335 = vector.extract_strided_slice %277 {offsets = [0, 64], sizes = [8, 32], strides = [1, 1]} : vector<8x96xf32> to vector<8x32xf32>
    %336 = vector.broadcast %4 : vector<1x32xf32> to vector<8x32xf32>
    %337 = arith.addf %335, %336 : vector<8x32xf32>
    %338 = arith.mulf %325, %337 : vector<8x32xf32>
    %339 = arith.addf %334, %338 : vector<8x32xf32>
    %340 = math.tanh %339 : vector<8x32xf32>
    %cst_94 = arith.constant 1.000000e+00 : f32
    %341 = vector.broadcast %cst_94 : f32 to vector<8x32xf32>
    %342 = arith.subf %341, %333 : vector<8x32xf32>
    %343 = arith.mulf %342, %340 : vector<8x32xf32>
    %344 = arith.mulf %333, %273 : vector<8x32xf32>
    %345 = arith.addf %343, %344 : vector<8x32xf32>
    %c4_i32 = arith.constant 4 : i32
    %c8_i32_95 = arith.constant 8 : i32
    %346 = arith.muli %c4_i32, %c8_i32_95 : i32
    %347 = tpu.assume_multiple %346, 8 : i32
    %cst_96 = arith.constant dense<0.000000e+00> : vector<8x192xf32>
    %348 = tpu.matmul %345, %0, %cst_96 {dimension_numbers = #tpu.dot_dimension_numbers<[1], [0], [0], [1], [0, 0, 1, 1], [], []>} : vector<8x32xf32>, vector<32x192xf32>, vector<8x192xf32> -> vector<8x192xf32>
    %349 = vector.extract_strided_slice %348 {offsets = [0, 0], sizes = [8, 96], strides = [1, 1]} : vector<8x192xf32> to vector<8x96xf32>
    %350 = vector.extract_strided_slice %348 {offsets = [0, 96], sizes = [8, 96], strides = [1, 1]} : vector<8x192xf32> to vector<8x96xf32>
    %351 = arith.index_cast %347 : i32 to index
    %c0_97 = arith.constant 0 : index
    %352 = vector.load %arg23[%351, %c0_97] : memref<104x96xf32, #tpu.memory_space<vmem>>, vector<8x96xf32>
    %353 = arith.addf %350, %352 : vector<8x96xf32>
    %cst_98 = arith.constant dense<0.000000e+00> : vector<8x96xf32>
    %354 = tpu.matmul %310, %1, %cst_98 {dimension_numbers = #tpu.dot_dimension_numbers<[1], [0], [0], [1], [0, 0, 1, 1], [], []>} : vector<8x32xf32>, vector<32x96xf32>, vector<8x96xf32> -> vector<8x96xf32>
    %355 = vector.extract_strided_slice %353 {offsets = [0, 0], sizes = [8, 32], strides = [1, 1]} : vector<8x96xf32> to vector<8x32xf32>
    %356 = vector.extract_strided_slice %354 {offsets = [0, 0], sizes = [8, 32], strides = [1, 1]} : vector<8x96xf32> to vector<8x32xf32>
    %357 = arith.addf %355, %356 : vector<8x32xf32>
    %358 = arith.negf %357 : vector<8x32xf32>
    %359 = math.exp %358 : vector<8x32xf32>
    %cst_99 = arith.constant 1.000000e+00 : f32
    %360 = vector.broadcast %cst_99 : f32 to vector<8x32xf32>
    %361 = arith.addf %360, %359 : vector<8x32xf32>
    %362 = arith.divf %360, %361 : vector<8x32xf32>
    %363 = vector.extract_strided_slice %353 {offsets = [0, 32], sizes = [8, 32], strides = [1, 1]} : vector<8x96xf32> to vector<8x32xf32>
    %364 = vector.extract_strided_slice %354 {offsets = [0, 32], sizes = [8, 32], strides = [1, 1]} : vector<8x96xf32> to vector<8x32xf32>
    %365 = arith.addf %363, %364 : vector<8x32xf32>
    %366 = arith.negf %365 : vector<8x32xf32>
    %367 = math.exp %366 : vector<8x32xf32>
    %cst_100 = arith.constant 1.000000e+00 : f32
    %368 = vector.broadcast %cst_100 : f32 to vector<8x32xf32>
    %369 = arith.addf %368, %367 : vector<8x32xf32>
    %370 = arith.divf %368, %369 : vector<8x32xf32>
    %371 = vector.extract_strided_slice %353 {offsets = [0, 64], sizes = [8, 32], strides = [1, 1]} : vector<8x96xf32> to vector<8x32xf32>
    %372 = vector.extract_strided_slice %354 {offsets = [0, 64], sizes = [8, 32], strides = [1, 1]} : vector<8x96xf32> to vector<8x32xf32>
    %373 = vector.broadcast %6 : vector<1x32xf32> to vector<8x32xf32>
    %374 = arith.addf %372, %373 : vector<8x32xf32>
    %375 = arith.mulf %362, %374 : vector<8x32xf32>
    %376 = arith.addf %371, %375 : vector<8x32xf32>
    %377 = math.tanh %376 : vector<8x32xf32>
    %cst_101 = arith.constant 1.000000e+00 : f32
    %378 = vector.broadcast %cst_101 : f32 to vector<8x32xf32>
    %379 = arith.subf %378, %370 : vector<8x32xf32>
    %380 = arith.mulf %379, %377 : vector<8x32xf32>
    %381 = arith.mulf %370, %310 : vector<8x32xf32>
    %382 = arith.addf %380, %381 : vector<8x32xf32>
    %383 = arith.index_cast %347 : i32 to index
    %c0_102 = arith.constant 0 : index
    %384 = vector.load %arg25[%383, %c0_102] : memref<104x32xf32, #tpu.memory_space<vmem>>, vector<8x32xf32>
    tpu.vector_store %arg25[%383, %c0_102], %382 {strides = array<i32>} : memref<104x32xf32, #tpu.memory_space<vmem>>, vector<8x32xf32>,
    %c1_i32_103 = arith.constant 1 : i32
    %385 = arith.addi %c4_i32, %c1_i32_103 : i32
    %c8_i32_104 = arith.constant 8 : i32
    %386 = arith.muli %385, %c8_i32_104 : i32
    %387 = tpu.assume_multiple %386, 8 : i32
    %388 = arith.index_cast %387 : i32 to index
    %c0_105 = arith.constant 0 : index
    %389 = vector.load %arg22[%388, %c0_105] : memref<104x96xf32, #tpu.memory_space<vmem>>, vector<8x96xf32>
    %390 = vector.extract_strided_slice %389 {offsets = [0, 0], sizes = [8, 32], strides = [1, 1]} : vector<8x96xf32> to vector<8x32xf32>
    %391 = vector.extract_strided_slice %349 {offsets = [0, 0], sizes = [8, 32], strides = [1, 1]} : vector<8x96xf32> to vector<8x32xf32>
    %392 = arith.addf %390, %391 : vector<8x32xf32>
    %393 = arith.negf %392 : vector<8x32xf32>
    %394 = math.exp %393 : vector<8x32xf32>
    %cst_106 = arith.constant 1.000000e+00 : f32
    %395 = vector.broadcast %cst_106 : f32 to vector<8x32xf32>
    %396 = arith.addf %395, %394 : vector<8x32xf32>
    %397 = arith.divf %395, %396 : vector<8x32xf32>
    %398 = vector.extract_strided_slice %389 {offsets = [0, 32], sizes = [8, 32], strides = [1, 1]} : vector<8x96xf32> to vector<8x32xf32>
    %399 = vector.extract_strided_slice %349 {offsets = [0, 32], sizes = [8, 32], strides = [1, 1]} : vector<8x96xf32> to vector<8x32xf32>
    %400 = arith.addf %398, %399 : vector<8x32xf32>
    %401 = arith.negf %400 : vector<8x32xf32>
    %402 = math.exp %401 : vector<8x32xf32>
    %cst_107 = arith.constant 1.000000e+00 : f32
    %403 = vector.broadcast %cst_107 : f32 to vector<8x32xf32>
    %404 = arith.addf %403, %402 : vector<8x32xf32>
    %405 = arith.divf %403, %404 : vector<8x32xf32>
    %406 = vector.extract_strided_slice %389 {offsets = [0, 64], sizes = [8, 32], strides = [1, 1]} : vector<8x96xf32> to vector<8x32xf32>
    %407 = vector.extract_strided_slice %349 {offsets = [0, 64], sizes = [8, 32], strides = [1, 1]} : vector<8x96xf32> to vector<8x32xf32>
    %408 = vector.broadcast %4 : vector<1x32xf32> to vector<8x32xf32>
    %409 = arith.addf %407, %408 : vector<8x32xf32>
    %410 = arith.mulf %397, %409 : vector<8x32xf32>
    %411 = arith.addf %406, %410 : vector<8x32xf32>
    %412 = math.tanh %411 : vector<8x32xf32>
    %cst_108 = arith.constant 1.000000e+00 : f32
    %413 = vector.broadcast %cst_108 : f32 to vector<8x32xf32>
    %414 = arith.subf %413, %405 : vector<8x32xf32>
    %415 = arith.mulf %414, %412 : vector<8x32xf32>
    %416 = arith.mulf %405, %345 : vector<8x32xf32>
    %417 = arith.addf %415, %416 : vector<8x32xf32>
    %c5_i32 = arith.constant 5 : i32
    %c8_i32_109 = arith.constant 8 : i32
    %418 = arith.muli %c5_i32, %c8_i32_109 : i32
    %419 = tpu.assume_multiple %418, 8 : i32
    %cst_110 = arith.constant dense<0.000000e+00> : vector<8x192xf32>
    %420 = tpu.matmul %417, %0, %cst_110 {dimension_numbers = #tpu.dot_dimension_numbers<[1], [0], [0], [1], [0, 0, 1, 1], [], []>} : vector<8x32xf32>, vector<32x192xf32>, vector<8x192xf32> -> vector<8x192xf32>
    %421 = vector.extract_strided_slice %420 {offsets = [0, 0], sizes = [8, 96], strides = [1, 1]} : vector<8x192xf32> to vector<8x96xf32>
    %422 = vector.extract_strided_slice %420 {offsets = [0, 96], sizes = [8, 96], strides = [1, 1]} : vector<8x192xf32> to vector<8x96xf32>
    %423 = arith.index_cast %419 : i32 to index
    %c0_111 = arith.constant 0 : index
    %424 = vector.load %arg23[%423, %c0_111] : memref<104x96xf32, #tpu.memory_space<vmem>>, vector<8x96xf32>
    %425 = arith.addf %422, %424 : vector<8x96xf32>
    %cst_112 = arith.constant dense<0.000000e+00> : vector<8x96xf32>
    %426 = tpu.matmul %382, %1, %cst_112 {dimension_numbers = #tpu.dot_dimension_numbers<[1], [0], [0], [1], [0, 0, 1, 1], [], []>} : vector<8x32xf32>, vector<32x96xf32>, vector<8x96xf32> -> vector<8x96xf32>
    %427 = vector.extract_strided_slice %425 {offsets = [0, 0], sizes = [8, 32], strides = [1, 1]} : vector<8x96xf32> to vector<8x32xf32>
    %428 = vector.extract_strided_slice %426 {offsets = [0, 0], sizes = [8, 32], strides = [1, 1]} : vector<8x96xf32> to vector<8x32xf32>
    %429 = arith.addf %427, %428 : vector<8x32xf32>
    %430 = arith.negf %429 : vector<8x32xf32>
    %431 = math.exp %430 : vector<8x32xf32>
    %cst_113 = arith.constant 1.000000e+00 : f32
    %432 = vector.broadcast %cst_113 : f32 to vector<8x32xf32>
    %433 = arith.addf %432, %431 : vector<8x32xf32>
    %434 = arith.divf %432, %433 : vector<8x32xf32>
    %435 = vector.extract_strided_slice %425 {offsets = [0, 32], sizes = [8, 32], strides = [1, 1]} : vector<8x96xf32> to vector<8x32xf32>
    %436 = vector.extract_strided_slice %426 {offsets = [0, 32], sizes = [8, 32], strides = [1, 1]} : vector<8x96xf32> to vector<8x32xf32>
    %437 = arith.addf %435, %436 : vector<8x32xf32>
    %438 = arith.negf %437 : vector<8x32xf32>
    %439 = math.exp %438 : vector<8x32xf32>
    %cst_114 = arith.constant 1.000000e+00 : f32
    %440 = vector.broadcast %cst_114 : f32 to vector<8x32xf32>
    %441 = arith.addf %440, %439 : vector<8x32xf32>
    %442 = arith.divf %440, %441 : vector<8x32xf32>
    %443 = vector.extract_strided_slice %425 {offsets = [0, 64], sizes = [8, 32], strides = [1, 1]} : vector<8x96xf32> to vector<8x32xf32>
    %444 = vector.extract_strided_slice %426 {offsets = [0, 64], sizes = [8, 32], strides = [1, 1]} : vector<8x96xf32> to vector<8x32xf32>
    %445 = vector.broadcast %6 : vector<1x32xf32> to vector<8x32xf32>
    %446 = arith.addf %444, %445 : vector<8x32xf32>
    %447 = arith.mulf %434, %446 : vector<8x32xf32>
    %448 = arith.addf %443, %447 : vector<8x32xf32>
    %449 = math.tanh %448 : vector<8x32xf32>
    %cst_115 = arith.constant 1.000000e+00 : f32
    %450 = vector.broadcast %cst_115 : f32 to vector<8x32xf32>
    %451 = arith.subf %450, %442 : vector<8x32xf32>
    %452 = arith.mulf %451, %449 : vector<8x32xf32>
    %453 = arith.mulf %442, %382 : vector<8x32xf32>
    %454 = arith.addf %452, %453 : vector<8x32xf32>
    %455 = arith.index_cast %419 : i32 to index
    %c0_116 = arith.constant 0 : index
    %456 = vector.load %arg25[%455, %c0_116] : memref<104x32xf32, #tpu.memory_space<vmem>>, vector<8x32xf32>
    tpu.vector_store %arg25[%455, %c0_116], %454 {strides = array<i32>} : memref<104x32xf32, #tpu.memory_space<vmem>>, vector<8x32xf32>,
    %c1_i32_117 = arith.constant 1 : i32
    %457 = arith.addi %c5_i32, %c1_i32_117 : i32
    %c8_i32_118 = arith.constant 8 : i32
    %458 = arith.muli %457, %c8_i32_118 : i32
    %459 = tpu.assume_multiple %458, 8 : i32
    %460 = arith.index_cast %459 : i32 to index
    %c0_119 = arith.constant 0 : index
    %461 = vector.load %arg22[%460, %c0_119] : memref<104x96xf32, #tpu.memory_space<vmem>>, vector<8x96xf32>
    %462 = vector.extract_strided_slice %461 {offsets = [0, 0], sizes = [8, 32], strides = [1, 1]} : vector<8x96xf32> to vector<8x32xf32>
    %463 = vector.extract_strided_slice %421 {offsets = [0, 0], sizes = [8, 32], strides = [1, 1]} : vector<8x96xf32> to vector<8x32xf32>
    %464 = arith.addf %462, %463 : vector<8x32xf32>
    %465 = arith.negf %464 : vector<8x32xf32>
    %466 = math.exp %465 : vector<8x32xf32>
    %cst_120 = arith.constant 1.000000e+00 : f32
    %467 = vector.broadcast %cst_120 : f32 to vector<8x32xf32>
    %468 = arith.addf %467, %466 : vector<8x32xf32>
    %469 = arith.divf %467, %468 : vector<8x32xf32>
    %470 = vector.extract_strided_slice %461 {offsets = [0, 32], sizes = [8, 32], strides = [1, 1]} : vector<8x96xf32> to vector<8x32xf32>
    %471 = vector.extract_strided_slice %421 {offsets = [0, 32], sizes = [8, 32], strides = [1, 1]} : vector<8x96xf32> to vector<8x32xf32>
    %472 = arith.addf %470, %471 : vector<8x32xf32>
    %473 = arith.negf %472 : vector<8x32xf32>
    %474 = math.exp %473 : vector<8x32xf32>
    %cst_121 = arith.constant 1.000000e+00 : f32
    %475 = vector.broadcast %cst_121 : f32 to vector<8x32xf32>
    %476 = arith.addf %475, %474 : vector<8x32xf32>
    %477 = arith.divf %475, %476 : vector<8x32xf32>
    %478 = vector.extract_strided_slice %461 {offsets = [0, 64], sizes = [8, 32], strides = [1, 1]} : vector<8x96xf32> to vector<8x32xf32>
    %479 = vector.extract_strided_slice %421 {offsets = [0, 64], sizes = [8, 32], strides = [1, 1]} : vector<8x96xf32> to vector<8x32xf32>
    %480 = vector.broadcast %4 : vector<1x32xf32> to vector<8x32xf32>
    %481 = arith.addf %479, %480 : vector<8x32xf32>
    %482 = arith.mulf %469, %481 : vector<8x32xf32>
    %483 = arith.addf %478, %482 : vector<8x32xf32>
    %484 = math.tanh %483 : vector<8x32xf32>
    %cst_122 = arith.constant 1.000000e+00 : f32
    %485 = vector.broadcast %cst_122 : f32 to vector<8x32xf32>
    %486 = arith.subf %485, %477 : vector<8x32xf32>
    %487 = arith.mulf %486, %484 : vector<8x32xf32>
    %488 = arith.mulf %477, %417 : vector<8x32xf32>
    %489 = arith.addf %487, %488 : vector<8x32xf32>
    %c6_i32 = arith.constant 6 : i32
    %c8_i32_123 = arith.constant 8 : i32
    %490 = arith.muli %c6_i32, %c8_i32_123 : i32
    %491 = tpu.assume_multiple %490, 8 : i32
    %cst_124 = arith.constant dense<0.000000e+00> : vector<8x192xf32>
    %492 = tpu.matmul %489, %0, %cst_124 {dimension_numbers = #tpu.dot_dimension_numbers<[1], [0], [0], [1], [0, 0, 1, 1], [], []>} : vector<8x32xf32>, vector<32x192xf32>, vector<8x192xf32> -> vector<8x192xf32>
    %493 = vector.extract_strided_slice %492 {offsets = [0, 0], sizes = [8, 96], strides = [1, 1]} : vector<8x192xf32> to vector<8x96xf32>
    %494 = vector.extract_strided_slice %492 {offsets = [0, 96], sizes = [8, 96], strides = [1, 1]} : vector<8x192xf32> to vector<8x96xf32>
    %495 = arith.index_cast %491 : i32 to index
    %c0_125 = arith.constant 0 : index
    %496 = vector.load %arg23[%495, %c0_125] : memref<104x96xf32, #tpu.memory_space<vmem>>, vector<8x96xf32>
    %497 = arith.addf %494, %496 : vector<8x96xf32>
    %cst_126 = arith.constant dense<0.000000e+00> : vector<8x96xf32>
    %498 = tpu.matmul %454, %1, %cst_126 {dimension_numbers = #tpu.dot_dimension_numbers<[1], [0], [0], [1], [0, 0, 1, 1], [], []>} : vector<8x32xf32>, vector<32x96xf32>, vector<8x96xf32> -> vector<8x96xf32>
    %499 = vector.extract_strided_slice %497 {offsets = [0, 0], sizes = [8, 32], strides = [1, 1]} : vector<8x96xf32> to vector<8x32xf32>
    %500 = vector.extract_strided_slice %498 {offsets = [0, 0], sizes = [8, 32], strides = [1, 1]} : vector<8x96xf32> to vector<8x32xf32>
    %501 = arith.addf %499, %500 : vector<8x32xf32>
    %502 = arith.negf %501 : vector<8x32xf32>
    %503 = math.exp %502 : vector<8x32xf32>
    %cst_127 = arith.constant 1.000000e+00 : f32
    %504 = vector.broadcast %cst_127 : f32 to vector<8x32xf32>
    %505 = arith.addf %504, %503 : vector<8x32xf32>
    %506 = arith.divf %504, %505 : vector<8x32xf32>
    %507 = vector.extract_strided_slice %497 {offsets = [0, 32], sizes = [8, 32], strides = [1, 1]} : vector<8x96xf32> to vector<8x32xf32>
    %508 = vector.extract_strided_slice %498 {offsets = [0, 32], sizes = [8, 32], strides = [1, 1]} : vector<8x96xf32> to vector<8x32xf32>
    %509 = arith.addf %507, %508 : vector<8x32xf32>
    %510 = arith.negf %509 : vector<8x32xf32>
    %511 = math.exp %510 : vector<8x32xf32>
    %cst_128 = arith.constant 1.000000e+00 : f32
    %512 = vector.broadcast %cst_128 : f32 to vector<8x32xf32>
    %513 = arith.addf %512, %511 : vector<8x32xf32>
    %514 = arith.divf %512, %513 : vector<8x32xf32>
    %515 = vector.extract_strided_slice %497 {offsets = [0, 64], sizes = [8, 32], strides = [1, 1]} : vector<8x96xf32> to vector<8x32xf32>
    %516 = vector.extract_strided_slice %498 {offsets = [0, 64], sizes = [8, 32], strides = [1, 1]} : vector<8x96xf32> to vector<8x32xf32>
    %517 = vector.broadcast %6 : vector<1x32xf32> to vector<8x32xf32>
    %518 = arith.addf %516, %517 : vector<8x32xf32>
    %519 = arith.mulf %506, %518 : vector<8x32xf32>
    %520 = arith.addf %515, %519 : vector<8x32xf32>
    %521 = math.tanh %520 : vector<8x32xf32>
    %cst_129 = arith.constant 1.000000e+00 : f32
    %522 = vector.broadcast %cst_129 : f32 to vector<8x32xf32>
    %523 = arith.subf %522, %514 : vector<8x32xf32>
    %524 = arith.mulf %523, %521 : vector<8x32xf32>
    %525 = arith.mulf %514, %454 : vector<8x32xf32>
    %526 = arith.addf %524, %525 : vector<8x32xf32>
    %527 = arith.index_cast %491 : i32 to index
    %c0_130 = arith.constant 0 : index
    %528 = vector.load %arg25[%527, %c0_130] : memref<104x32xf32, #tpu.memory_space<vmem>>, vector<8x32xf32>
    tpu.vector_store %arg25[%527, %c0_130], %526 {strides = array<i32>} : memref<104x32xf32, #tpu.memory_space<vmem>>, vector<8x32xf32>,
    %c1_i32_131 = arith.constant 1 : i32
    %529 = arith.addi %c6_i32, %c1_i32_131 : i32
    %c8_i32_132 = arith.constant 8 : i32
    %530 = arith.muli %529, %c8_i32_132 : i32
    %531 = tpu.assume_multiple %530, 8 : i32
    %532 = arith.index_cast %531 : i32 to index
    %c0_133 = arith.constant 0 : index
    %533 = vector.load %arg22[%532, %c0_133] : memref<104x96xf32, #tpu.memory_space<vmem>>, vector<8x96xf32>
    %534 = vector.extract_strided_slice %533 {offsets = [0, 0], sizes = [8, 32], strides = [1, 1]} : vector<8x96xf32> to vector<8x32xf32>
    %535 = vector.extract_strided_slice %493 {offsets = [0, 0], sizes = [8, 32], strides = [1, 1]} : vector<8x96xf32> to vector<8x32xf32>
    %536 = arith.addf %534, %535 : vector<8x32xf32>
    %537 = arith.negf %536 : vector<8x32xf32>
    %538 = math.exp %537 : vector<8x32xf32>
    %cst_134 = arith.constant 1.000000e+00 : f32
    %539 = vector.broadcast %cst_134 : f32 to vector<8x32xf32>
    %540 = arith.addf %539, %538 : vector<8x32xf32>
    %541 = arith.divf %539, %540 : vector<8x32xf32>
    %542 = vector.extract_strided_slice %533 {offsets = [0, 32], sizes = [8, 32], strides = [1, 1]} : vector<8x96xf32> to vector<8x32xf32>
    %543 = vector.extract_strided_slice %493 {offsets = [0, 32], sizes = [8, 32], strides = [1, 1]} : vector<8x96xf32> to vector<8x32xf32>
    %544 = arith.addf %542, %543 : vector<8x32xf32>
    %545 = arith.negf %544 : vector<8x32xf32>
    %546 = math.exp %545 : vector<8x32xf32>
    %cst_135 = arith.constant 1.000000e+00 : f32
    %547 = vector.broadcast %cst_135 : f32 to vector<8x32xf32>
    %548 = arith.addf %547, %546 : vector<8x32xf32>
    %549 = arith.divf %547, %548 : vector<8x32xf32>
    %550 = vector.extract_strided_slice %533 {offsets = [0, 64], sizes = [8, 32], strides = [1, 1]} : vector<8x96xf32> to vector<8x32xf32>
    %551 = vector.extract_strided_slice %493 {offsets = [0, 64], sizes = [8, 32], strides = [1, 1]} : vector<8x96xf32> to vector<8x32xf32>
    %552 = vector.broadcast %4 : vector<1x32xf32> to vector<8x32xf32>
    %553 = arith.addf %551, %552 : vector<8x32xf32>
    %554 = arith.mulf %541, %553 : vector<8x32xf32>
    %555 = arith.addf %550, %554 : vector<8x32xf32>
    %556 = math.tanh %555 : vector<8x32xf32>
    %cst_136 = arith.constant 1.000000e+00 : f32
    %557 = vector.broadcast %cst_136 : f32 to vector<8x32xf32>
    %558 = arith.subf %557, %549 : vector<8x32xf32>
    %559 = arith.mulf %558, %556 : vector<8x32xf32>
    %560 = arith.mulf %549, %489 : vector<8x32xf32>
    %561 = arith.addf %559, %560 : vector<8x32xf32>
    %c7_i32 = arith.constant 7 : i32
    %c8_i32_137 = arith.constant 8 : i32
    %562 = arith.muli %c7_i32, %c8_i32_137 : i32
    %563 = tpu.assume_multiple %562, 8 : i32
    %cst_138 = arith.constant dense<0.000000e+00> : vector<8x192xf32>
    %564 = tpu.matmul %561, %0, %cst_138 {dimension_numbers = #tpu.dot_dimension_numbers<[1], [0], [0], [1], [0, 0, 1, 1], [], []>} : vector<8x32xf32>, vector<32x192xf32>, vector<8x192xf32> -> vector<8x192xf32>
    %565 = vector.extract_strided_slice %564 {offsets = [0, 0], sizes = [8, 96], strides = [1, 1]} : vector<8x192xf32> to vector<8x96xf32>
    %566 = vector.extract_strided_slice %564 {offsets = [0, 96], sizes = [8, 96], strides = [1, 1]} : vector<8x192xf32> to vector<8x96xf32>
    %567 = arith.index_cast %563 : i32 to index
    %c0_139 = arith.constant 0 : index
    %568 = vector.load %arg23[%567, %c0_139] : memref<104x96xf32, #tpu.memory_space<vmem>>, vector<8x96xf32>
    %569 = arith.addf %566, %568 : vector<8x96xf32>
    %cst_140 = arith.constant dense<0.000000e+00> : vector<8x96xf32>
    %570 = tpu.matmul %526, %1, %cst_140 {dimension_numbers = #tpu.dot_dimension_numbers<[1], [0], [0], [1], [0, 0, 1, 1], [], []>} : vector<8x32xf32>, vector<32x96xf32>, vector<8x96xf32> -> vector<8x96xf32>
    %571 = vector.extract_strided_slice %569 {offsets = [0, 0], sizes = [8, 32], strides = [1, 1]} : vector<8x96xf32> to vector<8x32xf32>
    %572 = vector.extract_strided_slice %570 {offsets = [0, 0], sizes = [8, 32], strides = [1, 1]} : vector<8x96xf32> to vector<8x32xf32>
    %573 = arith.addf %571, %572 : vector<8x32xf32>
    %574 = arith.negf %573 : vector<8x32xf32>
    %575 = math.exp %574 : vector<8x32xf32>
    %cst_141 = arith.constant 1.000000e+00 : f32
    %576 = vector.broadcast %cst_141 : f32 to vector<8x32xf32>
    %577 = arith.addf %576, %575 : vector<8x32xf32>
    %578 = arith.divf %576, %577 : vector<8x32xf32>
    %579 = vector.extract_strided_slice %569 {offsets = [0, 32], sizes = [8, 32], strides = [1, 1]} : vector<8x96xf32> to vector<8x32xf32>
    %580 = vector.extract_strided_slice %570 {offsets = [0, 32], sizes = [8, 32], strides = [1, 1]} : vector<8x96xf32> to vector<8x32xf32>
    %581 = arith.addf %579, %580 : vector<8x32xf32>
    %582 = arith.negf %581 : vector<8x32xf32>
    %583 = math.exp %582 : vector<8x32xf32>
    %cst_142 = arith.constant 1.000000e+00 : f32
    %584 = vector.broadcast %cst_142 : f32 to vector<8x32xf32>
    %585 = arith.addf %584, %583 : vector<8x32xf32>
    %586 = arith.divf %584, %585 : vector<8x32xf32>
    %587 = vector.extract_strided_slice %569 {offsets = [0, 64], sizes = [8, 32], strides = [1, 1]} : vector<8x96xf32> to vector<8x32xf32>
    %588 = vector.extract_strided_slice %570 {offsets = [0, 64], sizes = [8, 32], strides = [1, 1]} : vector<8x96xf32> to vector<8x32xf32>
    %589 = vector.broadcast %6 : vector<1x32xf32> to vector<8x32xf32>
    %590 = arith.addf %588, %589 : vector<8x32xf32>
    %591 = arith.mulf %578, %590 : vector<8x32xf32>
    %592 = arith.addf %587, %591 : vector<8x32xf32>
    %593 = math.tanh %592 : vector<8x32xf32>
    %cst_143 = arith.constant 1.000000e+00 : f32
    %594 = vector.broadcast %cst_143 : f32 to vector<8x32xf32>
    %595 = arith.subf %594, %586 : vector<8x32xf32>
    %596 = arith.mulf %595, %593 : vector<8x32xf32>
    %597 = arith.mulf %586, %526 : vector<8x32xf32>
    %598 = arith.addf %596, %597 : vector<8x32xf32>
    %599 = arith.index_cast %563 : i32 to index
    %c0_144 = arith.constant 0 : index
    %600 = vector.load %arg25[%599, %c0_144] : memref<104x32xf32, #tpu.memory_space<vmem>>, vector<8x32xf32>
    tpu.vector_store %arg25[%599, %c0_144], %598 {strides = array<i32>} : memref<104x32xf32, #tpu.memory_space<vmem>>, vector<8x32xf32>,
    %c1_i32_145 = arith.constant 1 : i32
    %601 = arith.addi %c7_i32, %c1_i32_145 : i32
    %c8_i32_146 = arith.constant 8 : i32
    %602 = arith.muli %601, %c8_i32_146 : i32
    %603 = tpu.assume_multiple %602, 8 : i32
    %604 = arith.index_cast %603 : i32 to index
    %c0_147 = arith.constant 0 : index
    %605 = vector.load %arg22[%604, %c0_147] : memref<104x96xf32, #tpu.memory_space<vmem>>, vector<8x96xf32>
    %606 = vector.extract_strided_slice %605 {offsets = [0, 0], sizes = [8, 32], strides = [1, 1]} : vector<8x96xf32> to vector<8x32xf32>
    %607 = vector.extract_strided_slice %565 {offsets = [0, 0], sizes = [8, 32], strides = [1, 1]} : vector<8x96xf32> to vector<8x32xf32>
    %608 = arith.addf %606, %607 : vector<8x32xf32>
    %609 = arith.negf %608 : vector<8x32xf32>
    %610 = math.exp %609 : vector<8x32xf32>
    %cst_148 = arith.constant 1.000000e+00 : f32
    %611 = vector.broadcast %cst_148 : f32 to vector<8x32xf32>
    %612 = arith.addf %611, %610 : vector<8x32xf32>
    %613 = arith.divf %611, %612 : vector<8x32xf32>
    %614 = vector.extract_strided_slice %605 {offsets = [0, 32], sizes = [8, 32], strides = [1, 1]} : vector<8x96xf32> to vector<8x32xf32>
    %615 = vector.extract_strided_slice %565 {offsets = [0, 32], sizes = [8, 32], strides = [1, 1]} : vector<8x96xf32> to vector<8x32xf32>
    %616 = arith.addf %614, %615 : vector<8x32xf32>
    %617 = arith.negf %616 : vector<8x32xf32>
    %618 = math.exp %617 : vector<8x32xf32>
    %cst_149 = arith.constant 1.000000e+00 : f32
    %619 = vector.broadcast %cst_149 : f32 to vector<8x32xf32>
    %620 = arith.addf %619, %618 : vector<8x32xf32>
    %621 = arith.divf %619, %620 : vector<8x32xf32>
    %622 = vector.extract_strided_slice %605 {offsets = [0, 64], sizes = [8, 32], strides = [1, 1]} : vector<8x96xf32> to vector<8x32xf32>
    %623 = vector.extract_strided_slice %565 {offsets = [0, 64], sizes = [8, 32], strides = [1, 1]} : vector<8x96xf32> to vector<8x32xf32>
    %624 = vector.broadcast %4 : vector<1x32xf32> to vector<8x32xf32>
    %625 = arith.addf %623, %624 : vector<8x32xf32>
    %626 = arith.mulf %613, %625 : vector<8x32xf32>
    %627 = arith.addf %622, %626 : vector<8x32xf32>
    %628 = math.tanh %627 : vector<8x32xf32>
    %cst_150 = arith.constant 1.000000e+00 : f32
    %629 = vector.broadcast %cst_150 : f32 to vector<8x32xf32>
    %630 = arith.subf %629, %621 : vector<8x32xf32>
    %631 = arith.mulf %630, %628 : vector<8x32xf32>
    %632 = arith.mulf %621, %561 : vector<8x32xf32>
    %633 = arith.addf %631, %632 : vector<8x32xf32>
    %c8_i32_151 = arith.constant 8 : i32
    %c8_i32_152 = arith.constant 8 : i32
    %634 = arith.muli %c8_i32_151, %c8_i32_152 : i32
    %635 = tpu.assume_multiple %634, 8 : i32
    %cst_153 = arith.constant dense<0.000000e+00> : vector<8x192xf32>
    %636 = tpu.matmul %633, %0, %cst_153 {dimension_numbers = #tpu.dot_dimension_numbers<[1], [0], [0], [1], [0, 0, 1, 1], [], []>} : vector<8x32xf32>, vector<32x192xf32>, vector<8x192xf32> -> vector<8x192xf32>
    %637 = vector.extract_strided_slice %636 {offsets = [0, 0], sizes = [8, 96], strides = [1, 1]} : vector<8x192xf32> to vector<8x96xf32>
    %638 = vector.extract_strided_slice %636 {offsets = [0, 96], sizes = [8, 96], strides = [1, 1]} : vector<8x192xf32> to vector<8x96xf32>
    %639 = arith.index_cast %635 : i32 to index
    %c0_154 = arith.constant 0 : index
    %640 = vector.load %arg23[%639, %c0_154] : memref<104x96xf32, #tpu.memory_space<vmem>>, vector<8x96xf32>
    %641 = arith.addf %638, %640 : vector<8x96xf32>
    %cst_155 = arith.constant dense<0.000000e+00> : vector<8x96xf32>
    %642 = tpu.matmul %598, %1, %cst_155 {dimension_numbers = #tpu.dot_dimension_numbers<[1], [0], [0], [1], [0, 0, 1, 1], [], []>} : vector<8x32xf32>, vector<32x96xf32>, vector<8x96xf32> -> vector<8x96xf32>
    %643 = vector.extract_strided_slice %641 {offsets = [0, 0], sizes = [8, 32], strides = [1, 1]} : vector<8x96xf32> to vector<8x32xf32>
    %644 = vector.extract_strided_slice %642 {offsets = [0, 0], sizes = [8, 32], strides = [1, 1]} : vector<8x96xf32> to vector<8x32xf32>
    %645 = arith.addf %643, %644 : vector<8x32xf32>
    %646 = arith.negf %645 : vector<8x32xf32>
    %647 = math.exp %646 : vector<8x32xf32>
    %cst_156 = arith.constant 1.000000e+00 : f32
    %648 = vector.broadcast %cst_156 : f32 to vector<8x32xf32>
    %649 = arith.addf %648, %647 : vector<8x32xf32>
    %650 = arith.divf %648, %649 : vector<8x32xf32>
    %651 = vector.extract_strided_slice %641 {offsets = [0, 32], sizes = [8, 32], strides = [1, 1]} : vector<8x96xf32> to vector<8x32xf32>
    %652 = vector.extract_strided_slice %642 {offsets = [0, 32], sizes = [8, 32], strides = [1, 1]} : vector<8x96xf32> to vector<8x32xf32>
    %653 = arith.addf %651, %652 : vector<8x32xf32>
    %654 = arith.negf %653 : vector<8x32xf32>
    %655 = math.exp %654 : vector<8x32xf32>
    %cst_157 = arith.constant 1.000000e+00 : f32
    %656 = vector.broadcast %cst_157 : f32 to vector<8x32xf32>
    %657 = arith.addf %656, %655 : vector<8x32xf32>
    %658 = arith.divf %656, %657 : vector<8x32xf32>
    %659 = vector.extract_strided_slice %641 {offsets = [0, 64], sizes = [8, 32], strides = [1, 1]} : vector<8x96xf32> to vector<8x32xf32>
    %660 = vector.extract_strided_slice %642 {offsets = [0, 64], sizes = [8, 32], strides = [1, 1]} : vector<8x96xf32> to vector<8x32xf32>
    %661 = vector.broadcast %6 : vector<1x32xf32> to vector<8x32xf32>
    %662 = arith.addf %660, %661 : vector<8x32xf32>
    %663 = arith.mulf %650, %662 : vector<8x32xf32>
    %664 = arith.addf %659, %663 : vector<8x32xf32>
    %665 = math.tanh %664 : vector<8x32xf32>
    %cst_158 = arith.constant 1.000000e+00 : f32
    %666 = vector.broadcast %cst_158 : f32 to vector<8x32xf32>
    %667 = arith.subf %666, %658 : vector<8x32xf32>
    %668 = arith.mulf %667, %665 : vector<8x32xf32>
    %669 = arith.mulf %658, %598 : vector<8x32xf32>
    %670 = arith.addf %668, %669 : vector<8x32xf32>
    %671 = arith.index_cast %635 : i32 to index
    %c0_159 = arith.constant 0 : index
    %672 = vector.load %arg25[%671, %c0_159] : memref<104x32xf32, #tpu.memory_space<vmem>>, vector<8x32xf32>
    tpu.vector_store %arg25[%671, %c0_159], %670 {strides = array<i32>} : memref<104x32xf32, #tpu.memory_space<vmem>>, vector<8x32xf32>,
    %c1_i32_160 = arith.constant 1 : i32
    %673 = arith.addi %c8_i32_151, %c1_i32_160 : i32
    %c8_i32_161 = arith.constant 8 : i32
    %674 = arith.muli %673, %c8_i32_161 : i32
    %675 = tpu.assume_multiple %674, 8 : i32
    %676 = arith.index_cast %675 : i32 to index
    %c0_162 = arith.constant 0 : index
    %677 = vector.load %arg22[%676, %c0_162] : memref<104x96xf32, #tpu.memory_space<vmem>>, vector<8x96xf32>
    %678 = vector.extract_strided_slice %677 {offsets = [0, 0], sizes = [8, 32], strides = [1, 1]} : vector<8x96xf32> to vector<8x32xf32>
    %679 = vector.extract_strided_slice %637 {offsets = [0, 0], sizes = [8, 32], strides = [1, 1]} : vector<8x96xf32> to vector<8x32xf32>
    %680 = arith.addf %678, %679 : vector<8x32xf32>
    %681 = arith.negf %680 : vector<8x32xf32>
    %682 = math.exp %681 : vector<8x32xf32>
    %cst_163 = arith.constant 1.000000e+00 : f32
    %683 = vector.broadcast %cst_163 : f32 to vector<8x32xf32>
    %684 = arith.addf %683, %682 : vector<8x32xf32>
    %685 = arith.divf %683, %684 : vector<8x32xf32>
    %686 = vector.extract_strided_slice %677 {offsets = [0, 32], sizes = [8, 32], strides = [1, 1]} : vector<8x96xf32> to vector<8x32xf32>
    %687 = vector.extract_strided_slice %637 {offsets = [0, 32], sizes = [8, 32], strides = [1, 1]} : vector<8x96xf32> to vector<8x32xf32>
    %688 = arith.addf %686, %687 : vector<8x32xf32>
    %689 = arith.negf %688 : vector<8x32xf32>
    %690 = math.exp %689 : vector<8x32xf32>
    %cst_164 = arith.constant 1.000000e+00 : f32
    %691 = vector.broadcast %cst_164 : f32 to vector<8x32xf32>
    %692 = arith.addf %691, %690 : vector<8x32xf32>
    %693 = arith.divf %691, %692 : vector<8x32xf32>
    %694 = vector.extract_strided_slice %677 {offsets = [0, 64], sizes = [8, 32], strides = [1, 1]} : vector<8x96xf32> to vector<8x32xf32>
    %695 = vector.extract_strided_slice %637 {offsets = [0, 64], sizes = [8, 32], strides = [1, 1]} : vector<8x96xf32> to vector<8x32xf32>
    %696 = vector.broadcast %4 : vector<1x32xf32> to vector<8x32xf32>
    %697 = arith.addf %695, %696 : vector<8x32xf32>
    %698 = arith.mulf %685, %697 : vector<8x32xf32>
    %699 = arith.addf %694, %698 : vector<8x32xf32>
    %700 = math.tanh %699 : vector<8x32xf32>
    %cst_165 = arith.constant 1.000000e+00 : f32
    %701 = vector.broadcast %cst_165 : f32 to vector<8x32xf32>
    %702 = arith.subf %701, %693 : vector<8x32xf32>
    %703 = arith.mulf %702, %700 : vector<8x32xf32>
    %704 = arith.mulf %693, %633 : vector<8x32xf32>
    %705 = arith.addf %703, %704 : vector<8x32xf32>
    %c9_i32 = arith.constant 9 : i32
    %c8_i32_166 = arith.constant 8 : i32
    %706 = arith.muli %c9_i32, %c8_i32_166 : i32
    %707 = tpu.assume_multiple %706, 8 : i32
    %cst_167 = arith.constant dense<0.000000e+00> : vector<8x192xf32>
    %708 = tpu.matmul %705, %0, %cst_167 {dimension_numbers = #tpu.dot_dimension_numbers<[1], [0], [0], [1], [0, 0, 1, 1], [], []>} : vector<8x32xf32>, vector<32x192xf32>, vector<8x192xf32> -> vector<8x192xf32>
    %709 = vector.extract_strided_slice %708 {offsets = [0, 0], sizes = [8, 96], strides = [1, 1]} : vector<8x192xf32> to vector<8x96xf32>
    %710 = vector.extract_strided_slice %708 {offsets = [0, 96], sizes = [8, 96], strides = [1, 1]} : vector<8x192xf32> to vector<8x96xf32>
    %711 = arith.index_cast %707 : i32 to index
    %c0_168 = arith.constant 0 : index
    %712 = vector.load %arg23[%711, %c0_168] : memref<104x96xf32, #tpu.memory_space<vmem>>, vector<8x96xf32>
    %713 = arith.addf %710, %712 : vector<8x96xf32>
    %cst_169 = arith.constant dense<0.000000e+00> : vector<8x96xf32>
    %714 = tpu.matmul %670, %1, %cst_169 {dimension_numbers = #tpu.dot_dimension_numbers<[1], [0], [0], [1], [0, 0, 1, 1], [], []>} : vector<8x32xf32>, vector<32x96xf32>, vector<8x96xf32> -> vector<8x96xf32>
    %715 = vector.extract_strided_slice %713 {offsets = [0, 0], sizes = [8, 32], strides = [1, 1]} : vector<8x96xf32> to vector<8x32xf32>
    %716 = vector.extract_strided_slice %714 {offsets = [0, 0], sizes = [8, 32], strides = [1, 1]} : vector<8x96xf32> to vector<8x32xf32>
    %717 = arith.addf %715, %716 : vector<8x32xf32>
    %718 = arith.negf %717 : vector<8x32xf32>
    %719 = math.exp %718 : vector<8x32xf32>
    %cst_170 = arith.constant 1.000000e+00 : f32
    %720 = vector.broadcast %cst_170 : f32 to vector<8x32xf32>
    %721 = arith.addf %720, %719 : vector<8x32xf32>
    %722 = arith.divf %720, %721 : vector<8x32xf32>
    %723 = vector.extract_strided_slice %713 {offsets = [0, 32], sizes = [8, 32], strides = [1, 1]} : vector<8x96xf32> to vector<8x32xf32>
    %724 = vector.extract_strided_slice %714 {offsets = [0, 32], sizes = [8, 32], strides = [1, 1]} : vector<8x96xf32> to vector<8x32xf32>
    %725 = arith.addf %723, %724 : vector<8x32xf32>
    %726 = arith.negf %725 : vector<8x32xf32>
    %727 = math.exp %726 : vector<8x32xf32>
    %cst_171 = arith.constant 1.000000e+00 : f32
    %728 = vector.broadcast %cst_171 : f32 to vector<8x32xf32>
    %729 = arith.addf %728, %727 : vector<8x32xf32>
    %730 = arith.divf %728, %729 : vector<8x32xf32>
    %731 = vector.extract_strided_slice %713 {offsets = [0, 64], sizes = [8, 32], strides = [1, 1]} : vector<8x96xf32> to vector<8x32xf32>
    %732 = vector.extract_strided_slice %714 {offsets = [0, 64], sizes = [8, 32], strides = [1, 1]} : vector<8x96xf32> to vector<8x32xf32>
    %733 = vector.broadcast %6 : vector<1x32xf32> to vector<8x32xf32>
    %734 = arith.addf %732, %733 : vector<8x32xf32>
    %735 = arith.mulf %722, %734 : vector<8x32xf32>
    %736 = arith.addf %731, %735 : vector<8x32xf32>
    %737 = math.tanh %736 : vector<8x32xf32>
    %cst_172 = arith.constant 1.000000e+00 : f32
    %738 = vector.broadcast %cst_172 : f32 to vector<8x32xf32>
    %739 = arith.subf %738, %730 : vector<8x32xf32>
    %740 = arith.mulf %739, %737 : vector<8x32xf32>
    %741 = arith.mulf %730, %670 : vector<8x32xf32>
    %742 = arith.addf %740, %741 : vector<8x32xf32>
    %743 = arith.index_cast %707 : i32 to index
    %c0_173 = arith.constant 0 : index
    %744 = vector.load %arg25[%743, %c0_173] : memref<104x32xf32, #tpu.memory_space<vmem>>, vector<8x32xf32>
    tpu.vector_store %arg25[%743, %c0_173], %742 {strides = array<i32>} : memref<104x32xf32, #tpu.memory_space<vmem>>, vector<8x32xf32>,
    %c1_i32_174 = arith.constant 1 : i32
    %745 = arith.addi %c9_i32, %c1_i32_174 : i32
    %c8_i32_175 = arith.constant 8 : i32
    %746 = arith.muli %745, %c8_i32_175 : i32
    %747 = tpu.assume_multiple %746, 8 : i32
    %748 = arith.index_cast %747 : i32 to index
    %c0_176 = arith.constant 0 : index
    %749 = vector.load %arg22[%748, %c0_176] : memref<104x96xf32, #tpu.memory_space<vmem>>, vector<8x96xf32>
    %750 = vector.extract_strided_slice %749 {offsets = [0, 0], sizes = [8, 32], strides = [1, 1]} : vector<8x96xf32> to vector<8x32xf32>
    %751 = vector.extract_strided_slice %709 {offsets = [0, 0], sizes = [8, 32], strides = [1, 1]} : vector<8x96xf32> to vector<8x32xf32>
    %752 = arith.addf %750, %751 : vector<8x32xf32>
    %753 = arith.negf %752 : vector<8x32xf32>
    %754 = math.exp %753 : vector<8x32xf32>
    %cst_177 = arith.constant 1.000000e+00 : f32
    %755 = vector.broadcast %cst_177 : f32 to vector<8x32xf32>
    %756 = arith.addf %755, %754 : vector<8x32xf32>
    %757 = arith.divf %755, %756 : vector<8x32xf32>
    %758 = vector.extract_strided_slice %749 {offsets = [0, 32], sizes = [8, 32], strides = [1, 1]} : vector<8x96xf32> to vector<8x32xf32>
    %759 = vector.extract_strided_slice %709 {offsets = [0, 32], sizes = [8, 32], strides = [1, 1]} : vector<8x96xf32> to vector<8x32xf32>
    %760 = arith.addf %758, %759 : vector<8x32xf32>
    %761 = arith.negf %760 : vector<8x32xf32>
    %762 = math.exp %761 : vector<8x32xf32>
    %cst_178 = arith.constant 1.000000e+00 : f32
    %763 = vector.broadcast %cst_178 : f32 to vector<8x32xf32>
    %764 = arith.addf %763, %762 : vector<8x32xf32>
    %765 = arith.divf %763, %764 : vector<8x32xf32>
    %766 = vector.extract_strided_slice %749 {offsets = [0, 64], sizes = [8, 32], strides = [1, 1]} : vector<8x96xf32> to vector<8x32xf32>
    %767 = vector.extract_strided_slice %709 {offsets = [0, 64], sizes = [8, 32], strides = [1, 1]} : vector<8x96xf32> to vector<8x32xf32>
    %768 = vector.broadcast %4 : vector<1x32xf32> to vector<8x32xf32>
    %769 = arith.addf %767, %768 : vector<8x32xf32>
    %770 = arith.mulf %757, %769 : vector<8x32xf32>
    %771 = arith.addf %766, %770 : vector<8x32xf32>
    %772 = math.tanh %771 : vector<8x32xf32>
    %cst_179 = arith.constant 1.000000e+00 : f32
    %773 = vector.broadcast %cst_179 : f32 to vector<8x32xf32>
    %774 = arith.subf %773, %765 : vector<8x32xf32>
    %775 = arith.mulf %774, %772 : vector<8x32xf32>
    %776 = arith.mulf %765, %705 : vector<8x32xf32>
    %777 = arith.addf %775, %776 : vector<8x32xf32>
    %c10_i32 = arith.constant 10 : i32
    %c8_i32_180 = arith.constant 8 : i32
    %778 = arith.muli %c10_i32, %c8_i32_180 : i32
    %779 = tpu.assume_multiple %778, 8 : i32
    %cst_181 = arith.constant dense<0.000000e+00> : vector<8x192xf32>
    %780 = tpu.matmul %777, %0, %cst_181 {dimension_numbers = #tpu.dot_dimension_numbers<[1], [0], [0], [1], [0, 0, 1, 1], [], []>} : vector<8x32xf32>, vector<32x192xf32>, vector<8x192xf32> -> vector<8x192xf32>
    %781 = vector.extract_strided_slice %780 {offsets = [0, 0], sizes = [8, 96], strides = [1, 1]} : vector<8x192xf32> to vector<8x96xf32>
    %782 = vector.extract_strided_slice %780 {offsets = [0, 96], sizes = [8, 96], strides = [1, 1]} : vector<8x192xf32> to vector<8x96xf32>
    %783 = arith.index_cast %779 : i32 to index
    %c0_182 = arith.constant 0 : index
    %784 = vector.load %arg23[%783, %c0_182] : memref<104x96xf32, #tpu.memory_space<vmem>>, vector<8x96xf32>
    %785 = arith.addf %782, %784 : vector<8x96xf32>
    %cst_183 = arith.constant dense<0.000000e+00> : vector<8x96xf32>
    %786 = tpu.matmul %742, %1, %cst_183 {dimension_numbers = #tpu.dot_dimension_numbers<[1], [0], [0], [1], [0, 0, 1, 1], [], []>} : vector<8x32xf32>, vector<32x96xf32>, vector<8x96xf32> -> vector<8x96xf32>
    %787 = vector.extract_strided_slice %785 {offsets = [0, 0], sizes = [8, 32], strides = [1, 1]} : vector<8x96xf32> to vector<8x32xf32>
    %788 = vector.extract_strided_slice %786 {offsets = [0, 0], sizes = [8, 32], strides = [1, 1]} : vector<8x96xf32> to vector<8x32xf32>
    %789 = arith.addf %787, %788 : vector<8x32xf32>
    %790 = arith.negf %789 : vector<8x32xf32>
    %791 = math.exp %790 : vector<8x32xf32>
    %cst_184 = arith.constant 1.000000e+00 : f32
    %792 = vector.broadcast %cst_184 : f32 to vector<8x32xf32>
    %793 = arith.addf %792, %791 : vector<8x32xf32>
    %794 = arith.divf %792, %793 : vector<8x32xf32>
    %795 = vector.extract_strided_slice %785 {offsets = [0, 32], sizes = [8, 32], strides = [1, 1]} : vector<8x96xf32> to vector<8x32xf32>
    %796 = vector.extract_strided_slice %786 {offsets = [0, 32], sizes = [8, 32], strides = [1, 1]} : vector<8x96xf32> to vector<8x32xf32>
    %797 = arith.addf %795, %796 : vector<8x32xf32>
    %798 = arith.negf %797 : vector<8x32xf32>
    %799 = math.exp %798 : vector<8x32xf32>
    %cst_185 = arith.constant 1.000000e+00 : f32
    %800 = vector.broadcast %cst_185 : f32 to vector<8x32xf32>
    %801 = arith.addf %800, %799 : vector<8x32xf32>
    %802 = arith.divf %800, %801 : vector<8x32xf32>
    %803 = vector.extract_strided_slice %785 {offsets = [0, 64], sizes = [8, 32], strides = [1, 1]} : vector<8x96xf32> to vector<8x32xf32>
    %804 = vector.extract_strided_slice %786 {offsets = [0, 64], sizes = [8, 32], strides = [1, 1]} : vector<8x96xf32> to vector<8x32xf32>
    %805 = vector.broadcast %6 : vector<1x32xf32> to vector<8x32xf32>
    %806 = arith.addf %804, %805 : vector<8x32xf32>
    %807 = arith.mulf %794, %806 : vector<8x32xf32>
    %808 = arith.addf %803, %807 : vector<8x32xf32>
    %809 = math.tanh %808 : vector<8x32xf32>
    %cst_186 = arith.constant 1.000000e+00 : f32
    %810 = vector.broadcast %cst_186 : f32 to vector<8x32xf32>
    %811 = arith.subf %810, %802 : vector<8x32xf32>
    %812 = arith.mulf %811, %809 : vector<8x32xf32>
    %813 = arith.mulf %802, %742 : vector<8x32xf32>
    %814 = arith.addf %812, %813 : vector<8x32xf32>
    %815 = arith.index_cast %779 : i32 to index
    %c0_187 = arith.constant 0 : index
    %816 = vector.load %arg25[%815, %c0_187] : memref<104x32xf32, #tpu.memory_space<vmem>>, vector<8x32xf32>
    tpu.vector_store %arg25[%815, %c0_187], %814 {strides = array<i32>} : memref<104x32xf32, #tpu.memory_space<vmem>>, vector<8x32xf32>,
    %c1_i32_188 = arith.constant 1 : i32
    %817 = arith.addi %c10_i32, %c1_i32_188 : i32
    %c8_i32_189 = arith.constant 8 : i32
    %818 = arith.muli %817, %c8_i32_189 : i32
    %819 = tpu.assume_multiple %818, 8 : i32
    %820 = arith.index_cast %819 : i32 to index
    %c0_190 = arith.constant 0 : index
    %821 = vector.load %arg22[%820, %c0_190] : memref<104x96xf32, #tpu.memory_space<vmem>>, vector<8x96xf32>
    %822 = vector.extract_strided_slice %821 {offsets = [0, 0], sizes = [8, 32], strides = [1, 1]} : vector<8x96xf32> to vector<8x32xf32>
    %823 = vector.extract_strided_slice %781 {offsets = [0, 0], sizes = [8, 32], strides = [1, 1]} : vector<8x96xf32> to vector<8x32xf32>
    %824 = arith.addf %822, %823 : vector<8x32xf32>
    %825 = arith.negf %824 : vector<8x32xf32>
    %826 = math.exp %825 : vector<8x32xf32>
    %cst_191 = arith.constant 1.000000e+00 : f32
    %827 = vector.broadcast %cst_191 : f32 to vector<8x32xf32>
    %828 = arith.addf %827, %826 : vector<8x32xf32>
    %829 = arith.divf %827, %828 : vector<8x32xf32>
    %830 = vector.extract_strided_slice %821 {offsets = [0, 32], sizes = [8, 32], strides = [1, 1]} : vector<8x96xf32> to vector<8x32xf32>
    %831 = vector.extract_strided_slice %781 {offsets = [0, 32], sizes = [8, 32], strides = [1, 1]} : vector<8x96xf32> to vector<8x32xf32>
    %832 = arith.addf %830, %831 : vector<8x32xf32>
    %833 = arith.negf %832 : vector<8x32xf32>
    %834 = math.exp %833 : vector<8x32xf32>
    %cst_192 = arith.constant 1.000000e+00 : f32
    %835 = vector.broadcast %cst_192 : f32 to vector<8x32xf32>
    %836 = arith.addf %835, %834 : vector<8x32xf32>
    %837 = arith.divf %835, %836 : vector<8x32xf32>
    %838 = vector.extract_strided_slice %821 {offsets = [0, 64], sizes = [8, 32], strides = [1, 1]} : vector<8x96xf32> to vector<8x32xf32>
    %839 = vector.extract_strided_slice %781 {offsets = [0, 64], sizes = [8, 32], strides = [1, 1]} : vector<8x96xf32> to vector<8x32xf32>
    %840 = vector.broadcast %4 : vector<1x32xf32> to vector<8x32xf32>
    %841 = arith.addf %839, %840 : vector<8x32xf32>
    %842 = arith.mulf %829, %841 : vector<8x32xf32>
    %843 = arith.addf %838, %842 : vector<8x32xf32>
    %844 = math.tanh %843 : vector<8x32xf32>
    %cst_193 = arith.constant 1.000000e+00 : f32
    %845 = vector.broadcast %cst_193 : f32 to vector<8x32xf32>
    %846 = arith.subf %845, %837 : vector<8x32xf32>
    %847 = arith.mulf %846, %844 : vector<8x32xf32>
    %848 = arith.mulf %837, %777 : vector<8x32xf32>
    %849 = arith.addf %847, %848 : vector<8x32xf32>
    %c11_i32 = arith.constant 11 : i32
    %c8_i32_194 = arith.constant 8 : i32
    %850 = arith.muli %c11_i32, %c8_i32_194 : i32
    %851 = tpu.assume_multiple %850, 8 : i32
    %cst_195 = arith.constant dense<0.000000e+00> : vector<8x192xf32>
    %852 = tpu.matmul %849, %0, %cst_195 {dimension_numbers = #tpu.dot_dimension_numbers<[1], [0], [0], [1], [0, 0, 1, 1], [], []>} : vector<8x32xf32>, vector<32x192xf32>, vector<8x192xf32> -> vector<8x192xf32>
    %853 = vector.extract_strided_slice %852 {offsets = [0, 0], sizes = [8, 96], strides = [1, 1]} : vector<8x192xf32> to vector<8x96xf32>
    %854 = vector.extract_strided_slice %852 {offsets = [0, 96], sizes = [8, 96], strides = [1, 1]} : vector<8x192xf32> to vector<8x96xf32>
    %855 = arith.index_cast %851 : i32 to index
    %c0_196 = arith.constant 0 : index
    %856 = vector.load %arg23[%855, %c0_196] : memref<104x96xf32, #tpu.memory_space<vmem>>, vector<8x96xf32>
    %857 = arith.addf %854, %856 : vector<8x96xf32>
    %cst_197 = arith.constant dense<0.000000e+00> : vector<8x96xf32>
    %858 = tpu.matmul %814, %1, %cst_197 {dimension_numbers = #tpu.dot_dimension_numbers<[1], [0], [0], [1], [0, 0, 1, 1], [], []>} : vector<8x32xf32>, vector<32x96xf32>, vector<8x96xf32> -> vector<8x96xf32>
    %859 = vector.extract_strided_slice %857 {offsets = [0, 0], sizes = [8, 32], strides = [1, 1]} : vector<8x96xf32> to vector<8x32xf32>
    %860 = vector.extract_strided_slice %858 {offsets = [0, 0], sizes = [8, 32], strides = [1, 1]} : vector<8x96xf32> to vector<8x32xf32>
    %861 = arith.addf %859, %860 : vector<8x32xf32>
    %862 = arith.negf %861 : vector<8x32xf32>
    %863 = math.exp %862 : vector<8x32xf32>
    %cst_198 = arith.constant 1.000000e+00 : f32
    %864 = vector.broadcast %cst_198 : f32 to vector<8x32xf32>
    %865 = arith.addf %864, %863 : vector<8x32xf32>
    %866 = arith.divf %864, %865 : vector<8x32xf32>
    %867 = vector.extract_strided_slice %857 {offsets = [0, 32], sizes = [8, 32], strides = [1, 1]} : vector<8x96xf32> to vector<8x32xf32>
    %868 = vector.extract_strided_slice %858 {offsets = [0, 32], sizes = [8, 32], strides = [1, 1]} : vector<8x96xf32> to vector<8x32xf32>
    %869 = arith.addf %867, %868 : vector<8x32xf32>
    %870 = arith.negf %869 : vector<8x32xf32>
    %871 = math.exp %870 : vector<8x32xf32>
    %cst_199 = arith.constant 1.000000e+00 : f32
    %872 = vector.broadcast %cst_199 : f32 to vector<8x32xf32>
    %873 = arith.addf %872, %871 : vector<8x32xf32>
    %874 = arith.divf %872, %873 : vector<8x32xf32>
    %875 = vector.extract_strided_slice %857 {offsets = [0, 64], sizes = [8, 32], strides = [1, 1]} : vector<8x96xf32> to vector<8x32xf32>
    %876 = vector.extract_strided_slice %858 {offsets = [0, 64], sizes = [8, 32], strides = [1, 1]} : vector<8x96xf32> to vector<8x32xf32>
    %877 = vector.broadcast %6 : vector<1x32xf32> to vector<8x32xf32>
    %878 = arith.addf %876, %877 : vector<8x32xf32>
    %879 = arith.mulf %866, %878 : vector<8x32xf32>
    %880 = arith.addf %875, %879 : vector<8x32xf32>
    %881 = math.tanh %880 : vector<8x32xf32>
    %cst_200 = arith.constant 1.000000e+00 : f32
    %882 = vector.broadcast %cst_200 : f32 to vector<8x32xf32>
    %883 = arith.subf %882, %874 : vector<8x32xf32>
    %884 = arith.mulf %883, %881 : vector<8x32xf32>
    %885 = arith.mulf %874, %814 : vector<8x32xf32>
    %886 = arith.addf %884, %885 : vector<8x32xf32>
    %887 = arith.index_cast %851 : i32 to index
    %c0_201 = arith.constant 0 : index
    %888 = vector.load %arg25[%887, %c0_201] : memref<104x32xf32, #tpu.memory_space<vmem>>, vector<8x32xf32>
    tpu.vector_store %arg25[%887, %c0_201], %886 {strides = array<i32>} : memref<104x32xf32, #tpu.memory_space<vmem>>, vector<8x32xf32>,
    %c1_i32_202 = arith.constant 1 : i32
    %889 = arith.addi %c11_i32, %c1_i32_202 : i32
    %c8_i32_203 = arith.constant 8 : i32
    %890 = arith.muli %889, %c8_i32_203 : i32
    %891 = tpu.assume_multiple %890, 8 : i32
    %892 = arith.index_cast %891 : i32 to index
    %c0_204 = arith.constant 0 : index
    %893 = vector.load %arg22[%892, %c0_204] : memref<104x96xf32, #tpu.memory_space<vmem>>, vector<8x96xf32>
    %894 = vector.extract_strided_slice %893 {offsets = [0, 0], sizes = [8, 32], strides = [1, 1]} : vector<8x96xf32> to vector<8x32xf32>
    %895 = vector.extract_strided_slice %853 {offsets = [0, 0], sizes = [8, 32], strides = [1, 1]} : vector<8x96xf32> to vector<8x32xf32>
    %896 = arith.addf %894, %895 : vector<8x32xf32>
    %897 = arith.negf %896 : vector<8x32xf32>
    %898 = math.exp %897 : vector<8x32xf32>
    %cst_205 = arith.constant 1.000000e+00 : f32
    %899 = vector.broadcast %cst_205 : f32 to vector<8x32xf32>
    %900 = arith.addf %899, %898 : vector<8x32xf32>
    %901 = arith.divf %899, %900 : vector<8x32xf32>
    %902 = vector.extract_strided_slice %893 {offsets = [0, 32], sizes = [8, 32], strides = [1, 1]} : vector<8x96xf32> to vector<8x32xf32>
    %903 = vector.extract_strided_slice %853 {offsets = [0, 32], sizes = [8, 32], strides = [1, 1]} : vector<8x96xf32> to vector<8x32xf32>
    %904 = arith.addf %902, %903 : vector<8x32xf32>
    %905 = arith.negf %904 : vector<8x32xf32>
    %906 = math.exp %905 : vector<8x32xf32>
    %cst_206 = arith.constant 1.000000e+00 : f32
    %907 = vector.broadcast %cst_206 : f32 to vector<8x32xf32>
    %908 = arith.addf %907, %906 : vector<8x32xf32>
    %909 = arith.divf %907, %908 : vector<8x32xf32>
    %910 = vector.extract_strided_slice %893 {offsets = [0, 64], sizes = [8, 32], strides = [1, 1]} : vector<8x96xf32> to vector<8x32xf32>
    %911 = vector.extract_strided_slice %853 {offsets = [0, 64], sizes = [8, 32], strides = [1, 1]} : vector<8x96xf32> to vector<8x32xf32>
    %912 = vector.broadcast %4 : vector<1x32xf32> to vector<8x32xf32>
    %913 = arith.addf %911, %912 : vector<8x32xf32>
    %914 = arith.mulf %901, %913 : vector<8x32xf32>
    %915 = arith.addf %910, %914 : vector<8x32xf32>
    %916 = math.tanh %915 : vector<8x32xf32>
    %cst_207 = arith.constant 1.000000e+00 : f32
    %917 = vector.broadcast %cst_207 : f32 to vector<8x32xf32>
    %918 = arith.subf %917, %909 : vector<8x32xf32>
    %919 = arith.mulf %918, %916 : vector<8x32xf32>
    %920 = arith.mulf %909, %849 : vector<8x32xf32>
    %921 = arith.addf %919, %920 : vector<8x32xf32>
    %c12_i32 = arith.constant 12 : i32
    %cst_208 = arith.constant dense<0.000000e+00> : vector<8x192xf32>
    %922 = tpu.matmul %921, %0, %cst_208 {dimension_numbers = #tpu.dot_dimension_numbers<[1], [0], [0], [1], [0, 0, 1, 1], [], []>} : vector<8x32xf32>, vector<32x192xf32>, vector<8x192xf32> -> vector<8x192xf32>
    %923 = vector.extract_strided_slice %922 {offsets = [0, 96], sizes = [8, 96], strides = [1, 1]} : vector<8x192xf32> to vector<8x96xf32>
    %c96 = arith.constant 96 : index
    %c0_209 = arith.constant 0 : index
    %924 = vector.load %arg23[%c96, %c0_209] : memref<104x96xf32, #tpu.memory_space<vmem>>, vector<8x96xf32>
    %925 = arith.addf %923, %924 : vector<8x96xf32>
    %cst_210 = arith.constant dense<0.000000e+00> : vector<8x96xf32>
    %926 = tpu.matmul %886, %1, %cst_210 {dimension_numbers = #tpu.dot_dimension_numbers<[1], [0], [0], [1], [0, 0, 1, 1], [], []>} : vector<8x32xf32>, vector<32x96xf32>, vector<8x96xf32> -> vector<8x96xf32>
    %927 = vector.extract_strided_slice %925 {offsets = [0, 0], sizes = [8, 32], strides = [1, 1]} : vector<8x96xf32> to vector<8x32xf32>
    %928 = vector.extract_strided_slice %926 {offsets = [0, 0], sizes = [8, 32], strides = [1, 1]} : vector<8x96xf32> to vector<8x32xf32>
    %929 = arith.addf %927, %928 : vector<8x32xf32>
    %930 = arith.negf %929 : vector<8x32xf32>
    %931 = math.exp %930 : vector<8x32xf32>
    %cst_211 = arith.constant 1.000000e+00 : f32
    %932 = vector.broadcast %cst_211 : f32 to vector<8x32xf32>
    %933 = arith.addf %932, %931 : vector<8x32xf32>
    %934 = arith.divf %932, %933 : vector<8x32xf32>
    %935 = vector.extract_strided_slice %925 {offsets = [0, 32], sizes = [8, 32], strides = [1, 1]} : vector<8x96xf32> to vector<8x32xf32>
    %936 = vector.extract_strided_slice %926 {offsets = [0, 32], sizes = [8, 32], strides = [1, 1]} : vector<8x96xf32> to vector<8x32xf32>
    %937 = arith.addf %935, %936 : vector<8x32xf32>
    %938 = arith.negf %937 : vector<8x32xf32>
    %939 = math.exp %938 : vector<8x32xf32>
    %cst_212 = arith.constant 1.000000e+00 : f32
    %940 = vector.broadcast %cst_212 : f32 to vector<8x32xf32>
    %941 = arith.addf %940, %939 : vector<8x32xf32>
    %942 = arith.divf %940, %941 : vector<8x32xf32>
    %943 = vector.extract_strided_slice %925 {offsets = [0, 64], sizes = [8, 32], strides = [1, 1]} : vector<8x96xf32> to vector<8x32xf32>
    %944 = vector.extract_strided_slice %926 {offsets = [0, 64], sizes = [8, 32], strides = [1, 1]} : vector<8x96xf32> to vector<8x32xf32>
    %945 = vector.broadcast %6 : vector<1x32xf32> to vector<8x32xf32>
    %946 = arith.addf %944, %945 : vector<8x32xf32>
    %947 = arith.mulf %934, %946 : vector<8x32xf32>
    %948 = arith.addf %943, %947 : vector<8x32xf32>
    %949 = math.tanh %948 : vector<8x32xf32>
    %cst_213 = arith.constant 1.000000e+00 : f32
    %950 = vector.broadcast %cst_213 : f32 to vector<8x32xf32>
    %951 = arith.subf %950, %942 : vector<8x32xf32>
    %952 = arith.mulf %951, %949 : vector<8x32xf32>
    %953 = arith.mulf %942, %886 : vector<8x32xf32>
    %954 = arith.addf %952, %953 : vector<8x32xf32>
    %c96_214 = arith.constant 96 : index
    %c0_215 = arith.constant 0 : index
    %955 = vector.load %arg25[%c96_214, %c0_215] : memref<104x32xf32, #tpu.memory_space<vmem>>, vector<8x32xf32>
    tpu.vector_store %arg25[%c96_214, %c0_215], %954 {strides = array<i32>} : memref<104x32xf32, #tpu.memory_space<vmem>>, vector<8x32xf32>,
    %c0_216 = arith.constant 0 : index
    %c0_217 = arith.constant 0 : index
    %956 = vector.load %arg11[%c0_216, %c0_217] : memref<32x96xf32, #tpu.memory_space<vmem>>, vector<32x96xf32>
    %cst_218 = arith.constant dense<0.000000e+00> : vector<8x96xf32>
    %957 = tpu.matmul %954, %956, %cst_218 {dimension_numbers = #tpu.dot_dimension_numbers<[1], [0], [0], [1], [0, 0, 1, 1], [], []>} : vector<8x32xf32>, vector<32x96xf32>, vector<8x96xf32> -> vector<8x96xf32>
    %958 = vector.broadcast %7 : vector<1x96xf32> to vector<8x96xf32>
    %959 = arith.addf %957, %958 : vector<8x96xf32>
    %c0_219 = arith.constant 0 : index
    %c0_220 = arith.constant 0 : index
    %960 = vector.load %arg2[%c0_219, %c0_220] : memref<32x16xf32, #tpu.memory_space<vmem>>, vector<32x16xf32>
    %c0_221 = arith.constant 0 : index
    %c0_222 = arith.constant 0 : index
    %961 = vector.load %arg12[%c0_221, %c0_222] : memref<16x96xf32, #tpu.memory_space<vmem>>, vector<16x96xf32>
    %cst_223 = arith.constant dense<0.000000e+00> : vector<32x96xf32>
    %962 = tpu.matmul %960, %961, %cst_223 {dimension_numbers = #tpu.dot_dimension_numbers<[1], [0], [0], [1], [0, 0, 1, 1], [], []>} : vector<32x16xf32>, vector<16x96xf32>, vector<32x96xf32> -> vector<32x96xf32>
    %c0_224 = arith.constant 0 : index
    %c0_225 = arith.constant 0 : index
    %963 = vector.load %arg24[%c0_224, %c0_225] : memref<32x96xf32, #tpu.memory_space<vmem>>, vector<32x96xf32>
    tpu.vector_store %arg24[%c0_224, %c0_225], %962 {strides = array<i32>} : memref<32x96xf32, #tpu.memory_space<vmem>>, vector<32x96xf32>,
    %c0_i32_226 = arith.constant 0 : i32
    %c8_i32_227 = arith.constant 8 : i32
    %964 = arith.muli %c0_i32_226, %c8_i32_227 : i32
    %965 = tpu.assume_multiple %964, 8 : i32
    %966 = arith.index_cast %965 : i32 to index
    %c0_228 = arith.constant 0 : index
    %967 = vector.load %arg24[%966, %c0_228] : memref<32x96xf32, #tpu.memory_space<vmem>>, vector<8x96xf32>
    %968 = arith.addf %967, %959 : vector<8x96xf32>
    %cst_229 = arith.constant dense<0.000000e+00> : vector<8x96xf32>
    %969 = tpu.matmul %954, %2, %cst_229 {dimension_numbers = #tpu.dot_dimension_numbers<[1], [0], [0], [1], [0, 0, 1, 1], [], []>} : vector<8x32xf32>, vector<32x96xf32>, vector<8x96xf32> -> vector<8x96xf32>
    %970 = vector.extract_strided_slice %968 {offsets = [0, 0], sizes = [8, 32], strides = [1, 1]} : vector<8x96xf32> to vector<8x32xf32>
    %971 = vector.extract_strided_slice %969 {offsets = [0, 0], sizes = [8, 32], strides = [1, 1]} : vector<8x96xf32> to vector<8x32xf32>
    %972 = arith.addf %970, %971 : vector<8x32xf32>
    %973 = arith.negf %972 : vector<8x32xf32>
    %974 = math.exp %973 : vector<8x32xf32>
    %cst_230 = arith.constant 1.000000e+00 : f32
    %975 = vector.broadcast %cst_230 : f32 to vector<8x32xf32>
    %976 = arith.addf %975, %974 : vector<8x32xf32>
    %977 = arith.divf %975, %976 : vector<8x32xf32>
    %978 = vector.extract_strided_slice %968 {offsets = [0, 32], sizes = [8, 32], strides = [1, 1]} : vector<8x96xf32> to vector<8x32xf32>
    %979 = vector.extract_strided_slice %969 {offsets = [0, 32], sizes = [8, 32], strides = [1, 1]} : vector<8x96xf32> to vector<8x32xf32>
    %980 = arith.addf %978, %979 : vector<8x32xf32>
    %981 = arith.negf %980 : vector<8x32xf32>
    %982 = math.exp %981 : vector<8x32xf32>
    %cst_231 = arith.constant 1.000000e+00 : f32
    %983 = vector.broadcast %cst_231 : f32 to vector<8x32xf32>
    %984 = arith.addf %983, %982 : vector<8x32xf32>
    %985 = arith.divf %983, %984 : vector<8x32xf32>
    %986 = vector.extract_strided_slice %968 {offsets = [0, 64], sizes = [8, 32], strides = [1, 1]} : vector<8x96xf32> to vector<8x32xf32>
    %987 = vector.extract_strided_slice %969 {offsets = [0, 64], sizes = [8, 32], strides = [1, 1]} : vector<8x96xf32> to vector<8x32xf32>
    %988 = vector.broadcast %8 : vector<1x32xf32> to vector<8x32xf32>
    %989 = arith.addf %987, %988 : vector<8x32xf32>
    %990 = arith.mulf %977, %989 : vector<8x32xf32>
    %991 = arith.addf %986, %990 : vector<8x32xf32>
    %992 = math.tanh %991 : vector<8x32xf32>
    %cst_232 = arith.constant 1.000000e+00 : f32
    %993 = vector.broadcast %cst_232 : f32 to vector<8x32xf32>
    %994 = arith.subf %993, %985 : vector<8x32xf32>
    %995 = arith.mulf %994, %992 : vector<8x32xf32>
    %996 = arith.mulf %985, %954 : vector<8x32xf32>
    %997 = arith.addf %995, %996 : vector<8x32xf32>
    %998 = arith.index_cast %965 : i32 to index
    %c0_233 = arith.constant 0 : index
    %999 = vector.load %arg26[%998, %c0_233] : memref<32x32xf32, #tpu.memory_space<vmem>>, vector<8x32xf32>
    tpu.vector_store %arg26[%998, %c0_233], %997 {strides = array<i32>} : memref<32x32xf32, #tpu.memory_space<vmem>>, vector<8x32xf32>,
    %c1_i32_234 = arith.constant 1 : i32
    %c8_i32_235 = arith.constant 8 : i32
    %1000 = arith.muli %c1_i32_234, %c8_i32_235 : i32
    %1001 = tpu.assume_multiple %1000, 8 : i32
    %1002 = arith.index_cast %1001 : i32 to index
    %c0_236 = arith.constant 0 : index
    %1003 = vector.load %arg24[%1002, %c0_236] : memref<32x96xf32, #tpu.memory_space<vmem>>, vector<8x96xf32>
    %1004 = arith.addf %1003, %959 : vector<8x96xf32>
    %cst_237 = arith.constant dense<0.000000e+00> : vector<8x96xf32>
    %1005 = tpu.matmul %997, %2, %cst_237 {dimension_numbers = #tpu.dot_dimension_numbers<[1], [0], [0], [1], [0, 0, 1, 1], [], []>} : vector<8x32xf32>, vector<32x96xf32>, vector<8x96xf32> -> vector<8x96xf32>
    %1006 = vector.extract_strided_slice %1004 {offsets = [0, 0], sizes = [8, 32], strides = [1, 1]} : vector<8x96xf32> to vector<8x32xf32>
    %1007 = vector.extract_strided_slice %1005 {offsets = [0, 0], sizes = [8, 32], strides = [1, 1]} : vector<8x96xf32> to vector<8x32xf32>
    %1008 = arith.addf %1006, %1007 : vector<8x32xf32>
    %1009 = arith.negf %1008 : vector<8x32xf32>
    %1010 = math.exp %1009 : vector<8x32xf32>
    %cst_238 = arith.constant 1.000000e+00 : f32
    %1011 = vector.broadcast %cst_238 : f32 to vector<8x32xf32>
    %1012 = arith.addf %1011, %1010 : vector<8x32xf32>
    %1013 = arith.divf %1011, %1012 : vector<8x32xf32>
    %1014 = vector.extract_strided_slice %1004 {offsets = [0, 32], sizes = [8, 32], strides = [1, 1]} : vector<8x96xf32> to vector<8x32xf32>
    %1015 = vector.extract_strided_slice %1005 {offsets = [0, 32], sizes = [8, 32], strides = [1, 1]} : vector<8x96xf32> to vector<8x32xf32>
    %1016 = arith.addf %1014, %1015 : vector<8x32xf32>
    %1017 = arith.negf %1016 : vector<8x32xf32>
    %1018 = math.exp %1017 : vector<8x32xf32>
    %cst_239 = arith.constant 1.000000e+00 : f32
    %1019 = vector.broadcast %cst_239 : f32 to vector<8x32xf32>
    %1020 = arith.addf %1019, %1018 : vector<8x32xf32>
    %1021 = arith.divf %1019, %1020 : vector<8x32xf32>
    %1022 = vector.extract_strided_slice %1004 {offsets = [0, 64], sizes = [8, 32], strides = [1, 1]} : vector<8x96xf32> to vector<8x32xf32>
    %1023 = vector.extract_strided_slice %1005 {offsets = [0, 64], sizes = [8, 32], strides = [1, 1]} : vector<8x96xf32> to vector<8x32xf32>
    %1024 = vector.broadcast %8 : vector<1x32xf32> to vector<8x32xf32>
    %1025 = arith.addf %1023, %1024 : vector<8x32xf32>
    %1026 = arith.mulf %1013, %1025 : vector<8x32xf32>
    %1027 = arith.addf %1022, %1026 : vector<8x32xf32>
    %1028 = math.tanh %1027 : vector<8x32xf32>
    %cst_240 = arith.constant 1.000000e+00 : f32
    %1029 = vector.broadcast %cst_240 : f32 to vector<8x32xf32>
    %1030 = arith.subf %1029, %1021 : vector<8x32xf32>
    %1031 = arith.mulf %1030, %1028 : vector<8x32xf32>
    %1032 = arith.mulf %1021, %997 : vector<8x32xf32>
    %1033 = arith.addf %1031, %1032 : vector<8x32xf32>
    %1034 = arith.index_cast %1001 : i32 to index
    %c0_241 = arith.constant 0 : index
    %1035 = vector.load %arg26[%1034, %c0_241] : memref<32x32xf32, #tpu.memory_space<vmem>>, vector<8x32xf32>
    tpu.vector_store %arg26[%1034, %c0_241], %1033 {strides = array<i32>} : memref<32x32xf32, #tpu.memory_space<vmem>>, vector<8x32xf32>,
    %c2_i32_242 = arith.constant 2 : i32
    %c8_i32_243 = arith.constant 8 : i32
    %1036 = arith.muli %c2_i32_242, %c8_i32_243 : i32
    %1037 = tpu.assume_multiple %1036, 8 : i32
    %1038 = arith.index_cast %1037 : i32 to index
    %c0_244 = arith.constant 0 : index
    %1039 = vector.load %arg24[%1038, %c0_244] : memref<32x96xf32, #tpu.memory_space<vmem>>, vector<8x96xf32>
    %1040 = arith.addf %1039, %959 : vector<8x96xf32>
    %cst_245 = arith.constant dense<0.000000e+00> : vector<8x96xf32>
    %1041 = tpu.matmul %1033, %2, %cst_245 {dimension_numbers = #tpu.dot_dimension_numbers<[1], [0], [0], [1], [0, 0, 1, 1], [], []>} : vector<8x32xf32>, vector<32x96xf32>, vector<8x96xf32> -> vector<8x96xf32>
    %1042 = vector.extract_strided_slice %1040 {offsets = [0, 0], sizes = [8, 32], strides = [1, 1]} : vector<8x96xf32> to vector<8x32xf32>
    %1043 = vector.extract_strided_slice %1041 {offsets = [0, 0], sizes = [8, 32], strides = [1, 1]} : vector<8x96xf32> to vector<8x32xf32>
    %1044 = arith.addf %1042, %1043 : vector<8x32xf32>
    %1045 = arith.negf %1044 : vector<8x32xf32>
    %1046 = math.exp %1045 : vector<8x32xf32>
    %cst_246 = arith.constant 1.000000e+00 : f32
    %1047 = vector.broadcast %cst_246 : f32 to vector<8x32xf32>
    %1048 = arith.addf %1047, %1046 : vector<8x32xf32>
    %1049 = arith.divf %1047, %1048 : vector<8x32xf32>
    %1050 = vector.extract_strided_slice %1040 {offsets = [0, 32], sizes = [8, 32], strides = [1, 1]} : vector<8x96xf32> to vector<8x32xf32>
    %1051 = vector.extract_strided_slice %1041 {offsets = [0, 32], sizes = [8, 32], strides = [1, 1]} : vector<8x96xf32> to vector<8x32xf32>
    %1052 = arith.addf %1050, %1051 : vector<8x32xf32>
    %1053 = arith.negf %1052 : vector<8x32xf32>
    %1054 = math.exp %1053 : vector<8x32xf32>
    %cst_247 = arith.constant 1.000000e+00 : f32
    %1055 = vector.broadcast %cst_247 : f32 to vector<8x32xf32>
    %1056 = arith.addf %1055, %1054 : vector<8x32xf32>
    %1057 = arith.divf %1055, %1056 : vector<8x32xf32>
    %1058 = vector.extract_strided_slice %1040 {offsets = [0, 64], sizes = [8, 32], strides = [1, 1]} : vector<8x96xf32> to vector<8x32xf32>
    %1059 = vector.extract_strided_slice %1041 {offsets = [0, 64], sizes = [8, 32], strides = [1, 1]} : vector<8x96xf32> to vector<8x32xf32>
    %1060 = vector.broadcast %8 : vector<1x32xf32> to vector<8x32xf32>
    %1061 = arith.addf %1059, %1060 : vector<8x32xf32>
    %1062 = arith.mulf %1049, %1061 : vector<8x32xf32>
    %1063 = arith.addf %1058, %1062 : vector<8x32xf32>
    %1064 = math.tanh %1063 : vector<8x32xf32>
    %cst_248 = arith.constant 1.000000e+00 : f32
    %1065 = vector.broadcast %cst_248 : f32 to vector<8x32xf32>
    %1066 = arith.subf %1065, %1057 : vector<8x32xf32>
    %1067 = arith.mulf %1066, %1064 : vector<8x32xf32>
    %1068 = arith.mulf %1057, %1033 : vector<8x32xf32>
    %1069 = arith.addf %1067, %1068 : vector<8x32xf32>
    %1070 = arith.index_cast %1037 : i32 to index
    %c0_249 = arith.constant 0 : index
    %1071 = vector.load %arg26[%1070, %c0_249] : memref<32x32xf32, #tpu.memory_space<vmem>>, vector<8x32xf32>
    tpu.vector_store %arg26[%1070, %c0_249], %1069 {strides = array<i32>} : memref<32x32xf32, #tpu.memory_space<vmem>>, vector<8x32xf32>,
    %c3_i32_250 = arith.constant 3 : i32
    %c8_i32_251 = arith.constant 8 : i32
    %1072 = arith.muli %c3_i32_250, %c8_i32_251 : i32
    %1073 = tpu.assume_multiple %1072, 8 : i32
    %1074 = arith.index_cast %1073 : i32 to index
    %c0_252 = arith.constant 0 : index
    %1075 = vector.load %arg24[%1074, %c0_252] : memref<32x96xf32, #tpu.memory_space<vmem>>, vector<8x96xf32>
    %1076 = arith.addf %1075, %959 : vector<8x96xf32>
    %cst_253 = arith.constant dense<0.000000e+00> : vector<8x96xf32>
    %1077 = tpu.matmul %1069, %2, %cst_253 {dimension_numbers = #tpu.dot_dimension_numbers<[1], [0], [0], [1], [0, 0, 1, 1], [], []>} : vector<8x32xf32>, vector<32x96xf32>, vector<8x96xf32> -> vector<8x96xf32>
    %1078 = vector.extract_strided_slice %1076 {offsets = [0, 0], sizes = [8, 32], strides = [1, 1]} : vector<8x96xf32> to vector<8x32xf32>
    %1079 = vector.extract_strided_slice %1077 {offsets = [0, 0], sizes = [8, 32], strides = [1, 1]} : vector<8x96xf32> to vector<8x32xf32>
    %1080 = arith.addf %1078, %1079 : vector<8x32xf32>
    %1081 = arith.negf %1080 : vector<8x32xf32>
    %1082 = math.exp %1081 : vector<8x32xf32>
    %cst_254 = arith.constant 1.000000e+00 : f32
    %1083 = vector.broadcast %cst_254 : f32 to vector<8x32xf32>
    %1084 = arith.addf %1083, %1082 : vector<8x32xf32>
    %1085 = arith.divf %1083, %1084 : vector<8x32xf32>
    %1086 = vector.extract_strided_slice %1076 {offsets = [0, 32], sizes = [8, 32], strides = [1, 1]} : vector<8x96xf32> to vector<8x32xf32>
    %1087 = vector.extract_strided_slice %1077 {offsets = [0, 32], sizes = [8, 32], strides = [1, 1]} : vector<8x96xf32> to vector<8x32xf32>
    %1088 = arith.addf %1086, %1087 : vector<8x32xf32>
    %1089 = arith.negf %1088 : vector<8x32xf32>
    %1090 = math.exp %1089 : vector<8x32xf32>
    %cst_255 = arith.constant 1.000000e+00 : f32
    %1091 = vector.broadcast %cst_255 : f32 to vector<8x32xf32>
    %1092 = arith.addf %1091, %1090 : vector<8x32xf32>
    %1093 = arith.divf %1091, %1092 : vector<8x32xf32>
    %1094 = vector.extract_strided_slice %1076 {offsets = [0, 64], sizes = [8, 32], strides = [1, 1]} : vector<8x96xf32> to vector<8x32xf32>
    %1095 = vector.extract_strided_slice %1077 {offsets = [0, 64], sizes = [8, 32], strides = [1, 1]} : vector<8x96xf32> to vector<8x32xf32>
    %1096 = vector.broadcast %8 : vector<1x32xf32> to vector<8x32xf32>
    %1097 = arith.addf %1095, %1096 : vector<8x32xf32>
    %1098 = arith.mulf %1085, %1097 : vector<8x32xf32>
    %1099 = arith.addf %1094, %1098 : vector<8x32xf32>
    %1100 = math.tanh %1099 : vector<8x32xf32>
    %cst_256 = arith.constant 1.000000e+00 : f32
    %1101 = vector.broadcast %cst_256 : f32 to vector<8x32xf32>
    %1102 = arith.subf %1101, %1093 : vector<8x32xf32>
    %1103 = arith.mulf %1102, %1100 : vector<8x32xf32>
    %1104 = arith.mulf %1093, %1069 : vector<8x32xf32>
    %1105 = arith.addf %1103, %1104 : vector<8x32xf32>
    %1106 = arith.index_cast %1073 : i32 to index
    %c0_257 = arith.constant 0 : index
    %1107 = vector.load %arg26[%1106, %c0_257] : memref<32x32xf32, #tpu.memory_space<vmem>>, vector<8x32xf32>
    tpu.vector_store %arg26[%1106, %c0_257], %1105 {strides = array<i32>} : memref<32x32xf32, #tpu.memory_space<vmem>>, vector<8x32xf32>,
    %c4_i32_258 = arith.constant 4 : i32
    %c64_259 = arith.constant 64 : index
    %c0_260 = arith.constant 0 : index
    %1108 = vector.load %arg25[%c64_259, %c0_260] : memref<104x32xf32, #tpu.memory_space<vmem>>, vector<40x32xf32>
    %c0_261 = arith.constant 0 : index
    %c0_262 = arith.constant 0 : index
    %1109 = vector.load %arg16[%c0_261, %c0_262] : memref<32x128xf32, #tpu.memory_space<vmem>>, vector<32x128xf32>
    %cst_263 = arith.constant dense<0.000000e+00> : vector<40x128xf32>
    %1110 = tpu.matmul %1108, %1109, %cst_263 {dimension_numbers = #tpu.dot_dimension_numbers<[1], [0], [0], [1], [0, 0, 1, 1], [], []>} : vector<40x32xf32>, vector<32x128xf32>, vector<40x128xf32> -> vector<40x128xf32>
    %c0_264 = arith.constant 0 : index
    %c0_265 = arith.constant 0 : index
    %1111 = vector.load %arg17[%c0_264, %c0_265] : memref<1x128xf32, #tpu.memory_space<vmem>>, vector<1x128xf32>
    %1112 = vector.broadcast %1111 : vector<1x128xf32> to vector<40x128xf32>
    %1113 = arith.addf %1110, %1112 : vector<40x128xf32>
    %cst_266 = arith.constant dense<0xFF800000> : vector<40xf32>
    %1114 = vector.multi_reduction <maximumf>, %1113, %cst_266 [1] : vector<40x128xf32> to vector<40xf32>
    %1115 = vector.shape_cast %1114 : vector<40xf32> to vector<40x1xf32>
    %1116 = vector.broadcast %1115 : vector<40x1xf32> to vector<40x128xf32>
    %1117 = arith.subf %1113, %1116 : vector<40x128xf32>
    %1118 = math.exp %1117 : vector<40x128xf32>
    %cst_267 = arith.constant dense<0.000000e+00> : vector<40xf32>
    %1119 = vector.multi_reduction <add>, %1118, %cst_267 [1] : vector<40x128xf32> to vector<40xf32>
    %1120 = vector.shape_cast %1119 : vector<40xf32> to vector<40x1xf32>
    %1121 = math.log %1120 : vector<40x1xf32>
    %1122 = vector.broadcast %1121 : vector<40x1xf32> to vector<40x128xf32>
    %1123 = arith.subf %1117, %1122 : vector<40x128xf32>
    %c0_268 = arith.constant 0 : index
    %c0_269 = arith.constant 0 : index
    %1124 = vector.load %arg20[%c0_268, %c0_269] : memref<40x128xf32, #tpu.memory_space<vmem>>, vector<40x128xf32>
    tpu.vector_store %arg20[%c0_268, %c0_269], %1123 {strides = array<i32>} : memref<40x128xf32, #tpu.memory_space<vmem>>, vector<40x128xf32>,
    %c0_270 = arith.constant 0 : index
    %c0_271 = arith.constant 0 : index
    %1125 = vector.load %arg26[%c0_270, %c0_271] : memref<32x32xf32, #tpu.memory_space<vmem>>, vector<32x32xf32>
    %c0_272 = arith.constant 0 : index
    %c0_273 = arith.constant 0 : index
    %1126 = vector.load %arg18[%c0_272, %c0_273] : memref<32x128xf32, #tpu.memory_space<vmem>>, vector<32x128xf32>
    %cst_274 = arith.constant dense<0.000000e+00> : vector<32x128xf32>
    %1127 = tpu.matmul %1125, %1126, %cst_274 {dimension_numbers = #tpu.dot_dimension_numbers<[1], [0], [0], [1], [0, 0, 1, 1], [], []>} : vector<32x32xf32>, vector<32x128xf32>, vector<32x128xf32> -> vector<32x128xf32>
    %c0_275 = arith.constant 0 : index
    %c0_276 = arith.constant 0 : index
    %1128 = vector.load %arg19[%c0_275, %c0_276] : memref<1x128xf32, #tpu.memory_space<vmem>>, vector<1x128xf32>
    %1129 = vector.broadcast %1128 : vector<1x128xf32> to vector<32x128xf32>
    %1130 = arith.addf %1127, %1129 : vector<32x128xf32>
    %cst_277 = arith.constant dense<0xFF800000> : vector<32xf32>
    %1131 = vector.multi_reduction <maximumf>, %1130, %cst_277 [1] : vector<32x128xf32> to vector<32xf32>
    %1132 = vector.shape_cast %1131 : vector<32xf32> to vector<32x1xf32>
    %1133 = vector.broadcast %1132 : vector<32x1xf32> to vector<32x128xf32>
    %1134 = arith.subf %1130, %1133 : vector<32x128xf32>
    %1135 = math.exp %1134 : vector<32x128xf32>
    %cst_278 = arith.constant dense<0.000000e+00> : vector<32xf32>
    %1136 = vector.multi_reduction <add>, %1135, %cst_278 [1] : vector<32x128xf32> to vector<32xf32>
    %1137 = vector.shape_cast %1136 : vector<32xf32> to vector<32x1xf32>
    %1138 = math.log %1137 : vector<32x1xf32>
    %1139 = vector.broadcast %1138 : vector<32x1xf32> to vector<32x128xf32>
    %1140 = arith.subf %1134, %1139 : vector<32x128xf32>
    %c0_279 = arith.constant 0 : index
    %c0_280 = arith.constant 0 : index
    %1141 = vector.load %arg21[%c0_279, %c0_280] : memref<32x128xf32, #tpu.memory_space<vmem>>, vector<32x128xf32>
    tpu.vector_store %arg21[%c0_279, %c0_280], %1140 {strides = array<i32>} : memref<32x128xf32, #tpu.memory_space<vmem>>, vector<32x128xf32>,
    return
  }
}

</mosaic_0001>

<bundles_post_ra>
// kernel: s2vt_forward.1
= control target key start
LH: loop header
LB: loop body
LE: loop exit
PB: predicated region body
PF: predicated region fallthrough
CT: control target
= control target key end

     0   :  { %vm111_vm0 = vcmask 523264   ;;  %vm241_vm1 = vcmask 785408   ;;  %v5362_v28 = vmov 0.0|0.0   ;;  %vm5363_vm2 = vmmov 0   ;;  %s5365_s25 = smov 96   ;;  %s6393_s3 = inlined_call_operand.vmem [shape: f32[64,96], index: 3, kind: input, shape index: {}]   ;;  %s6394_s0 = inlined_call_operand.vmem [shape: f32[64,64], index: 0, kind: input, shape index: {}]   ;;  %s6395_s5 = inlined_call_operand.vmem [shape: f32[1,96], index: 5, kind: input, shape index: {}]   ;;  %s6396_s6 = inlined_call_operand.vmem [shape: f32[1,32], index: 6, kind: input, shape index: {}]   ;;  %s6397_s7 = inlined_call_operand.vmem [shape: f32[16,96], index: 7, kind: input, shape index: {}]   ;;  %s6398_s4 = inlined_call_operand.vmem [shape: f32[32,192], index: 4, kind: input, shape index: {}]   ;;  %s6399_s1 = inlined_call_operand.vmem [shape: f32[40,16], index: 1, kind: input, shape index: {}]   ;;  %s6400_s9 = inlined_call_operand.vmem [shape: f32[1,96], index: 9, kind: input, shape index: {}]   ;;  %s6401_s8 = inlined_call_operand.vmem [shape: f32[32,96], index: 8, kind: input, shape index: {}]   ;;  %s6402_s10 = inlined_call_operand.vmem [shape: f32[1,32], index: 10, kind: input, shape index: {}]   ;;  %s6403_s12 = inlined_call_operand.vmem [shape: f32[16,96], index: 12, kind: input, shape index: {}]   ;;  %s6404_s2 = inlined_call_operand.vmem [shape: f32[32,16], index: 2, kind: input, shape index: {}]   ;;  %s6405_s11 = inlined_call_operand.vmem [shape: f32[32,96], index: 11, kind: input, shape index: {}]   ;;  %s6406_s13 = inlined_call_operand.vmem [shape: f32[32,96], index: 13, kind: input, shape index: {}]   ;;  %s6407_s15 = inlined_call_operand.vmem [shape: f32[1,32], index: 15, kind: input, shape index: {}]   ;;  %s6408_s14 = inlined_call_operand.vmem [shape: f32[1,96], index: 14, kind: input, shape index: {}]   ;;  %s6409_s16 = inlined_call_operand.vmem [shape: f32[32,128], index: 16, kind: input, shape index: {}]   ;;  %s6410_s17 = inlined_call_operand.vmem [shape: f32[1,128], index: 17, kind: input, shape index: {}]   ;;  %s6411_s18 = inlined_call_operand.vmem [shape: f32[32,128], index: 18, kind: input, shape index: {}]   ;;  %s6412_s19 = inlined_call_operand.vmem [shape: f32[1,128], index: 19, kind: input, shape index: {}]   ;;  %s6413_s20 = inlined_call_operand.vmem [shape: f32[40,128], index: 20, kind: output, shape index: {0}]   ;;  %s6414_s21 = inlined_call_operand.vmem [shape: f32[32,128], index: 21, kind: output, shape index: {1}]  }
   0x1   :  { %6419 = sst [smem:[#allocation7_spill]] %s6393_s3  ;;  %4854 = vmatprep.subr.bf16.mxu1 %v5362_v28  ;;  %v5364_v31 = vmov 0.0   ;;  %v269_v38 = vld [vmem:[%s6399_s1] sm:$0xff]  ;;  %vm276_vm3 = vcmask 130048   ;;  %v270_v46 = vld [vmem:[%s6399_s1 + $0x8] sm:$0xff]  ;;  %v271_v48 = vld [vmem:[%s6399_s1 + $0x10] sm:$0xff] }
   0x2   :  { %6420 = sst [smem:[#allocation8_spill]] %s6394_s0  ;;  %s6425_s26 = sld [smem:[#allocation7_spill]]  ;;  %4578 = vmatprep.mubr.msk.f32.mxu1 %vm5363_vm2, %v5364_v31  ;;  %v272_v49 = vld [vmem:[%s6399_s1 + $0x18] sm:$0xff]  ;;  %v273_v50 = vld [vmem:[%s6399_s1 + $0x20] sm:$0xff]  ;;  %vm420_vm4 = vcmask 261120  }
   0x3   :  { %6421 = sst [smem:[#allocation9_spill]] %s6395_s5  ;;  %s6426_s5 = sld [smem:[#allocation8_spill]]  ;;  %v4312_v51 = vld [vmem:[%s6400_s9] ss:$0 sm:$0xff] }
   0x4   :  { %6422 = sst [smem:[#allocation10_spill]] %s6396_s6  ;;  %s5361_s0 = smov 64   ;;  %261 = vst.msk [vmem:[#allocation3] sm:$0xff] %vm241_vm1, %v4312_v51  ;;  %262 = vst.msk [vmem:[#allocation3 + $0x8] sm:$0xff] %vm241_vm1, %v4312_v51 }
   0x5   :  { %6423 = sst [smem:[#allocation11_spill]] %s6397_s7  ;;  %s6428_s23 = sld [smem:[#allocation10_spill]]  ;;  %263 = vst.msk [vmem:[#allocation3 + $0x10] sm:$0xff] %vm241_vm1, %v4312_v51  ;;  %264 = vst.msk [vmem:[#allocation3 + $0x18] sm:$0xff] %vm241_vm1, %v4312_v51 }
   0x6   :  { %6424 = sst [smem:[#allocation12_spill]] %s6398_s4  ;;  %s6427_s4 = sld [smem:[#allocation9_spill]]  ;;  %265 = vst.msk [vmem:[#allocation3 + $0x20] sm:$0xff] %vm241_vm1, %v4312_v51  ;;  %266 = vst.msk [vmem:[#allocation3 + $0x28] sm:$0xff] %vm241_vm1, %v4312_v51 }
   0x7   :  { %s6429_s27 = sld [smem:[#allocation11_spill]]  ;;  %s6430_s7 = sld [smem:[#allocation12_spill]]  ;;  %267 = vst.msk [vmem:[#allocation3 + $0x30] sm:$0xff] %vm241_vm1, %v4312_v51  ;;  %268 = vst.msk [vmem:[#allocation3 + $0x38] sm:$0xff] %vm241_vm1, %v4312_v51 }
   0x8   :  { %v97_v0 = vld [vmem:[%s6425_s26] sm:$0xff]  ;;  %v98_v1 = vld [vmem:[%s6425_s26 + $0x8] sm:$0xff]  ;;  %v99_v2 = vld [vmem:[%s6425_s26 + $0x10] sm:$0xff] }
   0x9   :  { %v4838_v3 = vpack.c.bf16 %v98_v1, %v97_v0  ;;  %v100_v4 = vld [vmem:[%s6425_s26 + $0x18] sm:$0xff]  ;;  %v101_v6 = vld [vmem:[%s6425_s26 + $0x20] sm:$0xff]  ;;  %v102_v7 = vld [vmem:[%s6425_s26 + $0x28] sm:$0xff] }
   0xa   :  { %v4842_v5 = vpack.c.bf16 %v100_v4, %v99_v2  ;;  %v89_v8 = vld [vmem:[%s6426_s5] sm:$0xff]  ;;  %v4846_v9 = vpack.c.bf16 %v102_v7, %v101_v6  ;;  %v103_v10 = vld [vmem:[%s6425_s26 + $0x30] sm:$0xff]  ;;  %v104_v11 = vld [vmem:[%s6425_s26 + $0x38] sm:$0xff] }
   0xb   :  { %4839 = vmatprep.subr.bf16.mxu0 %v4838_v3  ;;  %4562 = vmatprep.mubr.msk.f32.mxu0 %vm111_vm0, %v89_v8  ;;  %v4850_v12 = vpack.c.bf16 %v104_v11, %v103_v10  ;;  %v90_v13 = vld [vmem:[%s6426_s5 + $0x8] sm:$0xff]  ;;  %v5531_v23 = vld [vmem:[%s6428_s23] ss:$0 sm:$0xff]  ;;  %v92_v10 = vld [vmem:[%s6426_s5 + $0x18] sm:$0xff] }
   0xc   :  { %4841 = vmatpush3.bf16.msra.mxu0 %v4838_v3  ;;  %v5512_v14 = vld [vmem:[%s6427_s4] ss:$0 sm:$0xff] }
   0xd   :  { %4843 = vmatprep.subr.bf16.mxu0 %v4842_v5  ;;  %250 = vst.msk [vmem:[#allocation2 + $0x40] sm:$0xff] %vm241_vm1, %v5512_v14  ;;  %251 = vst.msk [vmem:[#allocation2 + $0x48] sm:$0xff] %vm241_vm1, %v5512_v14  ;;  %v274_v29 = vld [vmem:[%s6429_s27] sm:$0xff]  ;;  %v275_v30 = vld [vmem:[%s6429_s27 + $0x8] sm:$0xff] }
   0xe   :  { %252 = vst.msk [vmem:[#allocation2 + $0x50] sm:$0xff] %vm241_vm1, %v5512_v14  ;;  %253 = vst.msk [vmem:[#allocation2 + $0x58] sm:$0xff] %vm241_vm1, %v5512_v14  ;;  %v4855_v32 = vpack.c.bf16 %v275_v30, %v274_v29  ;;  %v68_v33 = vld [vmem:[%s6430_s7 + $0x8] sm:$0xff]  ;;  %v70_v34 = vld [vmem:[%s6430_s7 + $0x18] sm:$0xff] }
   0xf   :  { %254 = vst.msk [vmem:[#allocation2 + $0x60] sm:$0xff] %vm241_vm1, %v5512_v14  ;;  %v67_v35 = vld [vmem:[%s6430_s7] sm:$0xff]  ;;  %v5557_v36 = vpack.c.bf16 %v70_v34, %v68_v33  ;;  %v69_v37 = vld [vmem:[%s6430_s7 + $0x10] sm:$0xff]  ;;  %v72_v40 = vld [vmem:[%s6430_s7 + $0x28] sm:$0xff] }
  0x10   :  { %4845 = vmatpush3.bf16.msra.mxu0 %v4842_v5  ;;  %4856 = vmatpush3.bf16.msra.mxu1 %v4855_v32  ;;  %v5565_v39 = vpack.c.bf16 %v69_v37, %v67_v35  ;;  %v74_v41 = vld [vmem:[%s6430_s7 + $0x38] sm:$0xff]  ;;  %v71_v43 = vld [vmem:[%s6430_s7 + $0x20] sm:$0xff]  ;;  %v73_v44 = vld [vmem:[%s6430_s7 + $0x30] sm:$0xff] }
  0x11   :  { %4847 = vmatprep.subr.bf16.mxu0 %v4846_v9  ;;  %4858 = vmatprep.subr.bf16.mxu1 %v5557_v36  ;;  %v5574_v42 = vpack.c.bf16 %v74_v41, %v72_v40  ;;  %v5589_v47 = vpack.c.bf16 %v73_v44, %v71_v43  ;;  %v93_v11 = vld [vmem:[%s6426_s5 + $0x20] sm:$0xff] }
  0x13   :  { %4579 = vmatmul.mubr.msk.f32.vlgmr.msra.gmra.mrb[0].mxu1 %vm276_vm3, %v269_v38 }
  0x14   :  { %4849 = vmatpush3.bf16.msra.mxu0 %v4846_v9  ;;  %4860 = vmatpush1.bf16.msra.mxu1 %v5565_v39  ;;  %v91_v9 = vld [vmem:[%s6426_s5 + $0x10] sm:$0xff] }
  0x15   :  { %4851 = vmatprep.subr.bf16.mxu0 %v4850_v12  ;;  %4581 = vmatprep.mubr.msk.f32.mxu1 %vm5363_vm2, %v5364_v31 }
  0x16   :  { %4862 = vmatprep.subr.bf16.mxu1 %v5574_v42 }
  0x17   :  { %4582 = vmatmul.mubr.msk.f32.gmra.mrb[2].mxu1 %vm276_vm3, %v270_v46 }
  0x18   :  { %4853 = vmatpush3.bf16.msra.mxu0 %v4850_v12  ;;  %4584 = vmatprep.mubr.msk.f32.mxu1 %vm5363_vm2, %v5364_v31  ;;  %v75_v12 = vld [vmem:[%s6401_s8] sm:$0xff] }
  0x19   :  { %4865 = vmatprep.subr.bf16.mxu0 %v5362_v28  ;;  %4864 = vmatpush1.bf16.msra.mxu1 %v5589_v47 }
  0x1a   :  { %4872 = vmatprep.subr.bf16.mxu1 %v5557_v36 }
  0x1b   :  { %4563 = vmatmul.mubr.msk.f32.vlgmr.msra.gmra.mrb[0].mxu0 %vm111_vm0, %v90_v13  ;;  %4585 = vmatmul.mubr.msk.f32.gmra.mrb[4].mxu1 %vm276_vm3, %v271_v48  ;;  %v76_v13 = vld [vmem:[%s6401_s8 + $0x8] sm:$0xff] }
  0x1c   :  { %4587 = vmatprep.mubr.msk.f32.mxu1 %vm5363_vm2, %v5364_v31  ;;  %4565 = vmatprep.mubr.msk.f32.mxu0 %vm111_vm0, %v91_v9 }
  0x1f   :  { %4588 = vmatmul.mubr.msk.f32.gmra.mrb[6].mxu1 %vm276_vm3, %v272_v49  ;;  %4566 = vmatmul.mubr.msk.f32.gmra.mrb[2].mxu0 %vm111_vm0, %v92_v10 }
  0x20   :  { %4590 = vmatprep.mubr.msk.f32.mxu1 %vm5363_vm2, %v5364_v31  ;;  %4568 = vmatprep.mubr.msk.f32.mxu0 %vm111_vm0, %v93_v11 }
  0x23   :  { %4591 = vmatmul.mubr.msk.f32.gmra.mrb[8].mxu1 %vm276_vm3, %v273_v50 }
  0x24   :  { %487 = vmatprep.mubr.f32.mxu1 %v5364_v31 }
  0xe6   :  { %v358_v57 = vpop.f32.mrb[0].mxu1 }
  0xe7   :  { %v359_v58 = vadd.f32 %v4312_v51, %v358_v57  ;;  %v4580_v59 = vpop.f32.mrb[1].mxu1 }
  0xe9   :  { %382 = vst.msk [vmem:[#allocation3 + $0x40] sm:$0xff] %vm241_vm1, %v359_v58  ;;  %v4323_v58 = vld [vmem:[%s6402_s10] ss:$0 sm:$0xff]  ;;  %s5366_s10 = smov 32  }
  0xea   :  { %v363_v60 = vpop.f32.mrb[2].mxu1 }
  0xeb   :  { %v364_v61 = vadd.f32 %v4312_v51, %v363_v60  ;;  %v4583_v62 = vpop.f32.mrb[3].mxu1 }
  0xed   :  { %383 = vst.msk [vmem:[#allocation3 + $0x48] sm:$0xff] %vm241_vm1, %v364_v61 }
  0xee   :  { %v4564_v15 = vpop.f32.mrb[0].mxu0  ;;  %v368_v63 = vpop.f32.mrb[4].mxu1 }
  0xef   :  { %v208_v16 = vadd.f32 %v4564_v15, %v5512_v14  ;;  %v202_v17 = vpop.f32.mrb[1].mxu0  ;;  %v369_v0 = vadd.f32 %v4312_v51, %v368_v63  ;;  %v4586_v1 = vpop.f32.mrb[5].mxu1  ;;  %v5662_v15 = vpack.c.bf16 %v76_v13, %v75_v12  ;;  %v494_v63 = vld [vmem:[#allocation3] sm:$0xff] }
  0xf0   :  { %v203_v18 = vadd.f32 %v5512_v14, %v202_v17  ;;  %v94_v17 = vld [vmem:[%s6426_s5 + $0x28] sm:$0xff] }
  0xf1   :  { %243 = vst.msk [vmem:[#allocation2 + $0x8] sm:$0xff] %vm241_vm1, %v208_v16  ;;  %384 = vst.msk [vmem:[#allocation3 + $0x50] sm:$0xff] %vm241_vm1, %v369_v0  ;;  %v77_v16 = vld [vmem:[%s6401_s8 + $0x10] sm:$0xff]  ;;  %4867 = vmatpush3.bf16.msra.mxu0 %v5662_v15 }
  0xf2   :  { %242 = vst.msk [vmem:[#allocation2] sm:$0xff] %vm241_vm1, %v203_v18  ;;  %v373_v2 = vpop.f32.mrb[6].mxu1  ;;  %v78_v18 = vld [vmem:[%s6401_s8 + $0x18] sm:$0xff]  ;;  %4868 = vmatprep.subr.bf16.mxu0 %v5362_v28  ;;  %4569 = vmatmul.mubr.msk.f32.gmra.mrb[4].mxu0 %vm111_vm0, %v94_v17  ;;  %v4567_v40 = vpop.f32.mrb[2].mxu0 }
  0xf3   :  { %v374_v3 = vadd.f32 %v4312_v51, %v373_v2  ;;  %v4589_v4 = vpop.f32.mrb[7].mxu1  ;;  %v218_v41 = vadd.f32 %v4567_v40, %v5512_v14  ;;  %v212_v43 = vpop.f32.mrb[3].mxu0 }
  0xf4   :  { %v213_v44 = vadd.f32 %v5512_v14, %v212_v43 }
  0xf5   :  { %385 = vst.msk [vmem:[#allocation3 + $0x58] sm:$0xff] %vm241_vm1, %v374_v3  ;;  %245 = vst.msk [vmem:[#allocation2 + $0x18] sm:$0xff] %vm241_vm1, %v218_v41 }
  0xf6   :  { %v378_v5 = vpop.f32.mrb[8].mxu1  ;;  %244 = vst.msk [vmem:[#allocation2 + $0x10] sm:$0xff] %vm241_vm1, %v213_v44 }
  0xf7   :  { %v379_v6 = vadd.f32 %v4312_v51, %v378_v5  ;;  %v4592_v7 = vpop.f32.mrb[9].mxu1 }
  0xf9   :  { %v387_v19 = vld [vmem:[#allocation2] sm:$0xff]  ;;  %386 = vst.msk [vmem:[#allocation3 + $0x60] sm:$0xff] %vm241_vm1, %v379_v6 }
  0xfa   :  { %v4318_v20 = vmul.f32 -1.442695, %v387_v19 }
  0xfc   :  { %5093 = vpow2.f32 %v4318_v20  ;;  %v5678_v20 = vpack.c.bf16 %v78_v18, %v77_v16 }
  0xfe   :  { %4870 = vmatpush3.bf16.msra.mxu0 %v5678_v20 }
  0xff   :  { %4879 = vmatprep.subr.bf16.mxu0 %v5362_v28 }
 0x106   :  { %v5094_v21 = vpop.eup %5093 }
 0x107   :  { %v392_v22 = vadd.f32 1.0, %v5094_v21 }
 0x109   :  { %5095 = vrcp.f32 %v392_v22  ;;  %v96_v22 = vld [vmem:[%s6426_s5 + $0x38] sm:$0xff] }
 0x113   :  { %v5533_v24 = vpop.eup %5095 }
 0x114   :  { %v402_v25 = vmul.f32 %v5533_v24, %v5531_v23  ;;  %v409_v52 = vsub.f32 1.0, %v5533_v24  ;;  %v415_v55 = vmul.f32 0.0, %v5533_v24 }
 0x116   :  { %404 = vrot.lane.b32.xlu0 %v402_v25, %s5361_s0 }
 0x188   :  { %v405_v26 = vpop.permute.xlu0 %404 }
 0x189   :  { %v407_v27 = vadd.f32 %v405_v26, %v387_v19  ;;  %v95_v19 = vld [vmem:[%s6426_s5 + $0x30] sm:$0xff]  ;;  %v622_v26 = vld [vmem:[#allocation2 + $0x8] sm:$0xff] }
 0x18a   :  { %4571 = vmatprep.mubr.msk.f32.mxu0 %vm111_vm0, %v95_v19 }
 0x18b   :  { %5097 = vtanh.f32 %v407_v27  ;;  %4572 = vmatmul.mubr.msk.f32.gmra.mrb[6].mxu0 %vm111_vm0, %v96_v22 }
 0x18c   :  { %4601 = vmatprep.mubr.msk.f32.mxu0 %vm5363_vm2, %v5364_v31 }
 0x18f   :  { %4602 = vmatmul.mubr.f32.vlgmr.msra.gmra.mrb[8].mxu0 %v5364_v31 }
 0x190   :  { %4881 = vmatpush3.bf16.msra.mxu0 %v5662_v15  ;;  %4612 = vmatprep.mubr.msk.f32.mxu0 %vm5363_vm2, %v5364_v31 }
 0x191   :  { %4882 = vmatprep.subr.bf16.mxu0 %v5362_v28 }
 0x194   :  { %4884 = vmatpush3.bf16.msra.mxu0 %v5678_v20 }
 0x195   :  { %v5098_v45 = vpop.eup %5097  ;;  %4893 = vmatprep.subr.bf16.mxu0 %v5362_v28 }
 0x196   :  { %411 = vrot.lane.b32.xlu0 %v5098_v45, %s5365_s25 }
 0x1c5   :  { %v4570_v45 = vpop.f32.mrb[4].mxu0 }
 0x1c6   :  { %v228_v46 = vadd.f32 %v4570_v45, %v5512_v14  ;;  %v222_v48 = vpop.f32.mrb[5].mxu0 }
 0x1c7   :  { %v223_v49 = vadd.f32 %v5512_v14, %v222_v48 }
 0x1c8   :  { %247 = vst.msk [vmem:[#allocation2 + $0x28] sm:$0xff] %vm241_vm1, %v228_v46 }
 0x1c9   :  { %246 = vst.msk [vmem:[#allocation2 + $0x20] sm:$0xff] %vm241_vm1, %v223_v49 }
 0x208   :  { %v412_v53 = vpop.permute.xlu0 %411 }
 0x209   :  { %v414_v54 = vmul.f32 %v412_v53, %v409_v52 }
 0x20b   :  { %v5628_v56 = vadd.f32 %v415_v55, %v414_v54 }
 0x20d   :  { %418 = vrot.lane.b32.xlu1 %v5628_v56, %s5365_s25 }
 0x211   :  { %630 = vrot.lane.b32.xlu1 %v5531_v23, %s5361_s0 }
 0x25e   :  { %v4573_v50 = vpop.f32.mrb[6].mxu0 }
 0x25f   :  { %v238_v51 = vadd.f32 %v4573_v50, %v5512_v14  ;;  %v232_v52 = vpop.f32.mrb[7].mxu0  ;;  %v730_v50 = vld [vmem:[#allocation3 + $0x8] sm:$0xff] }
 0x260   :  { %v233_v53 = vadd.f32 %v5512_v14, %v232_v52 }
 0x261   :  { %249 = vst.msk [vmem:[#allocation2 + $0x38] sm:$0xff] %vm241_vm1, %v238_v51 }
 0x262   :  { %v570_v54 = vpop.f32.mrb[8].mxu0  ;;  %248 = vst.msk [vmem:[#allocation2 + $0x30] sm:$0xff] %vm241_vm1, %v233_v53 }
 0x263   :  { %v4603_v55 = vpop.f32.mrb[9].mxu0 }
 0x27f   :  { %v419_v8 = vpop.permute.xlu1 %418 }
 0x280   :  { %4320 = vmatmul.mubr.msk.f32.vlgmr.msra.gmra.mrb[10].mxu1 %vm420_vm4, %v419_v8 }
 0x281   :  { %4874 = vmatpush1.bf16.msra.mxu1 %v5565_v39  ;;  %722 = vmatprep.mubr.f32.mxu1 %v5364_v31 }
 0x282   :  { %4876 = vmatprep.subr.bf16.mxu1 %v5574_v42 }
 0x283   :  { %v5681_v21 = vpop.permute.xlu1 %630 }
 0x285   :  { %4878 = vmatpush1.bf16.msra.mxu1 %v5589_v47 }
 0x286   :  { %4886 = vmatprep.subr.bf16.mxu1 %v5557_v36 }
 0x353   :  { %v5688_v23 = vpop.f32.mrb[10].mxu1 }
 0x354   :  { %v5691_v24 = vpop.f32.mrb[11].mxu1  ;;  %v633_v25 = vadd.f32 %v5681_v21, %v5688_v23  ;;  %v623_v27 = vadd.f32 %v622_v26, %v5688_v23 }
 0x356   :  { %635 = vrot.lane.b32.xlu0 %v633_v25, %s5361_s0  ;;  %v4324_v29 = vmul.f32 -1.442695, %v623_v27 }
 0x358   :  { %5099 = vpow2.f32 %v4324_v29 }
 0x362   :  { %v5100_v30 = vpop.eup %5099 }
 0x363   :  { %v627_v32 = vadd.f32 1.0, %v5100_v30 }
 0x365   :  { %5101 = vrcp.f32 %v627_v32 }
 0x36f   :  { %v5102_v33 = vpop.eup %5101 }
 0x370   :  { %v645_v59 = vsub.f32 1.0, %v5102_v33  ;;  %v651_v14 = vmul.f32 %v5102_v33, %v5628_v56 }
 0x3c8   :  { %v636_v34 = vpop.permute.xlu0 %635 }
 0x3c9   :  { %v638_v35 = vmul.f32 %v5102_v33, %v636_v34 }
 0x3cb   :  { %640 = vrot.lane.b32.xlu1 %v638_v35, %s5361_s0  ;;  %v851_v35 = vld [vmem:[#allocation2 + $0x10] sm:$0xff] }
 0x43d   :  { %v641_v37 = vpop.permute.xlu1 %640 }
 0x43e   :  { %v643_v38 = vadd.f32 %v641_v37, %v622_v26 }
 0x440   :  { %5103 = vtanh.f32 %v643_v38 }
 0x44a   :  { %v5104_v57 = vpop.eup %5103 }
 0x44b   :  { %647 = vrot.lane.b32.xlu0 %v5104_v57, %s5365_s25 }
 0x44f   :  { %597 = vrot.lane.b32.xlu0 %v4323_v58, %s5361_s0 }
 0x453   :  { %575 = vrot.lane.b32.xlu0 %v570_v54, %s5365_s25 }
 0x4bd   :  { %v648_v60 = vpop.permute.xlu0 %647 }
 0x4be   :  { %v650_v61 = vmul.f32 %v648_v60, %v645_v59 }
 0x4c0   :  { %v5728_v62 = vadd.f32 %v651_v14, %v650_v61 }
 0x4c1   :  { %v5732_v0 = vpop.permute.xlu0 %597 }
 0x4c2   :  { %654 = vrot.lane.b32.xlu1 %v5728_v62, %s5365_s25  ;;  %v600_v1 = vadd.f32 %v5732_v0, %v570_v54 }
 0x4c5   :  { %v576_v3 = vpop.permute.xlu0 %575 }
 0x4c6   :  { %496 = vrot.lane.b32.xlu1 %v494_v63, %s5365_s25 }
 0x4ca   :  { %602 = vrot.lane.b32.xlu1 %v600_v1, %s5366_s10 }
 0x534   :  { %v655_v2 = vpop.permute.xlu1 %654 }
 0x535   :  { %4325 = vmatmul.mubr.msk.f32.vlgmr.msra.gmra.mrb[12].mxu1 %vm420_vm4, %v655_v2 }
 0x536   :  { %4888 = vmatpush1.bf16.msra.mxu1 %v5565_v39  ;;  %948 = vmatprep.mubr.f32.mxu1 %v5364_v31 }
 0x537   :  { %4890 = vmatprep.subr.bf16.mxu1 %v5574_v42 }
 0x538   :  { %v497_v56 = vpop.permute.xlu1 %496 }
 0x539   :  { %v499_v4 = vadd.f32 %v497_v56, %v5688_v23  ;;  %v500_v12 = vadd.f32 %v497_v56, %v5691_v24 }
 0x53a   :  { %4892 = vmatpush1.bf16.msra.mxu1 %v5589_v47 }
 0x53b   :  { %v578_v5 = vadd.f32 %v576_v3, %v499_v4  ;;  %4900 = vmatprep.subr.bf16.mxu1 %v5557_v36  ;;  %v585_v23 = vadd.f32 %v576_v3, %v500_v12 }
 0x53c   :  { %v603_v9 = vpop.permute.xlu1 %602 }
 0x53d   :  { %v4321_v6 = vmul.f32 -1.442695, %v578_v5  ;;  %v4322_v25 = vmul.f32 -1.442695, %v585_v23 }
 0x53f   :  { %5105 = vpow2.f32 %v4321_v6 }
 0x549   :  { %v5106_v7 = vpop.eup %5105 }
 0x54a   :  { %v582_v8 = vadd.f32 1.0, %v5106_v7 }
 0x54c   :  { %5107 = vrcp.f32 %v582_v8 }
 0x556   :  { %v5108_v10 = vpop.eup %5107 }
 0x557   :  { %v605_v11 = vmul.f32 %v5108_v10, %v603_v9 }
 0x559   :  { %607 = vrot.lane.b32.xlu0 %v605_v11, %s5361_s0 }
 0x5cb   :  { %v608_v13 = vpop.permute.xlu0 %607 }
 0x5cc   :  { %v610_v16 = vadd.f32 %v608_v13, %v500_v12 }
 0x5ce   :  { %5109 = vtanh.f32 %v610_v16 }
 0x5cf   :  { %5111 = vpow2.f32 %v4322_v25 }
 0x5d8   :  { %v5110_v17 = vpop.eup %5109 }
 0x5d9   :  { %614 = vrot.lane.b32.xlu0 %v5110_v17, %s5365_s25  ;;  %v5112_v26 = vpop.eup %5111 }
 0x5da   :  { %v589_v27 = vadd.f32 1.0, %v5112_v26 }
 0x5dc   :  { %5113 = vrcp.f32 %v589_v27 }
 0x5e6   :  { %v5114_v24 = vpop.eup %5113 }
 0x5e7   :  { %v612_v29 = vsub.f32 1.0, %v5114_v24  ;;  %v618_v32 = vmul.f32 0.0, %v5114_v24  ;;  %v1077_v24 = vld [vmem:[#allocation2 + $0x18] sm:$0xff] }
 0x608   :  { %v724_v18 = vpop.f32.mrb[12].mxu1 }
 0x609   :  { %v859_v19 = vadd.f32 %v724_v18, %v5681_v21  ;;  %v5748_v22 = vpop.f32.mrb[13].mxu1  ;;  %v852_v37 = vadd.f32 %v851_v35, %v724_v18 }
 0x60b   :  { %861 = vrot.lane.b32.xlu1 %v859_v19, %s5361_s0  ;;  %v4329_v38 = vmul.f32 -1.442695, %v852_v37 }
 0x60d   :  { %5115 = vpow2.f32 %v4329_v38 }
 0x617   :  { %v5116_v40 = vpop.eup %5115 }
 0x618   :  { %v856_v41 = vadd.f32 1.0, %v5116_v40 }
 0x61a   :  { %5117 = vrcp.f32 %v856_v41 }
 0x624   :  { %v5118_v43 = vpop.eup %5117 }
 0x625   :  { %v871_v54 = vsub.f32 1.0, %v5118_v43  ;;  %v877_v57 = vmul.f32 %v5118_v43, %v5728_v62 }
 0x64b   :  { %v615_v30 = vpop.permute.xlu0 %614 }
 0x64c   :  { %v617_v33 = vmul.f32 %v615_v30, %v612_v29 }
 0x64e   :  { %v5751_v34 = vadd.f32 %v618_v32, %v617_v33 }
 0x650   :  { %4613 = vmatmul.mubr.msk.f32.vlgmr.msra.gmra.mrb[10].mxu0 %vm420_vm4, %v5751_v34 }
 0x651   :  { %4895 = vmatpush3.bf16.msra.mxu0 %v5662_v15  ;;  %4623 = vmatprep.mubr.msk.f32.mxu0 %vm5363_vm2, %v5364_v31 }
 0x652   :  { %4896 = vmatprep.subr.bf16.mxu0 %v5362_v28 }
 0x655   :  { %4898 = vmatpush3.bf16.msra.mxu0 %v5678_v20 }
 0x656   :  { %4907 = vmatprep.subr.bf16.mxu0 %v5362_v28 }
 0x67d   :  { %v862_v44 = vpop.permute.xlu1 %861 }
 0x67e   :  { %v864_v45 = vmul.f32 %v5118_v43, %v862_v44  ;;  %v956_v43 = vld [vmem:[#allocation3 + $0x10] sm:$0xff] }
 0x680   :  { %866 = vrot.lane.b32.xlu1 %v864_v45, %s5361_s0 }
 0x6f2   :  { %v867_v46 = vpop.permute.xlu1 %866 }
 0x6f3   :  { %v869_v48 = vadd.f32 %v867_v46, %v851_v35 }
 0x6f5   :  { %5119 = vtanh.f32 %v869_v48 }
 0x6ff   :  { %v5120_v49 = vpop.eup %5119 }
 0x700   :  { %873 = vrot.lane.b32.xlu0 %v5120_v49, %s5365_s25 }
 0x704   :  { %732 = vrot.lane.b32.xlu0 %v730_v50, %s5365_s25 }
 0x723   :  { %v806_v51 = vpop.f32.mrb[10].mxu0 }
 0x724   :  { %v828_v52 = vadd.f32 %v806_v51, %v5732_v0  ;;  %v4614_v53 = vpop.f32.mrb[11].mxu0 }
 0x726   :  { %830 = vrot.lane.b32.xlu0 %v828_v52, %s5366_s10 }
 0x772   :  { %v874_v55 = vpop.permute.xlu0 %873 }
 0x773   :  { %v876_v58 = vmul.f32 %v874_v55, %v871_v54 }
 0x775   :  { %v5767_v59 = vadd.f32 %v877_v57, %v876_v58 }
 0x776   :  { %v733_v60 = vpop.permute.xlu0 %732 }
 0x777   :  { %880 = vrot.lane.b32.xlu1 %v5767_v59, %s5365_s25  ;;  %v735_v61 = vadd.f32 %v733_v60, %v724_v18  ;;  %v736_v6 = vadd.f32 %v733_v60, %v5748_v22 }
 0x77b   :  { %811 = vrot.lane.b32.xlu1 %v806_v51, %s5365_s25 }
 0x798   :  { %v831_v4 = vpop.permute.xlu0 %830 }
 0x7e9   :  { %v881_v14 = vpop.permute.xlu1 %880 }
 0x7ea   :  { %4330 = vmatmul.mubr.msk.f32.vlgmr.msra.gmra.mrb[14].mxu1 %vm420_vm4, %v881_v14 }
 0x7eb   :  { %4902 = vmatpush1.bf16.msra.mxu1 %v5565_v39  ;;  %1174 = vmatprep.mubr.f32.mxu1 %v5364_v31 }
 0x7ec   :  { %4904 = vmatprep.subr.bf16.mxu1 %v5574_v42 }
 0x7ed   :  { %v812_v62 = vpop.permute.xlu1 %811 }
 0x7ee   :  { %v814_v63 = vadd.f32 %v812_v62, %v735_v61  ;;  %v821_v13 = vadd.f32 %v812_v62, %v736_v6 }
 0x7ef   :  { %4906 = vmatpush1.bf16.msra.mxu1 %v5589_v47 }
 0x7f0   :  { %v4327_v1 = vmul.f32 -1.442695, %v814_v63  ;;  %4914 = vmatprep.subr.bf16.mxu1 %v5557_v36  ;;  %v4328_v16 = vmul.f32 -1.442695, %v821_v13 }
 0x7f2   :  { %5121 = vpow2.f32 %v4327_v1 }
 0x7fc   :  { %v5122_v2 = vpop.eup %5121 }
 0x7fd   :  { %v818_v56 = vadd.f32 1.0, %v5122_v2 }
 0x7ff   :  { %5123 = vrcp.f32 %v818_v56 }
 0x809   :  { %v5124_v3 = vpop.eup %5123 }
 0x80a   :  { %v833_v5 = vmul.f32 %v5124_v3, %v831_v4 }
 0x80c   :  { %835 = vrot.lane.b32.xlu1 %v833_v5, %s5361_s0 }
 0x87e   :  { %v836_v7 = vpop.permute.xlu1 %835 }
 0x87f   :  { %v838_v8 = vadd.f32 %v836_v7, %v736_v6 }
 0x881   :  { %5125 = vtanh.f32 %v838_v8 }
 0x882   :  { %5127 = vpow2.f32 %v4328_v16 }
 0x88b   :  { %v5126_v9 = vpop.eup %5125 }
 0x88c   :  { %842 = vrot.lane.b32.xlu0 %v5126_v9, %s5365_s25  ;;  %v5128_v17 = vpop.eup %5127 }
 0x88d   :  { %v825_v18 = vadd.f32 1.0, %v5128_v17 }
 0x88f   :  { %5129 = vrcp.f32 %v825_v18 }
 0x899   :  { %v5130_v19 = vpop.eup %5129 }
 0x89a   :  { %v840_v22 = vsub.f32 1.0, %v5130_v19  ;;  %v846_v25 = vmul.f32 %v5130_v19, %v5751_v34  ;;  %v1303_v19 = vld [vmem:[#allocation2 + $0x20] sm:$0xff] }
 0x8bd   :  { %v950_v10 = vpop.f32.mrb[14].mxu1 }
 0x8be   :  { %v1085_v11 = vadd.f32 %v950_v10, %v5681_v21  ;;  %v5782_v12 = vpop.f32.mrb[15].mxu1  ;;  %v1078_v29 = vadd.f32 %v1077_v24, %v950_v10 }
 0x8c0   :  { %1087 = vrot.lane.b32.xlu1 %v1085_v11, %s5361_s0  ;;  %v4334_v30 = vmul.f32 -1.442695, %v1078_v29 }
 0x8c2   :  { %5131 = vpow2.f32 %v4334_v30 }
 0x8cc   :  { %v5132_v32 = vpop.eup %5131 }
 0x8cd   :  { %v1082_v33 = vadd.f32 1.0, %v5132_v32 }
 0x8cf   :  { %5133 = vrcp.f32 %v1082_v33 }
 0x8d9   :  { %v5134_v34 = vpop.eup %5133 }
 0x8da   :  { %v1097_v48 = vsub.f32 1.0, %v5134_v34  ;;  %v1103_v50 = vmul.f32 %v5134_v34, %v5767_v59 }
 0x8fe   :  { %v843_v23 = vpop.permute.xlu0 %842 }
 0x8ff   :  { %v845_v26 = vmul.f32 %v843_v23, %v840_v22 }
 0x901   :  { %v5786_v27 = vadd.f32 %v846_v25, %v845_v26 }
 0x903   :  { %4624 = vmatmul.mubr.msk.f32.vlgmr.msra.gmra.mrb[12].mxu0 %vm420_vm4, %v5786_v27 }
 0x904   :  { %4909 = vmatpush3.bf16.msra.mxu0 %v5662_v15  ;;  %4634 = vmatprep.mubr.msk.f32.mxu0 %vm5363_vm2, %v5364_v31 }
 0x905   :  { %4910 = vmatprep.subr.bf16.mxu0 %v5362_v28 }
 0x908   :  { %4912 = vmatpush3.bf16.msra.mxu0 %v5678_v20 }
 0x909   :  { %4921 = vmatprep.subr.bf16.mxu0 %v5362_v28 }
 0x932   :  { %v1088_v35 = vpop.permute.xlu1 %1087 }
 0x933   :  { %v1090_v37 = vmul.f32 %v5134_v34, %v1088_v35  ;;  %v1182_v34 = vld [vmem:[#allocation3 + $0x18] sm:$0xff] }
 0x935   :  { %1092 = vrot.lane.b32.xlu0 %v1090_v37, %s5361_s0 }
 0x9a7   :  { %v1093_v38 = vpop.permute.xlu0 %1092 }
 0x9a8   :  { %v1095_v40 = vadd.f32 %v1093_v38, %v1077_v24 }
 0x9aa   :  { %5135 = vtanh.f32 %v1095_v40 }
 0x9b4   :  { %v5136_v41 = vpop.eup %5135 }
 0x9b5   :  { %1099 = vrot.lane.b32.xlu1 %v5136_v41, %s5365_s25 }
 0x9b9   :  { %958 = vrot.lane.b32.xlu1 %v956_v43, %s5365_s25 }
 0x9d6   :  { %v1032_v44 = vpop.f32.mrb[12].mxu0 }
 0x9d7   :  { %v1054_v45 = vadd.f32 %v1032_v44, %v5732_v0  ;;  %v4625_v46 = vpop.f32.mrb[13].mxu0 }
 0x9d9   :  { %1056 = vrot.lane.b32.xlu1 %v1054_v45, %s5366_s10 }
 0xa27   :  { %v1100_v49 = vpop.permute.xlu1 %1099 }
 0xa28   :  { %v1102_v51 = vmul.f32 %v1100_v49, %v1097_v48 }
 0xa2a   :  { %v5802_v52 = vadd.f32 %v1103_v50, %v1102_v51 }
 0xa2b   :  { %v959_v53 = vpop.permute.xlu1 %958 }
 0xa2c   :  { %1106 = vrot.lane.b32.xlu0 %v5802_v52, %s5365_s25  ;;  %v961_v55 = vadd.f32 %v959_v53, %v950_v10  ;;  %v962_v1 = vadd.f32 %v959_v53, %v5782_v12 }
 0xa30   :  { %1037 = vrot.lane.b32.xlu0 %v1032_v44, %s5365_s25 }
 0xa4b   :  { %v1057_v62 = vpop.permute.xlu1 %1056 }
 0xa9e   :  { %v1107_v54 = vpop.permute.xlu0 %1106 }
 0xa9f   :  { %4335 = vmatmul.mubr.msk.f32.vlgmr.msra.gmra.mrb[16].mxu1 %vm420_vm4, %v1107_v54 }
 0xaa0   :  { %4916 = vmatpush1.bf16.msra.mxu1 %v5565_v39  ;;  %1400 = vmatprep.mubr.f32.mxu1 %v5364_v31 }
 0xaa1   :  { %4918 = vmatprep.subr.bf16.mxu1 %v5574_v42 }
 0xaa2   :  { %v1038_v57 = vpop.permute.xlu0 %1037 }
 0xaa3   :  { %v1040_v58 = vadd.f32 %v1038_v57, %v961_v55  ;;  %v1047_v7 = vadd.f32 %v1038_v57, %v962_v1 }
 0xaa4   :  { %4920 = vmatpush1.bf16.msra.mxu1 %v5589_v47 }
 0xaa5   :  { %v4332_v59 = vmul.f32 -1.442695, %v1040_v58  ;;  %4928 = vmatprep.subr.bf16.mxu1 %v5557_v36  ;;  %v4333_v8 = vmul.f32 -1.442695, %v1047_v7 }
 0xaa7   :  { %5137 = vpow2.f32 %v4332_v59 }
 0xab1   :  { %v5138_v60 = vpop.eup %5137 }
 0xab2   :  { %v1044_v14 = vadd.f32 1.0, %v5138_v60 }
 0xab4   :  { %5139 = vrcp.f32 %v1044_v14 }
 0xabe   :  { %v5140_v61 = vpop.eup %5139 }
 0xabf   :  { %v1059_v63 = vmul.f32 %v5140_v61, %v1057_v62 }
 0xac1   :  { %1061 = vrot.lane.b32.xlu0 %v1059_v63, %s5361_s0 }
 0xb33   :  { %v1062_v2 = vpop.permute.xlu0 %1061 }
 0xb34   :  { %v1064_v56 = vadd.f32 %v1062_v2, %v962_v1 }
 0xb36   :  { %5141 = vtanh.f32 %v1064_v56 }
 0xb37   :  { %5143 = vpow2.f32 %v4333_v8 }
 0xb40   :  { %v5142_v3 = vpop.eup %5141 }
 0xb41   :  { %1068 = vrot.lane.b32.xlu1 %v5142_v3, %s5365_s25  ;;  %v5144_v9 = vpop.eup %5143 }
 0xb42   :  { %v1051_v10 = vadd.f32 1.0, %v5144_v9 }
 0xb44   :  { %5145 = vrcp.f32 %v1051_v10 }
 0xb4e   :  { %v5146_v11 = vpop.eup %5145 }
 0xb4f   :  { %v1066_v12 = vsub.f32 1.0, %v5146_v11  ;;  %v1072_v16 = vmul.f32 %v5146_v11, %v5786_v27  ;;  %v1529_v11 = vld [vmem:[#allocation2 + $0x28] sm:$0xff] }
 0xb72   :  { %v1176_v4 = vpop.f32.mrb[16].mxu1 }
 0xb73   :  { %v1311_v5 = vadd.f32 %v1176_v4, %v5681_v21  ;;  %v5817_v6 = vpop.f32.mrb[17].mxu1  ;;  %v1304_v22 = vadd.f32 %v1303_v19, %v1176_v4 }
 0xb75   :  { %1313 = vrot.lane.b32.xlu0 %v1311_v5, %s5361_s0  ;;  %v4339_v23 = vmul.f32 -1.442695, %v1304_v22 }
 0xb77   :  { %5147 = vpow2.f32 %v4339_v23 }
 0xb81   :  { %v5148_v25 = vpop.eup %5147 }
 0xb82   :  { %v1308_v26 = vadd.f32 1.0, %v5148_v25 }
 0xb84   :  { %5149 = vrcp.f32 %v1308_v26 }
 0xb8e   :  { %v5150_v27 = vpop.eup %5149 }
 0xb8f   :  { %v1323_v40 = vsub.f32 1.0, %v5150_v27  ;;  %v1329_v43 = vmul.f32 %v5150_v27, %v5802_v52 }
 0xbb3   :  { %v1069_v13 = vpop.permute.xlu1 %1068 }
 0xbb4   :  { %v1071_v17 = vmul.f32 %v1069_v13, %v1066_v12 }
 0xbb6   :  { %v5821_v18 = vadd.f32 %v1072_v16, %v1071_v17 }
 0xbb8   :  { %4635 = vmatmul.mubr.msk.f32.vlgmr.msra.gmra.mrb[14].mxu0 %vm420_vm4, %v5821_v18 }
 0xbb9   :  { %4923 = vmatpush3.bf16.msra.mxu0 %v5662_v15  ;;  %4645 = vmatprep.mubr.msk.f32.mxu0 %vm5363_vm2, %v5364_v31 }
 0xbba   :  { %4924 = vmatprep.subr.bf16.mxu0 %v5362_v28 }
 0xbbd   :  { %4926 = vmatpush3.bf16.msra.mxu0 %v5678_v20 }
 0xbbe   :  { %4935 = vmatprep.subr.bf16.mxu0 %v5362_v28 }
 0xbe7   :  { %v1314_v24 = vpop.permute.xlu0 %1313 }
 0xbe8   :  { %v1316_v29 = vmul.f32 %v5150_v27, %v1314_v24  ;;  %v1408_v27 = vld [vmem:[#allocation3 + $0x20] sm:$0xff] }
 0xbea   :  { %1318 = vrot.lane.b32.xlu1 %v1316_v29, %s5361_s0 }
 0xc5c   :  { %v1319_v30 = vpop.permute.xlu1 %1318 }
 0xc5d   :  { %v1321_v32 = vadd.f32 %v1319_v30, %v1303_v19 }
 0xc5f   :  { %5151 = vtanh.f32 %v1321_v32 }
 0xc69   :  { %v5152_v33 = vpop.eup %5151 }
 0xc6a   :  { %1325 = vrot.lane.b32.xlu0 %v5152_v33, %s5365_s25 }
 0xc6e   :  { %1184 = vrot.lane.b32.xlu0 %v1182_v34, %s5365_s25 }
 0xc8b   :  { %v1258_v35 = vpop.f32.mrb[14].mxu0 }
 0xc8c   :  { %v1280_v37 = vadd.f32 %v1258_v35, %v5732_v0  ;;  %v4636_v38 = vpop.f32.mrb[15].mxu0 }
 0xc8e   :  { %1282 = vrot.lane.b32.xlu0 %v1280_v37, %s5366_s10 }
 0xcdc   :  { %v1326_v41 = vpop.permute.xlu0 %1325 }
 0xcdd   :  { %v1328_v44 = vmul.f32 %v1326_v41, %v1323_v40 }
 0xcdf   :  { %v5837_v45 = vadd.f32 %v1329_v43, %v1328_v44 }
 0xce0   :  { %v1185_v46 = vpop.permute.xlu0 %1184 }
 0xce1   :  { %1332 = vrot.lane.b32.xlu1 %v5837_v45, %s5365_s25  ;;  %v1187_v49 = vadd.f32 %v1185_v46, %v1176_v4  ;;  %v1188_v59 = vadd.f32 %v1185_v46, %v5817_v6 }
 0xce5   :  { %1263 = vrot.lane.b32.xlu1 %v1258_v35, %s5365_s25 }
 0xd00   :  { %v1283_v57 = vpop.permute.xlu0 %1282 }
 0xd53   :  { %v1333_v48 = vpop.permute.xlu1 %1332 }
 0xd54   :  { %4340 = vmatmul.mubr.msk.f32.vlgmr.msra.gmra.mrb[18].mxu1 %vm420_vm4, %v1333_v48 }
 0xd55   :  { %4930 = vmatpush1.bf16.msra.mxu1 %v5565_v39  ;;  %1626 = vmatprep.mubr.f32.mxu1 %v5364_v31 }
 0xd56   :  { %4932 = vmatprep.subr.bf16.mxu1 %v5574_v42 }
 0xd57   :  { %v1264_v50 = vpop.permute.xlu1 %1263 }
 0xd58   :  { %v1266_v51 = vadd.f32 %v1264_v50, %v1187_v49  ;;  %v1273_v2 = vadd.f32 %v1264_v50, %v1188_v59 }
 0xd59   :  { %4934 = vmatpush1.bf16.msra.mxu1 %v5589_v47 }
 0xd5a   :  { %v4337_v52 = vmul.f32 -1.442695, %v1266_v51  ;;  %4942 = vmatprep.subr.bf16.mxu1 %v5557_v36  ;;  %v4338_v56 = vmul.f32 -1.442695, %v1273_v2 }
 0xd5c   :  { %5153 = vpow2.f32 %v4337_v52 }
 0xd66   :  { %v5154_v53 = vpop.eup %5153 }
 0xd67   :  { %v1270_v54 = vadd.f32 1.0, %v5154_v53 }
 0xd69   :  { %5155 = vrcp.f32 %v1270_v54 }
 0xd73   :  { %v5156_v55 = vpop.eup %5155 }
 0xd74   :  { %v1285_v58 = vmul.f32 %v5156_v55, %v1283_v57 }
 0xd76   :  { %1287 = vrot.lane.b32.xlu1 %v1285_v58, %s5361_s0 }
 0xde8   :  { %v1288_v60 = vpop.permute.xlu1 %1287 }
 0xde9   :  { %v1290_v14 = vadd.f32 %v1288_v60, %v1188_v59 }
 0xdeb   :  { %5157 = vtanh.f32 %v1290_v14 }
 0xdec   :  { %5159 = vpow2.f32 %v4338_v56 }
 0xdf5   :  { %v5158_v61 = vpop.eup %5157 }
 0xdf6   :  { %1294 = vrot.lane.b32.xlu0 %v5158_v61, %s5365_s25  ;;  %v5160_v3 = vpop.eup %5159 }
 0xdf7   :  { %v1277_v4 = vadd.f32 1.0, %v5160_v3 }
 0xdf9   :  { %5161 = vrcp.f32 %v1277_v4 }
 0xe03   :  { %v5162_v5 = vpop.eup %5161 }
 0xe04   :  { %v1292_v6 = vsub.f32 1.0, %v5162_v5  ;;  %v1298_v8 = vmul.f32 %v5162_v5, %v5821_v18  ;;  %v1755_v5 = vld [vmem:[#allocation2 + $0x30] sm:$0xff] }
 0xe27   :  { %v1402_v62 = vpop.f32.mrb[18].mxu1 }
 0xe28   :  { %v1537_v63 = vadd.f32 %v1402_v62, %v5681_v21  ;;  %v5852_v1 = vpop.f32.mrb[19].mxu1  ;;  %v1530_v12 = vadd.f32 %v1529_v11, %v1402_v62 }
 0xe2a   :  { %1539 = vrot.lane.b32.xlu1 %v1537_v63, %s5361_s0  ;;  %v4344_v13 = vmul.f32 -1.442695, %v1530_v12 }
 0xe2c   :  { %5163 = vpow2.f32 %v4344_v13  ;;  %v1634_v13 = vld [vmem:[#allocation3 + $0x28] sm:$0xff] }
 0xe36   :  { %v5164_v16 = vpop.eup %5163 }
 0xe37   :  { %v1534_v17 = vadd.f32 1.0, %v5164_v16 }
 0xe39   :  { %5165 = vrcp.f32 %v1534_v17 }
 0xe43   :  { %v5166_v18 = vpop.eup %5165 }
 0xe44   :  { %v1549_v32 = vsub.f32 1.0, %v5166_v18  ;;  %v1555_v34 = vmul.f32 %v5166_v18, %v5837_v45 }
 0xe68   :  { %v1295_v7 = vpop.permute.xlu0 %1294 }
 0xe69   :  { %v1297_v9 = vmul.f32 %v1295_v7, %v1292_v6 }
 0xe6b   :  { %v5856_v10 = vadd.f32 %v1298_v8, %v1297_v9 }
 0xe6d   :  { %4646 = vmatmul.mubr.msk.f32.vlgmr.msra.gmra.mrb[16].mxu0 %vm420_vm4, %v5856_v10 }
 0xe6e   :  { %4937 = vmatpush3.bf16.msra.mxu0 %v5662_v15  ;;  %4656 = vmatprep.mubr.msk.f32.mxu0 %vm5363_vm2, %v5364_v31 }
 0xe6f   :  { %4938 = vmatprep.subr.bf16.mxu0 %v5362_v28 }
 0xe72   :  { %4940 = vmatpush3.bf16.msra.mxu0 %v5678_v20 }
 0xe73   :  { %4949 = vmatprep.subr.bf16.mxu0 %v5362_v28 }
 0xe9c   :  { %v1540_v19 = vpop.permute.xlu1 %1539 }
 0xe9d   :  { %v1542_v22 = vmul.f32 %v5166_v18, %v1540_v19 }
 0xe9f   :  { %1544 = vrot.lane.b32.xlu0 %v1542_v22, %s5361_s0 }
 0xf11   :  { %v1545_v23 = vpop.permute.xlu0 %1544 }
 0xf12   :  { %v1547_v25 = vadd.f32 %v1545_v23, %v1529_v11 }
 0xf14   :  { %5167 = vtanh.f32 %v1547_v25 }
 0xf1e   :  { %v5168_v26 = vpop.eup %5167 }
 0xf1f   :  { %1551 = vrot.lane.b32.xlu1 %v5168_v26, %s5365_s25 }
 0xf23   :  { %1410 = vrot.lane.b32.xlu1 %v1408_v27, %s5365_s25 }
 0xf40   :  { %v1484_v24 = vpop.f32.mrb[16].mxu0 }
 0xf41   :  { %v1506_v29 = vadd.f32 %v1484_v24, %v5732_v0  ;;  %v4647_v30 = vpop.f32.mrb[17].mxu0 }
 0xf43   :  { %1508 = vrot.lane.b32.xlu1 %v1506_v29, %s5366_s10 }
 0xf91   :  { %v1552_v33 = vpop.permute.xlu1 %1551 }
 0xf92   :  { %v1554_v35 = vmul.f32 %v1552_v33, %v1549_v32 }
 0xf94   :  { %v5872_v37 = vadd.f32 %v1555_v34, %v1554_v35 }
 0xf95   :  { %v1411_v38 = vpop.permute.xlu1 %1410 }
 0xf96   :  { %1558 = vrot.lane.b32.xlu0 %v5872_v37, %s5365_s25  ;;  %v1413_v41 = vadd.f32 %v1411_v38, %v1402_v62  ;;  %v1414_v52 = vadd.f32 %v1411_v38, %v5852_v1 }
 0xf9a   :  { %1489 = vrot.lane.b32.xlu0 %v1484_v24, %s5365_s25 }
 0xfb5   :  { %v1509_v50 = vpop.permute.xlu1 %1508 }
0x1008   :  { %v1559_v40 = vpop.permute.xlu0 %1558 }
0x1009   :  { %4345 = vmatmul.mubr.msk.f32.vlgmr.msra.gmra.mrb[20].mxu1 %vm420_vm4, %v1559_v40 }
0x100a   :  { %4944 = vmatpush1.bf16.msra.mxu1 %v5565_v39  ;;  %1852 = vmatprep.mubr.f32.mxu1 %v5364_v31 }
0x100b   :  { %4946 = vmatprep.subr.bf16.mxu1 %v5574_v42 }
0x100c   :  { %v1490_v43 = vpop.permute.xlu0 %1489 }
0x100d   :  { %v1492_v44 = vadd.f32 %v1490_v43, %v1413_v41  ;;  %v1499_v60 = vadd.f32 %v1490_v43, %v1414_v52 }
0x100e   :  { %4948 = vmatpush1.bf16.msra.mxu1 %v5589_v47 }
0x100f   :  { %v4342_v45 = vmul.f32 -1.442695, %v1492_v44  ;;  %4956 = vmatprep.subr.bf16.mxu1 %v5557_v36  ;;  %v4343_v14 = vmul.f32 -1.442695, %v1499_v60 }
0x1011   :  { %5169 = vpow2.f32 %v4342_v45 }
0x101b   :  { %v5170_v46 = vpop.eup %5169 }
0x101c   :  { %v1496_v48 = vadd.f32 1.0, %v5170_v46 }
0x101e   :  { %5171 = vrcp.f32 %v1496_v48 }
0x1028   :  { %v5172_v49 = vpop.eup %5171 }
0x1029   :  { %v1511_v51 = vmul.f32 %v5172_v49, %v1509_v50 }
0x102b   :  { %1513 = vrot.lane.b32.xlu0 %v1511_v51, %s5361_s0 }
0x109d   :  { %v1514_v53 = vpop.permute.xlu0 %1513 }
0x109e   :  { %v1516_v54 = vadd.f32 %v1514_v53, %v1414_v52 }
0x10a0   :  { %5173 = vtanh.f32 %v1516_v54 }
0x10a1   :  { %5175 = vpow2.f32 %v4343_v14 }
0x10aa   :  { %v5174_v55 = vpop.eup %5173 }
0x10ab   :  { %1520 = vrot.lane.b32.xlu1 %v5174_v55, %s5365_s25  ;;  %v5176_v61 = vpop.eup %5175 }
0x10ac   :  { %v1503_v62 = vadd.f32 1.0, %v5176_v61 }
0x10ae   :  { %5177 = vrcp.f32 %v1503_v62 }
0x10b8   :  { %v5178_v63 = vpop.eup %5177 }
0x10b9   :  { %v1518_v1 = vsub.f32 1.0, %v5178_v63  ;;  %v1524_v56 = vmul.f32 %v5178_v63, %v5856_v10  ;;  %v1981_v63 = vld [vmem:[#allocation2 + $0x38] sm:$0xff] }
0x10dc   :  { %v1628_v57 = vpop.f32.mrb[20].mxu1 }
0x10dd   :  { %v1763_v58 = vadd.f32 %v1628_v57, %v5681_v21  ;;  %v5887_v59 = vpop.f32.mrb[21].mxu1  ;;  %v1756_v6 = vadd.f32 %v1755_v5, %v1628_v57 }
0x10df   :  { %1765 = vrot.lane.b32.xlu0 %v1763_v58, %s5361_s0  ;;  %v4349_v7 = vmul.f32 -1.442695, %v1756_v6 }
0x10e1   :  { %5179 = vpow2.f32 %v4349_v7  ;;  %v1860_v7 = vld [vmem:[#allocation3 + $0x30] sm:$0xff] }
0x10eb   :  { %v5180_v8 = vpop.eup %5179 }
0x10ec   :  { %v1760_v9 = vadd.f32 1.0, %v5180_v8 }
0x10ee   :  { %5181 = vrcp.f32 %v1760_v9 }
0x10f8   :  { %v5182_v10 = vpop.eup %5181 }
0x10f9   :  { %v1775_v25 = vsub.f32 1.0, %v5182_v10  ;;  %v1781_v27 = vmul.f32 %v5182_v10, %v5872_v37 }
0x111d   :  { %v1521_v2 = vpop.permute.xlu1 %1520 }
0x111e   :  { %v1523_v3 = vmul.f32 %v1521_v2, %v1518_v1 }
0x1120   :  { %v5891_v4 = vadd.f32 %v1524_v56, %v1523_v3 }
0x1122   :  { %4657 = vmatmul.mubr.msk.f32.vlgmr.msra.gmra.mrb[18].mxu0 %vm420_vm4, %v5891_v4 }
0x1123   :  { %4951 = vmatpush3.bf16.msra.mxu0 %v5662_v15  ;;  %4667 = vmatprep.mubr.msk.f32.mxu0 %vm5363_vm2, %v5364_v31 }
0x1124   :  { %4952 = vmatprep.subr.bf16.mxu0 %v5362_v28 }
0x1127   :  { %4954 = vmatpush3.bf16.msra.mxu0 %v5678_v20 }
0x1128   :  { %4963 = vmatprep.subr.bf16.mxu0 %v5362_v28 }
0x1151   :  { %v1766_v11 = vpop.permute.xlu0 %1765 }
0x1152   :  { %v1768_v12 = vmul.f32 %v5182_v10, %v1766_v11 }
0x1154   :  { %1770 = vrot.lane.b32.xlu1 %v1768_v12, %s5361_s0 }
0x1158   :  { %1636 = vrot.lane.b32.xlu1 %v1634_v13, %s5365_s25 }
0x11c6   :  { %v1771_v16 = vpop.permute.xlu1 %1770 }
0x11c7   :  { %v1773_v17 = vadd.f32 %v1771_v16, %v1755_v5 }
0x11c9   :  { %5183 = vtanh.f32 %v1773_v17 }
0x11ca   :  { %v1637_v30 = vpop.permute.xlu1 %1636 }
0x11cb   :  { %v1639_v32 = vadd.f32 %v1637_v30, %v1628_v57  ;;  %v1640_v45 = vadd.f32 %v1637_v30, %v5887_v59 }
0x11d3   :  { %v5184_v18 = vpop.eup %5183 }
0x11d4   :  { %1777 = vrot.lane.b32.xlu0 %v5184_v18, %s5365_s25 }
0x11f5   :  { %v1710_v19 = vpop.f32.mrb[18].mxu0 }
0x11f6   :  { %v4658_v22 = vpop.f32.mrb[19].mxu0  ;;  %1715 = vrot.lane.b32.xlu0 %v1710_v19, %s5365_s25  ;;  %v1732_v23 = vadd.f32 %v1710_v19, %v5732_v0 }
0x11fa   :  { %1734 = vrot.lane.b32.xlu0 %v1732_v23, %s5366_s10 }
0x1246   :  { %v1778_v26 = vpop.permute.xlu0 %1777 }
0x1247   :  { %v1780_v24 = vmul.f32 %v1778_v26, %v1775_v25 }
0x1249   :  { %v5908_v29 = vadd.f32 %v1781_v27, %v1780_v24 }
0x124b   :  { %1784 = vrot.lane.b32.xlu1 %v5908_v29, %s5365_s25 }
0x1268   :  { %v1716_v33 = vpop.permute.xlu0 %1715 }
0x1269   :  { %v1718_v34 = vadd.f32 %v1716_v33, %v1639_v32  ;;  %v1725_v50 = vadd.f32 %v1716_v33, %v1640_v45 }
0x126b   :  { %v4347_v35 = vmul.f32 -1.442695, %v1718_v34  ;;  %v4348_v51 = vmul.f32 -1.442695, %v1725_v50 }
0x126c   :  { %v1735_v43 = vpop.permute.xlu0 %1734 }
0x126d   :  { %5185 = vpow2.f32 %v4347_v35 }
0x1277   :  { %v5186_v38 = vpop.eup %5185 }
0x1278   :  { %v1722_v40 = vadd.f32 1.0, %v5186_v38 }
0x127a   :  { %5187 = vrcp.f32 %v1722_v40 }
0x1284   :  { %v5188_v41 = vpop.eup %5187 }
0x1285   :  { %v1737_v44 = vmul.f32 %v5188_v41, %v1735_v43 }
0x1287   :  { %1739 = vrot.lane.b32.xlu1 %v1737_v44, %s5361_s0 }
0x12bd   :  { %v1785_v37 = vpop.permute.xlu1 %1784 }
0x12be   :  { %4350 = vmatmul.mubr.msk.f32.vlgmr.msra.gmra.mrb[22].mxu1 %vm420_vm4, %v1785_v37 }
0x12bf   :  { %4958 = vmatpush1.bf16.msra.mxu1 %v5565_v39  ;;  %2078 = vmatprep.mubr.f32.mxu1 %v5364_v31 }
0x12c0   :  { %4960 = vmatprep.subr.bf16.mxu1 %v5574_v42 }
0x12c3   :  { %4962 = vmatpush1.bf16.msra.mxu1 %v5589_v47 }
0x12c4   :  { %4970 = vmatprep.subr.bf16.mxu1 %v5557_v36 }
0x12f9   :  { %v1740_v46 = vpop.permute.xlu1 %1739 }
0x12fa   :  { %v1742_v48 = vadd.f32 %v1740_v46, %v1640_v45 }
0x12fc   :  { %5189 = vtanh.f32 %v1742_v48 }
0x12fd   :  { %5191 = vpow2.f32 %v4348_v51 }
0x1306   :  { %v5190_v49 = vpop.eup %5189 }
0x1307   :  { %1746 = vrot.lane.b32.xlu0 %v5190_v49, %s5365_s25  ;;  %v5192_v52 = vpop.eup %5191 }
0x1308   :  { %v1729_v53 = vadd.f32 1.0, %v5192_v52 }
0x130a   :  { %5193 = vrcp.f32 %v1729_v53 }
0x1314   :  { %v5194_v54 = vpop.eup %5193 }
0x1315   :  { %v1744_v55 = vsub.f32 1.0, %v5194_v54  ;;  %v1750_v58 = vmul.f32 %v5194_v54, %v5891_v4 }
0x1379   :  { %v1747_v57 = vpop.permute.xlu0 %1746 }
0x137a   :  { %v1749_v60 = vmul.f32 %v1747_v57, %v1744_v55 }
0x137c   :  { %v5922_v14 = vadd.f32 %v1750_v58, %v1749_v60  ;;  %v2086_v58 = vld [vmem:[#allocation3 + $0x38] sm:$0xff] }
0x137d   :  { %v2207_v60 = vld [vmem:[#allocation2 + $0x40] sm:$0xff] }
0x137e   :  { %4668 = vmatmul.mubr.msk.f32.vlgmr.msra.gmra.mrb[20].mxu0 %vm420_vm4, %v5922_v14 }
0x137f   :  { %4965 = vmatpush3.bf16.msra.mxu0 %v5662_v15  ;;  %4678 = vmatprep.mubr.msk.f32.mxu0 %vm5363_vm2, %v5364_v31 }
0x1380   :  { %4966 = vmatprep.subr.bf16.mxu0 %v5362_v28 }
0x1383   :  { %4968 = vmatpush3.bf16.msra.mxu0 %v5678_v20 }
0x1384   :  { %4977 = vmatprep.subr.bf16.mxu0 %v5362_v28 }
0x1391   :  { %v1854_v59 = vpop.f32.mrb[22].mxu1 }
0x1392   :  { %v1989_v61 = vadd.f32 %v1854_v59, %v5681_v21  ;;  %v1856_v62 = vpop.f32.mrb[23].mxu1  ;;  %v1982_v1 = vadd.f32 %v1981_v63, %v1854_v59 }
0x1394   :  { %1991 = vrot.lane.b32.xlu1 %v1989_v61, %s5361_s0  ;;  %v4354_v2 = vmul.f32 -1.442695, %v1982_v1 }
0x1396   :  { %5195 = vpow2.f32 %v4354_v2 }
0x13a0   :  { %v5196_v56 = vpop.eup %5195 }
0x13a1   :  { %v1986_v3 = vadd.f32 1.0, %v5196_v56 }
0x13a3   :  { %5197 = vrcp.f32 %v1986_v3 }
0x13ad   :  { %v5198_v4 = vpop.eup %5197 }
0x13ae   :  { %v2001_v16 = vsub.f32 1.0, %v5198_v4  ;;  %v2007_v19 = vmul.f32 %v5198_v4, %v5908_v29 }
0x1406   :  { %v1992_v5 = vpop.permute.xlu1 %1991 }
0x1407   :  { %v1994_v6 = vmul.f32 %v5198_v4, %v1992_v5 }
0x1409   :  { %1996 = vrot.lane.b32.xlu0 %v1994_v6, %s5361_s0 }
0x140d   :  { %1862 = vrot.lane.b32.xlu0 %v1860_v7, %s5365_s25 }
0x1451   :  { %v1936_v8 = vpop.f32.mrb[20].mxu0 }
0x1452   :  { %v1958_v9 = vadd.f32 %v1936_v8, %v5732_v0  ;;  %v4669_v10 = vpop.f32.mrb[21].mxu0 }
0x1454   :  { %1960 = vrot.lane.b32.xlu0 %v1958_v9, %s5366_s10 }
0x147b   :  { %v1997_v11 = vpop.permute.xlu0 %1996 }
0x147c   :  { %v1999_v12 = vadd.f32 %v1997_v11, %v1981_v63 }
0x147e   :  { %5199 = vtanh.f32 %v1999_v12 }
0x147f   :  { %v1863_v17 = vpop.permute.xlu0 %1862 }
0x1480   :  { %v1865_v23 = vadd.f32 %v1863_v17, %v1854_v59  ;;  %v1866_v38 = vadd.f32 %v1863_v17, %v1856_v62 }
0x1488   :  { %v5200_v13 = vpop.eup %5199 }
0x1489   :  { %2003 = vrot.lane.b32.xlu1 %v5200_v13, %s5365_s25 }
0x148d   :  { %1941 = vrot.lane.b32.xlu1 %v1936_v8, %s5365_s25 }
0x14c6   :  { %v1961_v34 = vpop.permute.xlu0 %1960 }
0x14fb   :  { %v2004_v18 = vpop.permute.xlu1 %2003 }
0x14fc   :  { %v2006_v22 = vmul.f32 %v2004_v18, %v2001_v16 }
0x14fe   :  { %v5941_v25 = vadd.f32 %v2007_v19, %v2006_v22 }
0x14ff   :  { %v1942_v26 = vpop.permute.xlu1 %1941 }
0x1500   :  { %v1944_v27 = vadd.f32 %v1942_v26, %v1865_v23  ;;  %2010 = vrot.lane.b32.xlu1 %v5941_v25, %s5365_s25  ;;  %v1951_v44 = vadd.f32 %v1942_v26, %v1866_v38 }
0x1502   :  { %v4352_v24 = vmul.f32 -1.442695, %v1944_v27  ;;  %v4353_v37 = vmul.f32 -1.442695, %v1951_v44 }
0x1504   :  { %5201 = vpow2.f32 %v4352_v24 }
0x150e   :  { %v5202_v30 = vpop.eup %5201 }
0x150f   :  { %v1948_v32 = vadd.f32 1.0, %v5202_v30 }
0x1511   :  { %5203 = vrcp.f32 %v1948_v32 }
0x151b   :  { %v5204_v33 = vpop.eup %5203 }
0x151c   :  { %v1963_v35 = vmul.f32 %v5204_v33, %v1961_v34 }
0x151e   :  { %1965 = vrot.lane.b32.xlu0 %v1963_v35, %s5361_s0 }
0x1572   :  { %v2011_v29 = vpop.permute.xlu1 %2010 }
0x1573   :  { %4355 = vmatmul.mubr.msk.f32.vlgmr.msra.gmra.mrb[24].mxu1 %vm420_vm4, %v2011_v29 }
0x1574   :  { %4972 = vmatpush1.bf16.msra.mxu1 %v5565_v39  ;;  %2304 = vmatprep.mubr.f32.mxu1 %v5364_v31 }
0x1575   :  { %4974 = vmatprep.subr.bf16.mxu1 %v5574_v42 }
0x1578   :  { %4976 = vmatpush1.bf16.msra.mxu1 %v5589_v47 }
0x1579   :  { %4984 = vmatprep.subr.bf16.mxu1 %v5557_v36 }
0x1590   :  { %v1966_v40 = vpop.permute.xlu0 %1965 }
0x1591   :  { %v1968_v41 = vadd.f32 %v1966_v40, %v1866_v38 }
0x1593   :  { %5205 = vtanh.f32 %v1968_v41 }
0x1594   :  { %5207 = vpow2.f32 %v4353_v37 }
0x159d   :  { %v5206_v43 = vpop.eup %5205 }
0x159e   :  { %1972 = vrot.lane.b32.xlu1 %v5206_v43, %s5365_s25  ;;  %v5208_v45 = vpop.eup %5207 }
0x159f   :  { %v1955_v46 = vadd.f32 1.0, %v5208_v45 }
0x15a1   :  { %5209 = vrcp.f32 %v1955_v46 }
0x15ab   :  { %v5210_v48 = vpop.eup %5209 }
0x15ac   :  { %v1970_v49 = vsub.f32 1.0, %v5210_v48  ;;  %v1976_v51 = vmul.f32 %v5210_v48, %v5922_v14 }
0x1610   :  { %v1973_v50 = vpop.permute.xlu1 %1972 }
0x1611   :  { %v1975_v52 = vmul.f32 %v1973_v50, %v1970_v49 }
0x1613   :  { %v5954_v53 = vadd.f32 %v1976_v51, %v1975_v52  ;;  %v2312_v51 = vld [vmem:[#allocation3 + $0x40] sm:$0xff] }
0x1615   :  { %4679 = vmatmul.mubr.msk.f32.vlgmr.msra.gmra.mrb[22].mxu0 %vm420_vm4, %v5954_v53 }
0x1616   :  { %4979 = vmatpush3.bf16.msra.mxu0 %v5662_v15  ;;  %4689 = vmatprep.mubr.msk.f32.mxu0 %vm5363_vm2, %v5364_v31 }
0x1617   :  { %4980 = vmatprep.subr.bf16.mxu0 %v5362_v28 }
0x161a   :  { %4982 = vmatpush3.bf16.msra.mxu0 %v5678_v20 }
0x161b   :  { %4991 = vmatprep.subr.bf16.mxu0 %v5362_v28 }
0x1646   :  { %v2080_v54 = vpop.f32.mrb[24].mxu1 }
0x1647   :  { %v2215_v55 = vadd.f32 %v2080_v54, %v5681_v21  ;;  %v2082_v57 = vpop.f32.mrb[25].mxu1  ;;  %v2208_v14 = vadd.f32 %v2207_v60, %v2080_v54 }
0x1649   :  { %2217 = vrot.lane.b32.xlu0 %v2215_v55, %s5361_s0  ;;  %v4359_v59 = vmul.f32 -1.442695, %v2208_v14  ;;  %v2433_v55 = vld [vmem:[#allocation2 + $0x48] sm:$0xff] }
0x164b   :  { %5211 = vpow2.f32 %v4359_v59 }
0x164d   :  { %2088 = vrot.lane.b32.xlu0 %v2086_v58, %s5365_s25 }
0x1655   :  { %v5212_v61 = vpop.eup %5211 }
0x1656   :  { %v2212_v62 = vadd.f32 1.0, %v5212_v61 }
0x1658   :  { %5213 = vrcp.f32 %v2212_v62 }
0x1662   :  { %v5214_v63 = vpop.eup %5213 }
0x1663   :  { %v2227_v22 = vsub.f32 1.0, %v5214_v63  ;;  %v2233_v26 = vmul.f32 %v5214_v63, %v5941_v25 }
0x16bb   :  { %v2218_v1 = vpop.permute.xlu0 %2217 }
0x16bc   :  { %v2220_v2 = vmul.f32 %v5214_v63, %v2218_v1 }
0x16be   :  { %2222 = vrot.lane.b32.xlu1 %v2220_v2, %s5361_s0 }
0x16bf   :  { %v2089_v8 = vpop.permute.xlu0 %2088 }
0x16c0   :  { %v2091_v9 = vadd.f32 %v2089_v8, %v2080_v54  ;;  %v2092_v30 = vadd.f32 %v2089_v8, %v2082_v57 }
0x16e8   :  { %v2162_v56 = vpop.f32.mrb[22].mxu0 }
0x16e9   :  { %v2184_v3 = vadd.f32 %v2162_v56, %v5732_v0  ;;  %v4680_v4 = vpop.f32.mrb[23].mxu0  ;;  %2167 = vrot.lane.b32.xlu1 %v2162_v56, %s5365_s25 }
0x16eb   :  { %2186 = vrot.lane.b32.xlu0 %v2184_v3, %s5366_s10 }
0x1730   :  { %v2223_v5 = vpop.permute.xlu1 %2222 }
0x1731   :  { %v2225_v6 = vadd.f32 %v2223_v5, %v2207_v60 }
0x1733   :  { %5215 = vtanh.f32 %v2225_v6 }
0x173d   :  { %v5216_v7 = vpop.eup %5215 }
0x173e   :  { %2229 = vrot.lane.b32.xlu1 %v5216_v7, %s5365_s25 }
0x175b   :  { %v2168_v10 = vpop.permute.xlu1 %2167 }
0x175c   :  { %v2170_v11 = vadd.f32 %v2168_v10, %v2091_v9  ;;  %v2177_v25 = vadd.f32 %v2168_v10, %v2092_v30 }
0x175d   :  { %v2187_v18 = vpop.permute.xlu0 %2186 }
0x175e   :  { %v4357_v12 = vmul.f32 -1.442695, %v2170_v11  ;;  %v4358_v29 = vmul.f32 -1.442695, %v2177_v25 }
0x1760   :  { %5217 = vpow2.f32 %v4357_v12 }
0x176a   :  { %v5218_v13 = vpop.eup %5217 }
0x176b   :  { %v2174_v16 = vadd.f32 1.0, %v5218_v13 }
0x176d   :  { %5219 = vrcp.f32 %v2174_v16 }
0x1777   :  { %v5220_v17 = vpop.eup %5219 }
0x1778   :  { %v2189_v19 = vmul.f32 %v5220_v17, %v2187_v18 }
0x177a   :  { %2191 = vrot.lane.b32.xlu0 %v2189_v19, %s5361_s0 }
0x17b0   :  { %v2230_v23 = vpop.permute.xlu1 %2229 }
0x17b1   :  { %v2232_v27 = vmul.f32 %v2230_v23, %v2227_v22 }
0x17b3   :  { %v5974_v24 = vadd.f32 %v2233_v26, %v2232_v27  ;;  %v2538_v27 = vld [vmem:[#allocation3 + $0x48] sm:$0xff] }
0x17b5   :  { %2236 = vrot.lane.b32.xlu1 %v5974_v24, %s5365_s25 }
0x17ec   :  { %v2192_v32 = vpop.permute.xlu0 %2191 }
0x17ed   :  { %v2194_v33 = vadd.f32 %v2192_v32, %v2092_v30 }
0x17ef   :  { %5221 = vtanh.f32 %v2194_v33 }
0x17f0   :  { %5223 = vpow2.f32 %v4358_v29 }
0x17f9   :  { %v5222_v34 = vpop.eup %5221 }
0x17fa   :  { %2198 = vrot.lane.b32.xlu0 %v5222_v34, %s5365_s25  ;;  %v5224_v38 = vpop.eup %5223 }
0x17fb   :  { %v2181_v40 = vadd.f32 1.0, %v5224_v38 }
0x17fd   :  { %5225 = vrcp.f32 %v2181_v40 }
0x1807   :  { %v5226_v41 = vpop.eup %5225 }
0x1808   :  { %v2196_v43 = vsub.f32 1.0, %v5226_v41  ;;  %v2202_v37 = vmul.f32 %v5226_v41, %v5954_v53 }
0x1827   :  { %v2237_v35 = vpop.permute.xlu1 %2236 }
0x1828   :  { %4360 = vmatmul.mubr.msk.f32.vlgmr.msra.gmra.mrb[26].mxu1 %vm420_vm4, %v2237_v35 }
0x1829   :  { %4986 = vmatpush1.bf16.msra.mxu1 %v5565_v39  ;;  %2530 = vmatprep.mubr.f32.mxu1 %v5364_v31 }
0x182a   :  { %4988 = vmatprep.subr.bf16.mxu1 %v5574_v42 }
0x182d   :  { %4990 = vmatpush1.bf16.msra.mxu1 %v5589_v47 }
0x182e   :  { %4998 = vmatprep.subr.bf16.mxu1 %v5557_v36 }
0x186c   :  { %v2199_v44 = vpop.permute.xlu0 %2198 }
0x186d   :  { %v2201_v45 = vmul.f32 %v2199_v44, %v2196_v43 }
0x186f   :  { %v5986_v46 = vadd.f32 %v2202_v37, %v2201_v45 }
0x1871   :  { %4690 = vmatmul.mubr.msk.f32.vlgmr.msra.gmra.mrb[24].mxu0 %vm420_vm4, %v5986_v46 }
0x1872   :  { %4993 = vmatpush3.bf16.msra.mxu0 %v5662_v15  ;;  %4700 = vmatprep.mubr.msk.f32.mxu0 %vm5363_vm2, %v5364_v31 }
0x1873   :  { %4994 = vmatprep.subr.bf16.mxu0 %v5362_v28 }
0x1876   :  { %4996 = vmatpush3.bf16.msra.mxu0 %v5678_v20 }
0x1877   :  { %5005 = vmatprep.subr.bf16.mxu0 %v5362_v28 }
0x18fb   :  { %v2306_v48 = vpop.f32.mrb[26].mxu1 }
0x18fc   :  { %v2441_v49 = vadd.f32 %v2306_v48, %v5681_v21  ;;  %v2308_v50 = vpop.f32.mrb[27].mxu1  ;;  %v2434_v57 = vadd.f32 %v2433_v55, %v2306_v48 }
0x18fe   :  { %2443 = vrot.lane.b32.xlu1 %v2441_v49, %s5361_s0  ;;  %v4364_v58 = vmul.f32 -1.442695, %v2434_v57  ;;  %v2659_v49 = vld [vmem:[#allocation2 + $0x50] sm:$0xff] }
0x1900   :  { %5227 = vpow2.f32 %v4364_v58 }
0x1902   :  { %2314 = vrot.lane.b32.xlu1 %v2312_v51, %s5365_s25 }
0x190a   :  { %v5228_v60 = vpop.eup %5227 }
0x190b   :  { %v2438_v14 = vadd.f32 1.0, %v5228_v60 }
0x190d   :  { %5229 = vrcp.f32 %v2438_v14 }
0x1917   :  { %v5230_v59 = vpop.eup %5229 }
0x1918   :  { %v2453_v12 = vsub.f32 1.0, %v5230_v59  ;;  %v2459_v16 = vmul.f32 %v5230_v59, %v5974_v24 }
0x1944   :  { %v2388_v52 = vpop.f32.mrb[24].mxu0 }
0x1945   :  { %v2410_v53 = vadd.f32 %v2388_v52, %v5732_v0  ;;  %v4691_v54 = vpop.f32.mrb[25].mxu0 }
0x1947   :  { %2412 = vrot.lane.b32.xlu1 %v2410_v53, %s5366_s10 }
0x1970   :  { %v2444_v61 = vpop.permute.xlu1 %2443 }
0x1971   :  { %v2446_v62 = vmul.f32 %v5230_v59, %v2444_v61 }
0x1973   :  { %2448 = vrot.lane.b32.xlu0 %v2446_v62, %s5361_s0 }
0x1974   :  { %v2315_v63 = vpop.permute.xlu1 %2314 }
0x1975   :  { %v2317_v56 = vadd.f32 %v2315_v63, %v2306_v48  ;;  %v2318_v19 = vadd.f32 %v2315_v63, %v2308_v50 }
0x1977   :  { %2393 = vrot.lane.b32.xlu0 %v2388_v52, %s5365_s25 }
0x19b9   :  { %v2413_v10 = vpop.permute.xlu1 %2412 }
0x19e5   :  { %v2449_v1 = vpop.permute.xlu0 %2448 }
0x19e6   :  { %v2451_v2 = vadd.f32 %v2449_v1, %v2433_v55 }
0x19e8   :  { %5231 = vtanh.f32 %v2451_v2 }
0x19e9   :  { %v2394_v3 = vpop.permute.xlu0 %2393 }
0x19ea   :  { %v2396_v4 = vadd.f32 %v2394_v3, %v2317_v56  ;;  %v2403_v30 = vadd.f32 %v2394_v3, %v2318_v19 }
0x19ec   :  { %v4362_v5 = vmul.f32 -1.442695, %v2396_v4  ;;  %v4363_v32 = vmul.f32 -1.442695, %v2403_v30 }
0x19ee   :  { %5233 = vpow2.f32 %v4362_v5 }
0x19f2   :  { %v5232_v6 = vpop.eup %5231 }
0x19f3   :  { %2455 = vrot.lane.b32.xlu0 %v5232_v6, %s5365_s25 }
0x19f8   :  { %v5234_v7 = vpop.eup %5233 }
0x19f9   :  { %v2400_v8 = vadd.f32 1.0, %v5234_v7 }
0x19fb   :  { %5235 = vrcp.f32 %v2400_v8 }
0x1a05   :  { %v5236_v9 = vpop.eup %5235 }
0x1a06   :  { %v2415_v11 = vmul.f32 %v5236_v9, %v2413_v10  ;;  %v2764_v10 = vld [vmem:[#allocation3 + $0x50] sm:$0xff] }
0x1a08   :  { %2417 = vrot.lane.b32.xlu1 %v2415_v11, %s5361_s0 }
0x1a65   :  { %v2456_v13 = vpop.permute.xlu0 %2455 }
0x1a66   :  { %v2458_v17 = vmul.f32 %v2456_v13, %v2453_v12 }
0x1a68   :  { %v6006_v18 = vadd.f32 %v2459_v16, %v2458_v17 }
0x1a6a   :  { %2462 = vrot.lane.b32.xlu0 %v6006_v18, %s5365_s25 }
0x1a7a   :  { %v2418_v22 = vpop.permute.xlu1 %2417 }
0x1a7b   :  { %v2420_v23 = vadd.f32 %v2418_v22, %v2318_v19 }
0x1a7d   :  { %5237 = vtanh.f32 %v2420_v23 }
0x1a7e   :  { %5239 = vpow2.f32 %v4363_v32 }
0x1a87   :  { %v5238_v26 = vpop.eup %5237 }
0x1a88   :  { %2424 = vrot.lane.b32.xlu1 %v5238_v26, %s5365_s25  ;;  %v5240_v33 = vpop.eup %5239 }
0x1a89   :  { %v2407_v34 = vadd.f32 1.0, %v5240_v33 }
0x1a8b   :  { %5241 = vrcp.f32 %v2407_v34 }
0x1a8c   :  { %2540 = vrot.lane.b32.xlu1 %v2538_v27, %s5365_s25 }
0x1a95   :  { %v5242_v35 = vpop.eup %5241 }
0x1a96   :  { %v2422_v25 = vsub.f32 1.0, %v5242_v35  ;;  %v2428_v38 = vmul.f32 %v5242_v35, %v5986_v46 }
0x1adc   :  { %v2463_v24 = vpop.permute.xlu0 %2462 }
0x1add   :  { %4365 = vmatmul.mubr.msk.f32.vlgmr.msra.gmra.mrb[28].mxu1 %vm420_vm4, %v2463_v24 }
0x1ade   :  { %5000 = vmatpush1.bf16.msra.mxu1 %v5565_v39  ;;  %2756 = vmatprep.mubr.f32.mxu1 %v5364_v31 }
0x1adf   :  { %5002 = vmatprep.subr.bf16.mxu1 %v5574_v42 }
0x1ae2   :  { %5004 = vmatpush1.bf16.msra.mxu1 %v5589_v47 }
0x1ae3   :  { %5012 = vmatprep.subr.bf16.mxu1 %v5557_v36 }
0x1afa   :  { %v2425_v29 = vpop.permute.xlu1 %2424 }
0x1afb   :  { %v2427_v40 = vmul.f32 %v2425_v29, %v2422_v25 }
0x1afd   :  { %v6019_v41 = vadd.f32 %v2428_v38, %v2427_v40 }
0x1afe   :  { %v2541_v58 = vpop.permute.xlu1 %2540 }
0x1aff   :  { %2431 = vst.msk [vmem:[#allocation5 + $0x40] sm:$0xff] %vm420_vm4, %v6019_v41  ;;  %4701 = vmatmul.mubr.msk.f32.vlgmr.msra.gmra.mrb[26].mxu0 %vm420_vm4, %v6019_v41 }
0x1b00   :  { %5007 = vmatpush3.bf16.msra.mxu0 %v5662_v15  ;;  %4711 = vmatprep.mubr.msk.f32.mxu0 %vm5363_vm2, %v5364_v31 }
0x1b01   :  { %5008 = vmatprep.subr.bf16.mxu0 %v5362_v28 }
0x1b04   :  { %5010 = vmatpush3.bf16.msra.mxu0 %v5678_v20 }
0x1b05   :  { %5019 = vmatprep.subr.bf16.mxu0 %v5362_v28 }
0x1bb0   :  { %v2532_v43 = vpop.f32.mrb[28].mxu1 }
0x1bb1   :  { %v2667_v44 = vadd.f32 %v2532_v43, %v5681_v21  ;;  %v2534_v37 = vpop.f32.mrb[29].mxu1  ;;  %v2660_v50 = vadd.f32 %v2659_v49, %v2532_v43  ;;  %v2543_v60 = vadd.f32 %v2541_v58, %v2532_v43 }
0x1bb2   :  { %v2544_v6 = vadd.f32 %v2541_v58, %v2534_v37  ;;  %v2885_v37 = vld [vmem:[#allocation2 + $0x58] sm:$0xff] }
0x1bb3   :  { %2669 = vrot.lane.b32.xlu0 %v2667_v44, %s5361_s0  ;;  %v4369_v51 = vmul.f32 -1.442695, %v2660_v50 }
0x1bb5   :  { %5243 = vpow2.f32 %v4369_v51 }
0x1bbf   :  { %v5244_v52 = vpop.eup %5243 }
0x1bc0   :  { %v2664_v53 = vadd.f32 1.0, %v5244_v52 }
0x1bc2   :  { %5245 = vrcp.f32 %v2664_v53 }
0x1bcc   :  { %v5246_v54 = vpop.eup %5245 }
0x1bcd   :  { %v2679_v11 = vsub.f32 1.0, %v5246_v54  ;;  %v2685_v13 = vmul.f32 %v5246_v54, %v6006_v18 }
0x1bd2   :  { %v2614_v45 = vpop.f32.mrb[26].mxu0 }
0x1bd3   :  { %v4702_v46 = vpop.f32.mrb[27].mxu0  ;;  %2619 = vrot.lane.b32.xlu0 %v2614_v45, %s5365_s25  ;;  %v2636_v48 = vadd.f32 %v2614_v45, %v5732_v0 }
0x1bd7   :  { %2638 = vrot.lane.b32.xlu0 %v2636_v48, %s5366_s10 }
0x1c25   :  { %v2670_v55 = vpop.permute.xlu0 %2669 }
0x1c26   :  { %v2672_v57 = vmul.f32 %v5246_v54, %v2670_v55 }
0x1c28   :  { %2674 = vrot.lane.b32.xlu1 %v2672_v57, %s5361_s0 }
0x1c45   :  { %v2620_v14 = vpop.permute.xlu0 %2619 }
0x1c46   :  { %v2622_v59 = vadd.f32 %v2620_v14, %v2543_v60  ;;  %v2629_v19 = vadd.f32 %v2620_v14, %v2544_v6 }
0x1c48   :  { %v4367_v61 = vmul.f32 -1.442695, %v2622_v59  ;;  %v4368_v22 = vmul.f32 -1.442695, %v2629_v19 }
0x1c49   :  { %v2639_v2 = vpop.permute.xlu0 %2638 }
0x1c4a   :  { %5247 = vpow2.f32 %v4367_v61 }
0x1c54   :  { %v5248_v62 = vpop.eup %5247 }
0x1c55   :  { %v2626_v63 = vadd.f32 1.0, %v5248_v62 }
0x1c57   :  { %5249 = vrcp.f32 %v2626_v63 }
0x1c61   :  { %v5250_v1 = vpop.eup %5249 }
0x1c62   :  { %v2641_v56 = vmul.f32 %v5250_v1, %v2639_v2 }
0x1c64   :  { %2643 = vrot.lane.b32.xlu1 %v2641_v56, %s5361_s0 }
0x1c9a   :  { %v2675_v3 = vpop.permute.xlu1 %2674 }
0x1c9b   :  { %v2677_v4 = vadd.f32 %v2675_v3, %v2659_v49  ;;  %v2990_v3 = vld [vmem:[#allocation3 + $0x58] sm:$0xff] }
0x1c9d   :  { %5251 = vtanh.f32 %v2677_v4 }
0x1ca7   :  { %v5252_v5 = vpop.eup %5251 }
0x1ca8   :  { %2681 = vrot.lane.b32.xlu0 %v5252_v5, %s5365_s25 }
0x1cd6   :  { %v2644_v7 = vpop.permute.xlu1 %2643 }
0x1cd7   :  { %v2646_v8 = vadd.f32 %v2644_v7, %v2544_v6 }
0x1cd9   :  { %5253 = vtanh.f32 %v2646_v8 }
0x1cda   :  { %5255 = vpow2.f32 %v4368_v22 }
0x1ce3   :  { %v5254_v9 = vpop.eup %5253 }
0x1ce4   :  { %2650 = vrot.lane.b32.xlu0 %v5254_v9, %s5365_s25  ;;  %v5256_v23 = vpop.eup %5255 }
0x1ce5   :  { %v2633_v26 = vadd.f32 1.0, %v5256_v23 }
0x1ce7   :  { %5257 = vrcp.f32 %v2633_v26 }
0x1ce8   :  { %2766 = vrot.lane.b32.xlu0 %v2764_v10, %s5365_s25 }
0x1cf1   :  { %v5258_v27 = vpop.eup %5257 }
0x1cf2   :  { %v2648_v30 = vsub.f32 1.0, %v5258_v27  ;;  %v2654_v33 = vmul.f32 %v5258_v27, %v6019_v41 }
0x1d1a   :  { %v2682_v12 = vpop.permute.xlu0 %2681 }
0x1d1b   :  { %v2684_v16 = vmul.f32 %v2682_v12, %v2679_v11 }
0x1d1d   :  { %v6042_v17 = vadd.f32 %v2685_v13, %v2684_v16 }
0x1d1f   :  { %2688 = vrot.lane.b32.xlu1 %v6042_v17, %s5365_s25 }
0x1d56   :  { %v2651_v32 = vpop.permute.xlu0 %2650 }
0x1d57   :  { %v2653_v24 = vmul.f32 %v2651_v32, %v2648_v30 }
0x1d59   :  { %v6047_v34 = vadd.f32 %v2654_v33, %v2653_v24 }
0x1d5a   :  { %v2767_v40 = vpop.permute.xlu0 %2766 }
0x1d5b   :  { %2657 = vst.msk [vmem:[#allocation5 + $0x48] sm:$0xff] %vm420_vm4, %v6047_v34  ;;  %4712 = vmatmul.mubr.msk.f32.vlgmr.msra.gmra.mrb[28].mxu0 %vm420_vm4, %v6047_v34 }
0x1d5c   :  { %5021 = vmatpush3.bf16.msra.mxu0 %v5662_v15  ;;  %4722 = vmatprep.mubr.msk.f32.mxu0 %vm5363_vm2, %v5364_v31 }
0x1d5d   :  { %5022 = vmatprep.subr.bf16.mxu0 %v5362_v28 }
0x1d60   :  { %5024 = vmatpush3.bf16.msra.mxu0 %v5678_v20 }
0x1d61   :  { %5033 = vmatprep.subr.bf16.mxu0 %v5362_v28 }
0x1d91   :  { %v2689_v18 = vpop.permute.xlu1 %2688 }
0x1d92   :  { %4370 = vmatmul.mubr.msk.f32.vlgmr.msra.gmra.mrb[30].mxu1 %vm420_vm4, %v2689_v18 }
0x1d93   :  { %5014 = vmatpush1.bf16.msra.mxu1 %v5565_v39  ;;  %2982 = vmatprep.mubr.f32.mxu1 %v5364_v31 }
0x1d94   :  { %5016 = vmatprep.subr.bf16.mxu1 %v5574_v42 }
0x1d97   :  { %5018 = vmatpush1.bf16.msra.mxu1 %v5589_v47 }
0x1d98   :  { %5026 = vmatprep.subr.bf16.mxu1 %v5557_v36 }
0x1e2e   :  { %v2840_v35 = vpop.f32.mrb[28].mxu0 }
0x1e2f   :  { %v2862_v25 = vadd.f32 %v2840_v35, %v5732_v0  ;;  %v4713_v29 = vpop.f32.mrb[29].mxu0 }
0x1e31   :  { %2864 = vrot.lane.b32.xlu0 %v2862_v25, %s5366_s10 }
0x1e65   :  { %v2758_v38 = vpop.f32.mrb[30].mxu1 }
0x1e66   :  { %v2893_v41 = vadd.f32 %v2758_v38, %v5681_v21  ;;  %v2760_v43 = vpop.f32.mrb[31].mxu1  ;;  %v2886_v45 = vadd.f32 %v2885_v37, %v2758_v38  ;;  %v2769_v52 = vadd.f32 %v2767_v40, %v2758_v38 }
0x1e67   :  { %v2770_v44 = vadd.f32 %v2767_v40, %v2760_v43  ;;  %v3111_v40 = vld [vmem:[#allocation2 + $0x60] sm:$0xff] }
0x1e68   :  { %2895 = vrot.lane.b32.xlu1 %v2893_v41, %s5361_s0  ;;  %v4374_v46 = vmul.f32 -1.442695, %v2886_v45 }
0x1e6a   :  { %5259 = vpow2.f32 %v4374_v46 }
0x1e6c   :  { %2845 = vrot.lane.b32.xlu1 %v2840_v35, %s5365_s25 }
0x1e74   :  { %v5260_v36 = vpop.eup %5259 }
0x1e75   :  { %v2890_v48 = vadd.f32 1.0, %v5260_v36 }
0x1e77   :  { %5261 = vrcp.f32 %v2890_v48 }
0x1e81   :  { %v5262_v49 = vpop.eup %5261 }
0x1e82   :  { %v2905_v6 = vsub.f32 1.0, %v5262_v49  ;;  %v2911_v8 = vmul.f32 %v5262_v49, %v6042_v17 }
0x1ea3   :  { %v2865_v14 = vpop.permute.xlu0 %2864 }
0x1eda   :  { %v2896_v50 = vpop.permute.xlu1 %2895 }
0x1edb   :  { %v2898_v51 = vmul.f32 %v5262_v49, %v2896_v50 }
0x1edd   :  { %2900 = vrot.lane.b32.xlu1 %v2898_v51, %s5361_s0  ;;  %v3215_v51 = vld [vmem:[#allocation3 + $0x60] sm:$0xff] }
0x1ede   :  { %v2846_v53 = vpop.permute.xlu1 %2845 }
0x1edf   :  { %v2848_v54 = vadd.f32 %v2846_v53, %v2769_v52  ;;  %v2855_v4 = vadd.f32 %v2846_v53, %v2770_v44 }
0x1ee1   :  { %v4372_v55 = vmul.f32 -1.442695, %v2848_v54  ;;  %v4373_v5 = vmul.f32 -1.442695, %v2855_v4 }
0x1ee3   :  { %5263 = vpow2.f32 %v4372_v55 }
0x1eed   :  { %v5264_v57 = vpop.eup %5263 }
0x1eee   :  { %v2852_v58 = vadd.f32 1.0, %v5264_v57 }
0x1ef0   :  { %5265 = vrcp.f32 %v2852_v58 }
0x1efa   :  { %v5266_v60 = vpop.eup %5265 }
0x1efb   :  { %v2867_v59 = vmul.f32 %v5266_v60, %v2865_v14 }
0x1efd   :  { %2869 = vrot.lane.b32.xlu0 %v2867_v59, %s5361_s0 }
0x1f4f   :  { %v2901_v61 = vpop.permute.xlu1 %2900 }
0x1f50   :  { %v2903_v62 = vadd.f32 %v2901_v61, %v2885_v37 }
0x1f52   :  { %5267 = vtanh.f32 %v2903_v62 }
0x1f5c   :  { %v5268_v63 = vpop.eup %5267 }
0x1f5d   :  { %2907 = vrot.lane.b32.xlu1 %v5268_v63, %s5365_s25 }
0x1f6f   :  { %v2870_v1 = vpop.permute.xlu0 %2869 }
0x1f70   :  { %v2872_v2 = vadd.f32 %v2870_v1, %v2770_v44 }
0x1f72   :  { %5269 = vtanh.f32 %v2872_v2 }
0x1f73   :  { %5271 = vpow2.f32 %v4373_v5 }
0x1f7c   :  { %v5270_v56 = vpop.eup %5269 }
0x1f7d   :  { %2876 = vrot.lane.b32.xlu0 %v5270_v56, %s5365_s25  ;;  %v5272_v11 = vpop.eup %5271 }
0x1f7e   :  { %v2859_v12 = vadd.f32 1.0, %v5272_v11 }
0x1f80   :  { %5273 = vrcp.f32 %v2859_v12 }
0x1f81   :  { %2992 = vrot.lane.b32.xlu0 %v2990_v3, %s5365_s25 }
0x1f8a   :  { %v5274_v13 = vpop.eup %5273 }
0x1f8b   :  { %v2874_v16 = vsub.f32 1.0, %v5274_v13  ;;  %v2880_v22 = vmul.f32 %v5274_v13, %v6047_v34 }
0x1fcf   :  { %v2908_v7 = vpop.permute.xlu1 %2907 }
0x1fd0   :  { %v2910_v9 = vmul.f32 %v2908_v7, %v2905_v6 }
0x1fd2   :  { %v6076_v10 = vadd.f32 %v2911_v8, %v2910_v9 }
0x1fd4   :  { %2914 = vrot.lane.b32.xlu1 %v6076_v10, %s5365_s25 }
0x1fef   :  { %v2877_v19 = vpop.permute.xlu0 %2876 }
0x1ff0   :  { %v2879_v23 = vmul.f32 %v2877_v19, %v2874_v16 }
0x1ff2   :  { %v6081_v26 = vadd.f32 %v2880_v22, %v2879_v23 }
0x1ff3   :  { %v2993_v24 = vpop.permute.xlu0 %2992 }
0x1ff4   :  { %2883 = vst.msk [vmem:[#allocation5 + $0x50] sm:$0xff] %vm420_vm4, %v6081_v26  ;;  %4723 = vmatmul.mubr.msk.f32.vlgmr.msra.gmra.mrb[30].mxu0 %vm420_vm4, %v6081_v26 }
0x1ff5   :  { %5035 = vmatpush3.bf16.msra.mxu0 %v5662_v15  ;;  %4733 = vmatprep.mubr.msk.f32.mxu0 %vm5363_vm2, %v5364_v31 }
0x1ff6   :  { %5036 = vmatprep.subr.bf16.mxu0 %v5362_v28 }
0x1ff9   :  { %5038 = vmatpush3.bf16.msra.mxu0 %v5678_v20 }
0x2046   :  { %v2915_v17 = vpop.permute.xlu1 %2914 }
0x2047   :  { %4375 = vmatmul.mubr.msk.f32.vlgmr.msra.gmra.mrb[32].mxu1 %vm420_vm4, %v2915_v17 }
0x2048   :  { %5028 = vmatpush1.bf16.msra.mxu1 %v5565_v39  ;;  %3208 = vmatprep.mubr.f32.mxu1 %v5364_v31 }
0x2049   :  { %5030 = vmatprep.subr.bf16.mxu1 %v5574_v42 }
0x204c   :  { %5032 = vmatpush1.bf16.msra.mxu1 %v5589_v47 }
0x204d   :  { %5039 = vmatprep.subr.bf16.mxu1 %v5362_v28 }
0x20c7   :  { %v3066_v15 = vpop.f32.mrb[30].mxu0 }
0x20c8   :  { %3071 = vrot.lane.b32.xlu1 %v3066_v15, %s5365_s25  ;;  %v4724_v27 = vpop.f32.mrb[31].mxu0  ;;  %v3088_v30 = vadd.f32 %v3066_v15, %v5732_v0 }
0x20cc   :  { %3090 = vrot.lane.b32.xlu1 %v3088_v30, %s5366_s10  ;;  %v3421_v30 = vld [vmem:[%s6403_s12] sm:$0xff] }
0x211a   :  { %v2984_v20 = vpop.f32.mrb[32].mxu1 }
0x211b   :  { %v3119_v32 = vadd.f32 %v2984_v20, %v5681_v21  ;;  %v2986_v39 = vpop.f32.mrb[33].mxu1  ;;  %v2995_v42 = vadd.f32 %v2993_v24, %v2984_v20  ;;  %v3112_v41 = vadd.f32 %v3111_v40, %v2984_v20  ;;  %v3422_v20 = vld [vmem:[%s6403_s12 + $0x8] sm:$0xff] }
0x211c   :  { %v2996_v36 = vadd.f32 %v2993_v24, %v2986_v39  ;;  %v5045_v39 = vpack.c.bf16 %v3422_v20, %v3421_v30  ;;  %v3334_v24 = vld [vmem:[%s6405_s11] sm:$0xff] }
0x211d   :  { %3121 = vrot.lane.b32.xlu0 %v3119_v32, %s5361_s0  ;;  %v4379_v21 = vmul.f32 -1.442695, %v3112_v41  ;;  %v3417_v32 = vld [vmem:[%s6404_s2] sm:$0xff] }
0x211e   :  { %5046 = vmatprep.subr.bf16.mxu0 %v5045_v39  ;;  %v79_v41 = vld [vmem:[%s6406_s13] sm:$0xff] }
0x213a   :  { %v3072_v33 = vpop.permute.xlu1 %3071 }
0x213b   :  { %v3074_v47 = vadd.f32 %v3072_v33, %v2995_v42  ;;  %v3081_v55 = vadd.f32 %v3072_v33, %v2996_v36  ;;  %v3335_v42 = vld [vmem:[%s6405_s11 + $0x8] sm:$0xff] }
0x213c   :  { %v5040_v33 = vpack.c.bf16 %v3335_v42, %v3334_v24 }
0x213d   :  { %v4377_v34 = vmul.f32 -1.442695, %v3074_v47  ;;  %v4378_v57 = vmul.f32 -1.442695, %v3081_v55  ;;  %v3418_v47 = vld [vmem:[%s6404_s2 + $0x8] sm:$0xff] }
0x213e   :  { %v3091_v29 = vpop.permute.xlu1 %3090 }
0x213f   :  { %5275 = vpow2.f32 %v4377_v34  ;;  %v3419_v34 = vld [vmem:[%s6404_s2 + $0x10] sm:$0xff] }
0x2149   :  { %v5276_v18 = vpop.eup %5275 }
0x214a   :  { %v3078_v35 = vadd.f32 1.0, %v5276_v18  ;;  %v3420_v18 = vld [vmem:[%s6404_s2 + $0x18] sm:$0xff] }
0x214c   :  { %5277 = vrcp.f32 %v3078_v35  ;;  %v3336_v35 = vld [vmem:[%s6405_s11 + $0x10] sm:$0xff] }
0x214d   :  { %5279 = vpow2.f32 %v4379_v21  ;;  %v80_v21 = vld [vmem:[%s6406_s13 + $0x8] sm:$0xff] }
0x2156   :  { %v5278_v25 = vpop.eup %5277 }
0x2157   :  { %v3093_v38 = vmul.f32 %v5278_v25, %v3091_v29  ;;  %v5280_v43 = vpop.eup %5279  ;;  %v3337_v25 = vld [vmem:[%s6405_s11 + $0x18] sm:$0xff] }
0x2158   :  { %v3116_v44 = vadd.f32 1.0, %v5280_v43  ;;  %v6169_v43 = vpack.c.bf16 %v80_v21, %v79_v41 }
0x2159   :  { %3095 = vrot.lane.b32.xlu1 %v3093_v38, %s5361_s0  ;;  %v5043_v38 = vpack.c.bf16 %v3337_v25, %v3336_v35 }
0x215a   :  { %5281 = vrcp.f32 %v3116_v44  ;;  %v81_v44 = vld [vmem:[%s6406_s13 + $0x10] sm:$0xff] }
0x2164   :  { %v5282_v37 = vpop.eup %5281 }
0x2165   :  { %v3131_v2 = vsub.f32 1.0, %v5282_v37  ;;  %v3137_v3 = vmul.f32 %v5282_v37, %v6076_v10 }
0x218f   :  { %v3122_v45 = vpop.permute.xlu0 %3121 }
0x2190   :  { %v3124_v46 = vmul.f32 %v5282_v37, %v3122_v45  ;;  %v82_v37 = vld [vmem:[%s6406_s13 + $0x18] sm:$0xff] }
0x2191   :  { %v6179_v45 = vpack.c.bf16 %v82_v37, %v81_v44 }
0x2192   :  { %3126 = vrot.lane.b32.xlu0 %v3124_v46, %s5361_s0 }
0x21cb   :  { %v3096_v48 = vpop.permute.xlu1 %3095 }
0x21cc   :  { %v3098_v49 = vadd.f32 %v3096_v48, %v2996_v36  ;;  %v4392_v36 = vld [vmem:[%s6407_s15] ss:$0 sm:$0xff] }
0x21ce   :  { %5283 = vtanh.f32 %v3098_v49 }
0x21d8   :  { %v5284_v50 = vpop.eup %5283 }
0x21d9   :  { %3102 = vrot.lane.b32.xlu1 %v5284_v50, %s5365_s25 }
0x21dd   :  { %3217 = vrot.lane.b32.xlu1 %v3215_v51, %s5365_s25 }
0x2204   :  { %v3127_v52 = vpop.permute.xlu0 %3126 }
0x2205   :  { %v3129_v53 = vadd.f32 %v3127_v52, %v3111_v40 }
0x2207   :  { %5285 = vtanh.f32 %v3129_v53 }
0x2208   :  { %5287 = vpow2.f32 %v4378_v57 }
0x2211   :  { %v5286_v54 = vpop.eup %5285 }
0x2212   :  { %3133 = vrot.lane.b32.xlu0 %v5286_v54, %s5365_s25  ;;  %v5288_v58 = vpop.eup %5287 }
0x2213   :  { %v3085_v60 = vadd.f32 1.0, %v5288_v58 }
0x2215   :  { %5289 = vrcp.f32 %v3085_v60 }
0x221f   :  { %v5290_v14 = vpop.eup %5289 }
0x2220   :  { %v3100_v59 = vsub.f32 1.0, %v5290_v14  ;;  %v3106_v62 = vmul.f32 %v5290_v14, %v6081_v26 }
0x224b   :  { %v3103_v61 = vpop.permute.xlu1 %3102 }
0x224c   :  { %v3105_v63 = vmul.f32 %v3103_v61, %v3100_v59 }
0x224e   :  { %v6109_v1 = vadd.f32 %v3106_v62, %v3105_v63 }
0x224f   :  { %v3218_v11 = vpop.permute.xlu1 %3217 }
0x2250   :  { %3109 = vst.msk [vmem:[#allocation5 + $0x58] sm:$0xff] %vm420_vm4, %v6109_v1  ;;  %4734 = vmatmul.mubr.msk.f32.vlgmr.msra.gmra.mrb[32].mxu0 %vm420_vm4, %v6109_v1 }
0x2251   :  { %4751 = vmatprep.mubr.msk.f32.mxu0 %vm276_vm3, %v3417_v32  ;;  %5048 = vmatpush3.bf16.msra.mxu0 %v5045_v39 }
0x2252   :  { %5055 = vmatprep.subr.bf16.mxu0 %v5362_v28 }
0x2254   :  { %4752 = vmatmul.mubr.msk.f32.vlgmr.msra.gmra.mrb[34].mxu0 %vm276_vm3, %v3418_v47 }
0x2255   :  { %4754 = vmatprep.mubr.msk.f32.mxu0 %vm276_vm3, %v3419_v34  ;;  %5057 = vmatpush3.bf16.msra.mxu0 %v6169_v43 }
0x2256   :  { %5058 = vmatprep.subr.bf16.mxu0 %v5362_v28 }
0x2258   :  { %4755 = vmatmul.mubr.msk.f32.gmra.mrb[36].mxu0 %vm276_vm3, %v3420_v18 }
0x2259   :  { %4776 = vmatprep.mubr.msk.f32.mxu0 %vm5363_vm2, %v5364_v31  ;;  %5060 = vmatpush3.bf16.msra.mxu0 %v6179_v45 }
0x225a   :  { %5067 = vmatprep.subr.bf16.mxu0 %v5362_v28 }
0x2284   :  { %v3134_v56 = vpop.permute.xlu0 %3133 }
0x2285   :  { %v3136_v4 = vmul.f32 %v3134_v56, %v3131_v2 }
0x2287   :  { %v3138_v5 = vadd.f32 %v3137_v3, %v3136_v4  ;;  %v4384_v4 = vld [vmem:[%s6408_s14] ss:$0 sm:$0xff] }
0x2289   :  { %3140 = vrot.lane.b32.xlu0 %v3138_v5, %s5365_s25 }
0x22fb   :  { %v3141_v6 = vpop.permute.xlu0 %3140 }
0x22fc   :  { %4380 = vmatmul.mubr.msk.f32.vlgmr.msra.gmra.mrb[34].mxu1 %vm420_vm4, %v3141_v6 }
0x22fd   :  { %4744 = vmatprep.mubr.msk.f32.mxu1 %vm5363_vm2, %v5364_v31  ;;  %5041 = vmatpush3.bf16.msra.mxu1 %v5040_v33 }
0x22fe   :  { %5042 = vmatprep.subr.bf16.mxu1 %v5362_v28 }
0x2301   :  { %5044 = vmatpush3.bf16.msra.mxu1 %v5043_v38 }
0x2302   :  { %5049 = vmatprep.subr.bf16.mxu1 %v5362_v28 }
0x2323   :  { %v3291_v7 = vpop.f32.mrb[32].mxu0 }
0x2324   :  { %v3313_v8 = vadd.f32 %v3291_v7, %v5732_v0  ;;  %3296 = vrot.lane.b32.xlu0 %v3291_v7, %s5365_s25  ;;  %v4735_v9 = vpop.f32.mrb[33].mxu0 }
0x2326   :  { %3315 = vrot.lane.b32.xlu1 %v3313_v8, %s5366_s10 }
0x2327   :  { %v4753_v50 = vpop.f32.mrb[34].mxu0 }
0x2328   :  { %3521 = vst.msk [vmem:[#allocation4 + $0x8] sm:$0xff] %vm241_vm1, %v4753_v50  ;;  %v3501_v51 = vpop.f32.mrb[35].mxu0  ;;  %v3970_v50 = vld [vmem:[%s6409_s16 + $0x10] sm:$0xff] }
0x2329   :  { %3520 = vst.msk [vmem:[#allocation4] sm:$0xff] %vm241_vm1, %v3501_v51  ;;  %v3971_v51 = vld [vmem:[%s6409_s16 + $0x18] sm:$0xff] }
0x232b   :  { %v4756_v53 = vpop.f32.mrb[36].mxu0 }
0x232c   :  { %3523 = vst.msk [vmem:[#allocation4 + $0x18] sm:$0xff] %vm241_vm1, %v4756_v53  ;;  %v3511_v55 = vpop.f32.mrb[37].mxu0  ;;  %v5077_v53 = vpack.c.bf16 %v3971_v51, %v3970_v50 }
0x232d   :  { %3522 = vst.msk [vmem:[#allocation4 + $0x10] sm:$0xff] %vm241_vm1, %v3511_v55  ;;  %v3964_v55 = vld [vmem:[#allocation5 + $0x48] sm:$0xff] }
0x232f   :  { %v3640_v42 = vld [vmem:[#allocation4 + $0x8] sm:$0xff] }
0x2330   :  { %v3524_v6 = vld [vmem:[#allocation4] sm:$0xff] }
0x2396   :  { %v3297_v16 = vpop.permute.xlu0 %3296 }
0x2398   :  { %v3316_v27 = vpop.permute.xlu1 %3315 }
0x23cf   :  { %v3210_v10 = vpop.f32.mrb[34].mxu1 }
0x23d0   :  { %v3220_v12 = vadd.f32 %v3218_v11, %v3210_v10  ;;  %v3212_v13 = vpop.f32.mrb[35].mxu1 }
0x23d1   :  { %v3221_v19 = vadd.f32 %v3218_v11, %v3212_v13 }
0x23d2   :  { %v3299_v22 = vadd.f32 %v3297_v16, %v3220_v12 }
0x23d3   :  { %v3306_v48 = vadd.f32 %v3297_v16, %v3221_v19 }
0x23d4   :  { %v4382_v23 = vmul.f32 -1.442695, %v3299_v22 }
0x23d5   :  { %v4383_v49 = vmul.f32 -1.442695, %v3306_v48  ;;  %v3969_v48 = vld [vmem:[%s6409_s16 + $0x8] sm:$0xff] }
0x23d6   :  { %5291 = vpow2.f32 %v4382_v23 }
0x23e0   :  { %v5292_v26 = vpop.eup %5291 }
0x23e1   :  { %v3303_v17 = vadd.f32 1.0, %v5292_v26 }
0x23e3   :  { %5293 = vrcp.f32 %v3303_v17 }
0x23ed   :  { %v5294_v15 = vpop.eup %5293 }
0x23ee   :  { %v3318_v0 = vmul.f32 %v5294_v15, %v3316_v27 }
0x23f0   :  { %3320 = vrot.lane.b32.xlu0 %v3318_v0, %s5361_s0 }
0x23f4   :  { %3608 = vrot.lane.b32.xlu0 %v4392_v36, %s5361_s0  ;;  %v3968_v36 = vld [vmem:[%s6409_s16] sm:$0xff] }
0x2462   :  { %v3321_v29 = vpop.permute.xlu0 %3320 }
0x2463   :  { %v3323_v40 = vadd.f32 %v3321_v29, %v3221_v19 }
0x2465   :  { %5295 = vtanh.f32 %v3323_v40 }
0x2466   :  { %5297 = vpow2.f32 %v4383_v49  ;;  %v5074_v49 = vpack.c.bf16 %v3969_v48, %v3968_v36 }
0x246f   :  { %v5296_v46 = vpop.eup %5295 }
0x2470   :  { %3327 = vrot.lane.b32.xlu1 %v5296_v46, %s5365_s25  ;;  %v5298_v52 = vpop.eup %5297 }
0x2471   :  { %v3310_v54 = vadd.f32 1.0, %v5298_v52 }
0x2473   :  { %5299 = vrcp.f32 %v3310_v54  ;;  %v3963_v54 = vld [vmem:[#allocation5 + $0x40] sm:$0xff] }
0x247d   :  { %v5300_v57 = vpop.eup %5299 }
0x247e   :  { %v3325_v58 = vsub.f32 1.0, %v5300_v57  ;;  %v3331_v14 = vmul.f32 %v5300_v57, %v6109_v1  ;;  %v6208_v1 = vpop.permute.xlu0 %3608  ;;  %v3965_v57 = vld [vmem:[#allocation5 + $0x50] sm:$0xff] }
0x24e2   :  { %v3328_v60 = vpop.permute.xlu1 %3327 }
0x24e3   :  { %v3330_v59 = vmul.f32 %v3328_v60, %v3325_v58 }
0x24e5   :  { %v3332_v61 = vadd.f32 %v3331_v14, %v3330_v59 }
0x24e7   :  { %3333 = vst.msk [vmem:[#allocation5 + $0x60] sm:$0xff] %vm420_vm4, %v3332_v61  ;;  %4745 = vmatmul.mubr.msk.f32.vlgmr.msra.gmra.mrb[36].mxu1 %vm420_vm4, %v3332_v61 }
0x24e8   :  { %5051 = vmatpush3.bf16.msra.mxu1 %v6169_v43  ;;  %4765 = vmatprep.mubr.msk.f32.mxu1 %vm5363_vm2, %v5364_v31 }
0x24e9   :  { %5052 = vmatprep.subr.bf16.mxu1 %v5362_v28 }
0x24ec   :  { %5054 = vmatpush3.bf16.msra.mxu1 %v6179_v45 }
0x24ed   :  { %5061 = vmatprep.subr.bf16.mxu1 %v5362_v28 }
0x24ee   :  { %v3967_v58 = vld [vmem:[#allocation5 + $0x60] sm:$0xff] }
0x24ef   :  { %4766 = vmatmul.mubr.msk.f32.vlgmr.msra.gmra.mrb[38].mxu1 %vm420_vm4, %v3332_v61 }
0x24f0   :  { %5063 = vmatpush3.bf16.msra.mxu1 %v6169_v43  ;;  %4787 = vmatprep.mubr.msk.f32.mxu1 %vm5363_vm2, %v5364_v31 }
0x24f1   :  { %5064 = vmatprep.subr.bf16.mxu1 %v5362_v28 }
0x24f4   :  { %5066 = vmatpush3.bf16.msra.mxu1 %v6179_v45 }
0x24f5   :  { %5073 = vmatprep.subr.bf16.mxu1 %v5362_v28 }
0x25ba   :  { %v3413_v62 = vpop.f32.mrb[36].mxu1 }
0x25bb   :  { %v4746_v63 = vpop.f32.mrb[37].mxu1  ;;  %v6215_v5 = vadd.f32 %v4384_v4, %v3413_v62 }
0x25bc   :  { %v6275_v63 = vld [vmem:[%s6410_s17] ss:$0 sm:$0xff] }
0x25bd   :  { %v3525_v7 = vadd.f32 %v3524_v6, %v6215_v5  ;;  %v3641_v33 = vadd.f32 %v3640_v42, %v6215_v5 }
0x25c2   :  { %v3592_v2 = vpop.f32.mrb[38].mxu1 }
0x25c3   :  { %v3611_v56 = vadd.f32 %v6208_v1, %v3592_v2  ;;  %v4767_v3 = vpop.f32.mrb[39].mxu1  ;;  %v3596_v8 = vadd.f32 %v3592_v2, %v3525_v7 }
0x25c5   :  { %3613 = vrot.lane.b32.xlu1 %v3611_v56, %s5361_s0  ;;  %v4391_v9 = vmul.f32 -1.442695, %v3596_v8 }
0x25c7   :  { %5301 = vpow2.f32 %v4391_v9 }
0x25d1   :  { %v5302_v11 = vpop.eup %5301 }
0x25d2   :  { %v3600_v10 = vadd.f32 1.0, %v5302_v11 }
0x25d4   :  { %5303 = vrcp.f32 %v3600_v10  ;;  %v3748_v10 = vld [vmem:[#allocation4 + $0x10] sm:$0xff] }
0x25de   :  { %v5304_v12 = vpop.eup %5303 }
0x25df   :  { %v3623_v17 = vsub.f32 1.0, %v5304_v12 }
0x2637   :  { %v3614_v13 = vpop.permute.xlu1 %3613 }
0x2638   :  { %v3616_v16 = vmul.f32 %v5304_v12, %v3614_v13 }
0x263a   :  { %3618 = vrot.lane.b32.xlu0 %v3616_v16, %s5361_s0 }
0x263e   :  { %3629 = vrot.lane.b32.xlu0 %v3332_v61, %s5366_s10 }
0x26ac   :  { %v3619_v19 = vpop.permute.xlu0 %3618 }
0x26ad   :  { %v3621_v22 = vadd.f32 %v3619_v19, %v3525_v7 }
0x26af   :  { %5305 = vtanh.f32 %v3621_v22 }
0x26b0   :  { %v3630_v26 = vpop.permute.xlu0 %3629 }
0x26b1   :  { %v3632_v27 = vmul.f32 %v5304_v12, %v3630_v26  ;;  %v3749_v12 = vadd.f32 %v3748_v10, %v6215_v5 }
0x26b9   :  { %v5306_v23 = vpop.eup %5305 }
0x26ba   :  { %3625 = vrot.lane.b32.xlu1 %v5306_v23, %s5365_s25 }
0x272c   :  { %v3626_v15 = vpop.permute.xlu1 %3625 }
0x272d   :  { %v3628_v0 = vmul.f32 %v3626_v15, %v3623_v17 }
0x272f   :  { %v3633_v30 = vadd.f32 %v3632_v27, %v3628_v0  ;;  %v4143_v0 = vld [vmem:[%s6411_s18] sm:$0xff] }
0x2731   :  { %3635 = vrot.lane.b32.xlu1 %v3633_v30, %s5365_s25 }
0x27a3   :  { %v3636_v20 = vpop.permute.xlu1 %3635 }
0x27a4   :  { %3638 = vst.msk [vmem:[#allocation6] sm:$0xff] %vm420_vm4, %v3636_v20  ;;  %4777 = vmatmul.mubr.msk.f32.vlgmr.msra.gmra.mrb[38].mxu0 %vm420_vm4, %v3636_v20 }
0x27a5   :  { %5069 = vmatpush3.bf16.msra.mxu0 %v6169_v43  ;;  %4798 = vmatprep.mubr.msk.f32.mxu0 %vm5363_vm2, %v5364_v31 }
0x27a6   :  { %5070 = vmatprep.subr.bf16.mxu0 %v5362_v28 }
0x27a9   :  { %5072 = vmatpush3.bf16.msra.mxu0 %v6179_v45 }
0x2877   :  { %v3710_v32 = vpop.f32.mrb[38].mxu0 }
0x2878   :  { %v3721_v39 = vadd.f32 %v3710_v32, %v6208_v1  ;;  %v4778_v24 = vpop.f32.mrb[39].mxu0  ;;  %v3714_v47 = vadd.f32 %v3710_v32, %v3641_v33 }
0x287a   :  { %3723 = vrot.lane.b32.xlu0 %v3721_v39, %s5361_s0  ;;  %v4394_v34 = vmul.f32 -1.442695, %v3714_v47 }
0x287c   :  { %5307 = vpow2.f32 %v4394_v34  ;;  %v4145_v34 = vld [vmem:[%s6411_s18 + $0x10] sm:$0xff] }
0x2886   :  { %v5308_v18 = vpop.eup %5307 }
0x2887   :  { %v3718_v35 = vadd.f32 1.0, %v5308_v18  ;;  %v4146_v18 = vld [vmem:[%s6411_s18 + $0x18] sm:$0xff] }
0x2889   :  { %5309 = vrcp.f32 %v3718_v35  ;;  %v5083_v35 = vpack.c.bf16 %v4146_v18, %v4145_v34 }
0x2893   :  { %v5310_v25 = vpop.eup %5309 }
0x2894   :  { %v3733_v43 = vsub.f32 1.0, %v5310_v25  ;;  %v3739_v37 = vmul.f32 %v5310_v25, %v3633_v30  ;;  %v4144_v30 = vld [vmem:[%s6411_s18 + $0x8] sm:$0xff] }
0x2895   :  { %v5079_v20 = vpack.c.bf16 %v4144_v30, %v4143_v0 }
0x2897   :  { %5080 = vmatprep.subr.bf16.mxu0 %v5079_v20 }
0x28ec   :  { %v3724_v29 = vpop.permute.xlu0 %3723 }
0x28ed   :  { %v3726_v38 = vmul.f32 %v5310_v25, %v3724_v29  ;;  %v4139_v29 = vld [vmem:[#allocation6] sm:$0xff] }
0x28ef   :  { %3728 = vrot.lane.b32.xlu1 %v3726_v38, %s5361_s0 }
0x2961   :  { %v3729_v40 = vpop.permute.xlu1 %3728 }
0x2962   :  { %v3731_v41 = vadd.f32 %v3729_v40, %v3641_v33 }
0x2964   :  { %5311 = vtanh.f32 %v3731_v41 }
0x296e   :  { %v5312_v21 = vpop.eup %5311 }
0x296f   :  { %3735 = vrot.lane.b32.xlu0 %v5312_v21, %s5365_s25 }
0x29e1   :  { %v3736_v44 = vpop.permute.xlu0 %3735 }
0x29e2   :  { %v3738_v45 = vmul.f32 %v3736_v44, %v3733_v43 }
0x29e4   :  { %v6234_v46 = vadd.f32 %v3739_v37, %v3738_v45  ;;  %v3856_v45 = vld [vmem:[#allocation4 + $0x18] sm:$0xff] }
0x29e6   :  { %3742 = vrot.lane.b32.xlu1 %v6234_v46, %s5365_s25 }
0x2a58   :  { %v3743_v52 = vpop.permute.xlu1 %3742 }
0x2a59   :  { %3746 = vst.msk [vmem:[#allocation6 + $0x8] sm:$0xff] %vm420_vm4, %v3743_v52  ;;  %4788 = vmatmul.mubr.msk.f32.vlgmr.msra.gmra.mrb[40].mxu1 %vm420_vm4, %v3743_v52 }
0x2a5a   :  { %5075 = vmatpush3.bf16.msra.mxu1 %v5074_v49  ;;  %4809 = vmatprep.mubr.msk.f32.mxu1 %vm5363_vm2, %v5364_v31 }
0x2a5b   :  { %5076 = vmatprep.subr.bf16.mxu1 %v5362_v28  ;;  %v3966_v28 = vld [vmem:[#allocation5 + $0x58] sm:$0xff] }
0x2a5e   :  { %5078 = vmatpush3.bf16.msra.mxu1 %v5077_v53 }
0x2a60   :  { %v4140_v38 = vld [vmem:[#allocation6 + $0x8] sm:$0xff] }
0x2a61   :  { %4810 = vmatmul.mubr.msk.f32.vlgmr.msra.gmra.mrb[42].mxu1 %vm420_vm4, %v3963_v54 }
0x2a62   :  { %4812 = vmatprep.mubr.msk.f32.mxu1 %vm5363_vm2, %v5364_v31 }
0x2a65   :  { %4813 = vmatmul.mubr.msk.f32.gmra.mrb[44].mxu1 %vm420_vm4, %v3964_v55 }
0x2a66   :  { %4815 = vmatprep.mubr.msk.f32.mxu1 %vm5363_vm2, %v5364_v31 }
0x2a69   :  { %4816 = vmatmul.mubr.msk.f32.gmra.mrb[46].mxu1 %vm420_vm4, %v3965_v57 }
0x2a6a   :  { %4818 = vmatprep.mubr.msk.f32.mxu1 %vm5363_vm2, %v5364_v31 }
0x2a6d   :  { %4819 = vmatmul.mubr.msk.f32.gmra.mrb[48].mxu1 %vm420_vm4, %v3966_v28 }
0x2a6e   :  { %4821 = vmatprep.mubr.msk.f32.mxu1 %vm5363_vm2, %v5364_v31 }
0x2a71   :  { %4822 = vmatmul.mubr.msk.f32.gmra.mrb[50].mxu1 %vm420_vm4, %v3967_v58  ;;  %v4405_v58 = vld [vmem:[%s6412_s19] ss:$0 sm:$0xff] }
0x2b2c   :  { %v3818_v60 = vpop.f32.mrb[40].mxu1 }
0x2b2d   :  { %v3829_v14 = vadd.f32 %v3818_v60, %v6208_v1  ;;  %v4789_v59 = vpop.f32.mrb[41].mxu1  ;;  %v3822_v13 = vadd.f32 %v3818_v60, %v3749_v12 }
0x2b2f   :  { %3831 = vrot.lane.b32.xlu0 %v3829_v14, %s5361_s0  ;;  %v4396_v16 = vmul.f32 -1.442695, %v3822_v13 }
0x2b31   :  { %5313 = vpow2.f32 %v4396_v16 }
0x2b34   :  { %v6270_v61 = vpop.f32.mrb[42].mxu1 }
0x2b35   :  { %v4811_v62 = vpop.f32.mrb[43].mxu1 }
0x2b38   :  { %v4065_v2 = vpop.f32.mrb[44].mxu1 }
0x2b39   :  { %v6278_v31 = vadd.f32 %v6275_v63, %v4065_v2  ;;  %v4814_v56 = vpop.f32.mrb[45].mxu1 }
0x2b3b   :  { %v5314_v19 = vpop.eup %5313 }
0x2b3c   :  { %v6280_v3 = vpop.f32.mrb[46].mxu1  ;;  %v3826_v22 = vadd.f32 1.0, %v5314_v19 }
0x2b3d   :  { %v4817_v4 = vpop.f32.mrb[47].mxu1  ;;  %v4071_v57 = vadd.f32 %v6275_v63, %v6280_v3 }
0x2b3e   :  { %5315 = vrcp.f32 %v3826_v22 }
0x2b40   :  { %v6282_v6 = vpop.f32.mrb[48].mxu1 }
0x2b41   :  { %v4820_v7 = vpop.f32.mrb[49].mxu1  ;;  %v4076_v28 = vadd.f32 %v6275_v63, %v6282_v6 }
0x2b44   :  { %v4080_v8 = vpop.f32.mrb[50].mxu1 }
0x2b45   :  { %v6285_v9 = vadd.f32 %v6275_v63, %v4080_v8  ;;  %v4823_v11 = vpop.f32.mrb[51].mxu1 }
0x2b48   :  { %v5316_v23 = vpop.eup %5315 }
0x2b49   :  { %v3841_v39 = vsub.f32 1.0, %v5316_v23  ;;  %v3847_v42 = vmul.f32 %v5316_v23, %v6234_v46  ;;  %v3857_v46 = vadd.f32 %v3856_v45, %v6215_v5  ;;  %v4061_v5 = vadd.f32 %v6275_v63, %v6270_v61 }
0x2ba1   :  { %v3832_v26 = vpop.permute.xlu0 %3831 }
0x2ba2   :  { %v3834_v17 = vmul.f32 %v5316_v23, %v3832_v26 }
0x2ba4   :  { %3836 = vrot.lane.b32.xlu1 %v3834_v17, %s5361_s0 }
0x2c16   :  { %v3837_v15 = vpop.permute.xlu1 %3836 }
0x2c17   :  { %v3839_v27 = vadd.f32 %v3837_v15, %v3749_v12 }
0x2c19   :  { %5317 = vtanh.f32 %v3839_v27 }
0x2c23   :  { %v5318_v32 = vpop.eup %5317 }
0x2c24   :  { %3843 = vrot.lane.b32.xlu0 %v5318_v32, %s5365_s25 }
0x2c96   :  { %v3844_v24 = vpop.permute.xlu0 %3843 }
0x2c97   :  { %v3846_v33 = vmul.f32 %v3844_v24, %v3841_v39 }
0x2c99   :  { %v3848_v47 = vadd.f32 %v3847_v42, %v3846_v33 }
0x2c9b   :  { %3850 = vrot.lane.b32.xlu1 %v3848_v47, %s5365_s25 }
0x2d0d   :  { %v3851_v25 = vpop.permute.xlu1 %3850 }
0x2d0e   :  { %3854 = vst.msk [vmem:[#allocation6 + $0x10] sm:$0xff] %vm420_vm4, %v3851_v25  ;;  %4799 = vmatmul.mubr.msk.f32.vlgmr.msra.gmra.mrb[40].mxu0 %vm420_vm4, %v3851_v25 }
0x2d0f   :  { %5082 = vmatpush3.bf16.msra.mxu0 %v5079_v20  ;;  %4832 = vmatprep.mubr.msk.f32.mxu0 %vm420_vm4, %v4139_v29 }
0x2d10   :  { %5084 = vmatprep.subr.bf16.mxu0 %v5083_v35 }
0x2d13   :  { %5086 = vmatpush3.bf16.msra.mxu0 %v5083_v35 }
0x2d15   :  { %v4141_v40 = vld [vmem:[#allocation6 + $0x10] sm:$0xff] }
0x2d16   :  { %4833 = vmatmul.mubr.msk.f32.vlgmr.msra.gmra.mrb[42].mxu0 %vm420_vm4, %v4140_v38 }
0x2d17   :  { %4835 = vmatprep.mubr.msk.f32.mxu0 %vm420_vm4, %v4141_v40 }
0x2de1   :  { %v3926_v41 = vpop.f32.mrb[40].mxu0 }
0x2de2   :  { %v3937_v21 = vadd.f32 %v3926_v41, %v6208_v1  ;;  %v4800_v43 = vpop.f32.mrb[41].mxu0  ;;  %v3930_v36 = vadd.f32 %v3926_v41, %v3857_v46 }
0x2de4   :  { %3939 = vrot.lane.b32.xlu0 %v3937_v21, %s5361_s0  ;;  %v4398_v48 = vmul.f32 -1.442695, %v3930_v36 }
0x2de6   :  { %5319 = vpow2.f32 %v4398_v48 }
0x2de9   :  { %v4834_v44 = vpop.f32.mrb[42].mxu0 }
0x2dea   :  { %v4232_v37 = vpop.f32.mrb[43].mxu0  ;;  %v4238_v56 = vadd.f32 %v4834_v44, %v4405_v58 }
0x2deb   :  { %v4233_v60 = vadd.f32 %v4405_v58, %v4232_v37 }
0x2df0   :  { %v5320_v49 = vpop.eup %5319 }
0x2df1   :  { %v3934_v50 = vadd.f32 1.0, %v5320_v49 }
0x2df3   :  { %5321 = vrcp.f32 %v3934_v50 }
0x2dfd   :  { %v5322_v51 = vpop.eup %5321 }
0x2dfe   :  { %v3949_v14 = vsub.f32 1.0, %v5322_v51  ;;  %v3955_v62 = vmul.f32 %v5322_v51, %v3848_v47 }
0x2e56   :  { %v3940_v52 = vpop.permute.xlu0 %3939 }
0x2e57   :  { %v3942_v53 = vmul.f32 %v5322_v51, %v3940_v52 }
0x2e59   :  { %3944 = vrot.lane.b32.xlu1 %v3942_v53, %s5361_s0 }
0x2ecb   :  { %v3945_v1 = vpop.permute.xlu1 %3944 }
0x2ecc   :  { %v3947_v54 = vadd.f32 %v3945_v1, %v3857_v46 }
0x2ece   :  { %5323 = vtanh.f32 %v3947_v54 }
0x2ed8   :  { %v5324_v55 = vpop.eup %5323 }
0x2ed9   :  { %3951 = vrot.lane.b32.xlu0 %v5324_v55, %s5365_s25 }
0x2ef8   :  { %4084 = vmax.xlane.f32.xlu0 %v4061_v5 }
0x2efc   :  { %4088 = vmax.xlane.f32.xlu0 %v4071_v57 }
0x2f00   :  { %4090 = vmax.xlane.f32.xlu0 %v4076_v28 }
0x2f04   :  { %4251 = vmax.xlane.f32.xlu0 %v4233_v60 }
0x2f4b   :  { %v3952_v59 = vpop.permute.xlu0 %3951 }
0x2f4c   :  { %v3954_v2 = vmul.f32 %v3952_v59, %v3949_v14 }
0x2f4e   :  { %v3956_v61 = vadd.f32 %v3955_v62, %v3954_v2 }
0x2f50   :  { %3958 = vrot.lane.b32.xlu1 %v3956_v61, %s5365_s25 }
0x2f74   :  { %4086 = vmax.xlane.f32.xlu1 %v6278_v31 }
0x2f78   :  { %4092 = vmax.xlane.f32.xlu1 %v6285_v9 }
0x2f7c   :  { %4253 = vmax.xlane.f32.xlu1 %v4238_v56 }
0x2f85   :  { %v4085_v4 = vpop.xlane.xlu0 %4084 }
0x2f86   :  { %v6331_v10 = vsub.f32 %v4061_v5, %v4085_v4 }
0x2f88   :  { %v4099_v19 = vmul.f32 1.442695, %v6331_v10 }
0x2f89   :  { %v4089_v6 = vpop.xlane.xlu0 %4088 }
0x2f8a   :  { %v6337_v22 = vsub.f32 %v4071_v57, %v4089_v6 }
0x2f8d   :  { %v4091_v8 = vpop.xlane.xlu0 %4090 }
0x2f8e   :  { %v6333_v12 = vsub.f32 %v4076_v28, %v4091_v8 }
0x2f90   :  { %v4105_v26 = vmul.f32 1.442695, %v6333_v12 }
0x2f91   :  { %v4252_v23 = vpop.xlane.xlu0 %4251 }
0x2f92   :  { %v6340_v17 = vsub.f32 %v4233_v60, %v4252_v23 }
0x2f94   :  { %v4263_v0 = vmul.f32 1.442695, %v6340_v17 }
0x2fc2   :  { %v3959_v63 = vpop.permute.xlu1 %3958 }
0x2fc3   :  { %3962 = vst.msk [vmem:[#allocation6 + $0x18] sm:$0xff] %vm420_vm4, %v3959_v63 }
0x2fca   :  { %v4142_v3 = vld [vmem:[#allocation6 + $0x18] sm:$0xff] }
0x2fcb   :  { %4836 = vmatmul.mubr.msk.f32.gmra.mrb[44].mxu0 %vm420_vm4, %v4142_v3 }
0x3001   :  { %v4087_v7 = vpop.xlane.xlu1 %4086 }
0x3002   :  { %v6329_v11 = vsub.f32 %v6278_v31, %v4087_v7  ;;  %v4103_v31 = vmul.f32 1.442695, %v6337_v22 }
0x3004   :  { %v4101_v13 = vmul.f32 1.442695, %v6329_v11 }
0x3005   :  { %v4093_v16 = vpop.xlane.xlu1 %4092 }
0x3006   :  { %5325 = vpow2.f32 %v4101_v13  ;;  %v6344_v15 = vsub.f32 %v6285_v9, %v4093_v16 }
0x3007   :  { %5327 = vpow2.f32 %v4099_v19 }
0x3008   :  { %5329 = vpow2.f32 %v4105_v26  ;;  %v4107_v20 = vmul.f32 1.442695, %v6344_v15 }
0x3009   :  { %v4254_v27 = vpop.xlane.xlu1 %4253  ;;  %5331 = vpow2.f32 %v4103_v31 }
0x300a   :  { %v6348_v32 = vsub.f32 %v4238_v56, %v4254_v27  ;;  %5333 = vpow2.f32 %v4263_v0 }
0x300b   :  { %5335 = vpow2.f32 %v4107_v20 }
0x300c   :  { %v4265_v9 = vmul.f32 1.442695, %v6348_v32 }
0x300e   :  { %5337 = vpow2.f32 %v4265_v9 }
0x3010   :  { %v5326_v33 = vpop.eup %5325 }
0x3011   :  { %v5328_v47 = vpop.eup %5327 }
0x3012   :  { %v5330_v34 = vpop.eup %5329 }
0x3013   :  { %v5332_v18 = vpop.eup %5331 }
0x3014   :  { %v5334_v35 = vpop.eup %5333 }
0x3015   :  { %v5336_v25 = vpop.eup %5335 }
0x3018   :  { %v5338_v29 = vpop.eup %5337 }
0x309e   :  { %v4837_v30 = vpop.f32.mrb[44].mxu0 }
0x309f   :  { %v4248_v39 = vadd.f32 %v4837_v30, %v4405_v58  ;;  %v4242_v24 = vpop.f32.mrb[45].mxu0 }
0x30a0   :  { %v4243_v42 = vadd.f32 %v4405_v58, %v4242_v24 }
0x30a1   :  { %4257 = vmax.xlane.f32.xlu1 %v4248_v39 }
0x30a2   :  { %4255 = vmax.xlane.f32.xlu0 %v4243_v42 }
0x30a5   :  { %4111 = vadd.xlane.f32.xlu1 %v5326_v33 }
0x30a6   :  { %4109 = vadd.xlane.f32.xlu0 %v5328_v47 }
0x30a9   :  { %4115 = vadd.xlane.f32.xlu1 %v5330_v34 }
0x30aa   :  { %4113 = vadd.xlane.f32.xlu0 %v5332_v18 }
0x30ad   :  { %4271 = vadd.xlane.f32.xlu1 %v5334_v35 }
0x30ae   :  { %4117 = vadd.xlane.f32.xlu0 %v5336_v25 }
0x30b2   :  { %4273 = vadd.xlane.f32.xlu0 %v5338_v29 }
0x312e   :  { %v4258_v38 = vpop.xlane.xlu1 %4257 }
0x312f   :  { %v6351_v40 = vsub.f32 %v4248_v39, %v4258_v38  ;;  %v4256_v41 = vpop.xlane.xlu0 %4255 }
0x3130   :  { %v6353_v21 = vsub.f32 %v4243_v42, %v4256_v41 }
0x3131   :  { %v4269_v43 = vmul.f32 1.442695, %v6351_v40 }
0x3132   :  { %v4267_v44 = vmul.f32 1.442695, %v6353_v21  ;;  %v4112_v37 = vpop.xlane.xlu1 %4111 }
0x3133   :  { %5339 = vpow2.f32 %v4269_v43  ;;  %v4110_v45 = vpop.xlane.xlu0 %4109 }
0x3134   :  { %5341 = vpow2.f32 %v4267_v44 }
0x3135   :  { %5343 = vlog2.f32 %v4112_v37 }
0x3136   :  { %5345 = vlog2.f32 %v4110_v45  ;;  %v4116_v46 = vpop.xlane.xlu1 %4115 }
0x3137   :  { %5347 = vlog2.f32 %v4116_v46  ;;  %v4114_v36 = vpop.xlane.xlu0 %4113 }
0x3138   :  { %5349 = vlog2.f32 %v4114_v36 }
0x313a   :  { %v4272_v48 = vpop.xlane.xlu1 %4271 }
0x313b   :  { %5351 = vlog2.f32 %v4272_v48  ;;  %v4118_v49 = vpop.xlane.xlu0 %4117 }
0x313c   :  { %5353 = vlog2.f32 %v4118_v49 }
0x313d   :  { %v5340_v50 = vpop.eup %5339 }
0x313e   :  { %v5342_v51 = vpop.eup %5341  ;;  %4277 = vadd.xlane.f32.xlu0 %v5340_v50 }
0x313f   :  { %v5344_v52 = vpop.eup %5343  ;;  %4275 = vadd.xlane.f32.xlu1 %v5342_v51  ;;  %v4274_v53 = vpop.xlane.xlu0 %4273 }
0x3140   :  { %v5346_v1 = vpop.eup %5345  ;;  %v4122_v54 = vmul.f32 0.6931472, %v5344_v52  ;;  %5355 = vlog2.f32 %v4274_v53 }
0x3141   :  { %v5348_v55 = vpop.eup %5347  ;;  %v4120_v5 = vmul.f32 0.6931472, %v5346_v1 }
0x3142   :  { %v5350_v57 = vpop.eup %5349  ;;  %v4130_v28 = vsub.f32 %v6329_v11, %v4122_v54  ;;  %v4126_v58 = vmul.f32 0.6931472, %v5348_v55 }
0x3143   :  { %v4129_v60 = vsub.f32 %v6331_v10, %v4120_v5  ;;  %v4124_v14 = vmul.f32 0.6931472, %v5350_v57 }
0x3144   :  { %4135 = vst [vmem:[%s6413_s20 + $0x8] sm:$0xff] %v4130_v28  ;;  %v4132_v59 = vsub.f32 %v6333_v12, %v4126_v58 }
0x3145   :  { %v5352_v62 = vpop.eup %5351  ;;  %4134 = vst [vmem:[%s6413_s20] sm:$0xff] %v4129_v60  ;;  %v4131_v2 = vsub.f32 %v6337_v22, %v4124_v14 }
0x3146   :  { %v5354_v61 = vpop.eup %5353  ;;  %4137 = vst [vmem:[%s6413_s20 + $0x18] sm:$0xff] %v4132_v59  ;;  %v4280_v56 = vmul.f32 0.6931472, %v5352_v62 }
0x3147   :  { %4136 = vst [vmem:[%s6413_s20 + $0x10] sm:$0xff] %v4131_v2  ;;  %v4128_v63 = vmul.f32 0.6931472, %v5354_v61 }
0x3148   :  { %v4287_v3 = vsub.f32 %v6340_v17, %v4280_v56 }
0x3149   :  { %v4133_v4 = vsub.f32 %v6344_v15, %v4128_v63 }
0x314a   :  { %v5356_v6 = vpop.eup %5355  ;;  %4291 = vst [vmem:[%s6414_s21] sm:$0xff] %v4287_v3 }
0x314b   :  { %4138 = vst [vmem:[%s6413_s20 + $0x20] sm:$0xff] %v4133_v4  ;;  %v4282_v7 = vmul.f32 0.6931472, %v5356_v6 }
0x314d   :  { %v4288_v8 = vsub.f32 %v6348_v32, %v4282_v7 }
0x314f   :  { %4292 = vst [vmem:[%s6414_s21 + $0x8] sm:$0xff] %v4288_v8 }
0x31cb   :  { %v4278_v11 = vpop.xlane.xlu0 %4277 }
0x31cc   :  { %5357 = vlog2.f32 %v4278_v11  ;;  %v4276_v10 = vpop.xlane.xlu1 %4275 }
0x31cd   :  { %5359 = vlog2.f32 %v4276_v10 }
0x31d6   :  { %v5358_v12 = vpop.eup %5357 }
0x31d7   :  { %v5360_v13 = vpop.eup %5359  ;;  %v4286_v16 = vmul.f32 0.6931472, %v5358_v12 }
0x31d8   :  { %v4284_v19 = vmul.f32 0.6931472, %v5360_v13 }
0x31d9   :  { %v4290_v22 = vsub.f32 %v6351_v40, %v4286_v16 }
0x31da   :  { %v4289_v23 = vsub.f32 %v6353_v21, %v4284_v19 }
0x31db   :  { %4294 = vst [vmem:[%s6414_s21 + $0x18] sm:$0xff] %v4290_v22 }
0x31dc   :  { %4293 = vst [vmem:[%s6414_s21 + $0x10] sm:$0xff] %v4289_v23 }

</bundles_post_ra>
